<compile_context>
chip_gen: v7x
topology: tpu7x:2x2x1
jax: 0.10.0
libtpu: 0.0.40
codegen_flags: <defaults>
</compile_context>

<pallas_src>
import functools

import jax
import jax.numpy as jnp
import numpy as np
from jax.experimental import pallas as pl
from jax.experimental.pallas import tpu as pltpu


# ---------------------------------------------------------------------------
# Fused CBAM kernel (Nb batch elements per grid step)
# ---------------------------------------------------------------------------
def cbam_fused_kernel(x_ref, w1t_ref, w2t_ref, wc_ref, mask_ref, o_ref,
                      *, Nb, W, K, P, ew_dtype):
    # x_ref   : (Nb, C, HW) VMEM block (HW lane-dense)
    # w1t_ref : (C, Cr)     VMEM  -- 1x1 conv #1 of shared MLP, transposed
    # w2t_ref : (Cr, C)     VMEM  -- 1x1 conv #2 of shared MLP, transposed
    # wc_ref  : (2*Nb, K*K) VMEM  -- 7x7 conv weights, rows 0..Nb-1 = avg ch,
    #                                 rows Nb..2Nb-1 = max ch
    # mask_ref: (K*K, HW)   VMEM  -- precomputed 0/1 border masks per tap
    # o_ref   : (Nb, C, HW) VMEM block
    C = x_ref.shape[1]
    HW = x_ref.shape[2]

    # ---------------- channel attention ----------------
    x_io = x_ref[...]                                    # (Nb, C, HW), I/O dtype
    x_f32 = x_io.astype(jnp.float32)
    avg_c = jnp.mean(x_f32, axis=2)                      # (Nb, C)  lane reduce (XLU)
    max_c = jnp.max(x_f32, axis=2)                       # (Nb, C)
    pooled = jnp.concatenate([avg_c, max_c], axis=0)     # (2*Nb, C): rows avg.., max..

    # shared MLP, lane-dense in C (weights pre-transposed in the wrapper)
    h = jnp.maximum(
        jnp.dot(pooled, w1t_ref[...], preferred_element_type=jnp.float32), 0.0)  # (2Nb, Cr)
    z = jnp.dot(h, w2t_ref[...], preferred_element_type=jnp.float32)             # (2Nb, C)
    s_ch = jax.nn.sigmoid(z[:Nb] + z[Nb:])               # (Nb, C)

    # Channel-gated activations.  Stage them into the output VMEM block so no
    # (Nb, C, HW) f32 value has to stay live across the 49-tap conv loop
    # (avoids the full-block spill/reload flagged by the perf review).
    y = x_io.astype(ew_dtype) * s_ch.astype(ew_dtype)[:, :, None]   # (Nb, C, HW)
    o_ref[...] = y.astype(o_ref.dtype)

    # ---------------- spatial attention ----------------
    # Channel mean on the MXU (otherwise-idle slot); channel max on the VPU.
    onec = jnp.full((1, C), 1.0 / C, dtype=ew_dtype)
    avg_rows = [jnp.dot(onec, y[b], preferred_element_type=jnp.float32)
                for b in range(Nb)]                       # Nb x (1, HW)
    avg_map = avg_rows[0] if Nb == 1 else jnp.concatenate(avg_rows, axis=0)
    max_map = jnp.max(y, axis=1).astype(jnp.float32)      # (Nb, HW)
    maps = jnp.concatenate([avg_map, max_map], axis=0)    # (2*Nb, HW)

    # Direct KxK conv (2 in-channels, 1 out-channel) on the flat HW layout:
    # tap (kh, kw) needs map[p + s] with s = (kh-P)*W + (kw-P), implemented as
    # an XLU lane rotation; out-of-image positions are zeroed by the
    # precomputed border masks (reproduces PyTorch's zero padding).
    wc = wc_ref[...]                                      # (2*Nb, K*K) f32
    acc = jnp.zeros((2 * Nb, HW), jnp.float32)
    for kh in range(K):
        for kw in range(K):
            t = kh * K + kw
            s = (kh - P) * W + (kw - P)
            r = (-s) % HW
            rolled = maps if r == 0 else pltpu.roll(maps, r, axis=1)   # (2Nb, HW)
            acc = acc + wc[:, t:t + 1] * (rolled * mask_ref[t:t + 1, :])
    s_sp = jax.nn.sigmoid(acc[:Nb] + acc[Nb:])            # (Nb, HW): avg-ch + max-ch rows

    # Re-read the staged y (VMEM load, not a spilled f32 value) and apply the
    # spatial gate.
    y2 = o_ref[...].astype(ew_dtype)
    o_ref[...] = (y2 * s_sp.astype(ew_dtype)[:, None, :]).astype(o_ref.dtype)


# ---------------------------------------------------------------------------
# Wrapper helpers
# ---------------------------------------------------------------------------
def _elementwise_dtype(x_dtype):
    """bf16 elementwise math only when I/O is bf16 and the VPU supports it."""
    if x_dtype == jnp.bfloat16:
        kind = jax.devices()[0].device_kind.lower()
        if "v5" in kind:          # v5e VPU has no bf16 ALUs -> keep f32
            return jnp.float32
        return jnp.bfloat16
    return jnp.float32


def _pick_nb(N, C, HW, itemsize):
    """Batch elements per grid step: amortize step overhead / XLU rolls,
    keep 2*Nb <= 8 sublanes for the map stack, keep >= 2 parallel grid steps
    when possible (v7x dual-TensorCore), and respect a VMEM working-set
    budget."""
    budget = 20 << 20
    for nb in (4, 2, 1):
        if N % nb != 0:
            continue
        if N >= 2 and N // nb < 2:
            continue
        wset = nb * C * HW * (itemsize * 4 + 4 * 3)
        if wset <= budget or nb == 1:
            return nb
    return 1


def cbam_pallas(x, w1, w2, wc, *, kernel_size=7):
    N, C, H, W = x.shape
    Cr = w1.shape[0]
    HW = H * W
    K = kernel_size
    P = (K - 1) // 2
    KK = K * K

    itemsize = jnp.dtype(x.dtype).itemsize
    Nb = _pick_nb(N, C, HW, itemsize)
    ew_dtype = _elementwise_dtype(x.dtype)

    x2 = x.reshape(N, C, HW)                              # lane-dense view (HW on lanes)

    # Pre-transposed MLP weights (lane-dense C orientation inside the kernel).
    w1t = jnp.transpose(w1).astype(jnp.float32)           # (C, Cr)
    w2t = jnp.transpose(w2).astype(jnp.float32)           # (Cr, C)

    # Spatial conv weights expanded over the Nb sublane-stacked map rows.
    wc2 = wc.reshape(2, KK).astype(jnp.float32)           # [ci, kh*K+kw]
    wc_exp = jnp.concatenate([jnp.tile(wc2[0:1], (Nb, 1)),
                              jnp.tile(wc2[1:2], (Nb, 1))], axis=0)  # (2*Nb, KK)

    # Host-side border masks (zero-padding semantics of the KxK conv in the
    # flat HW layout; also kills wrapped lane-rotation contributions).
    pos = np.arange(HW)
    row, col = pos // W, pos % W
    masks_np = np.zeros((KK, HW), np.float32)
    for kh in range(K):
        for kw in range(K):
            ok = ((row + kh - P >= 0) & (row + kh - P < H) &
                  (col + kw - P >= 0) & (col + kw - P < W))
            masks_np[kh * K + kw] = ok
    masks = jnp.asarray(masks_np)

    # Explicit VMEM budget: double-buffered in/out blocks + weights/masks +
    # f32 transients, clamped to v7x's 64 MiB VMEM.
    block_bytes = Nb * C * HW * itemsize
    aux_bytes = (KK * HW + 2 * Nb * KK + 2 * C * Cr) * 4
    work_bytes = Nb * C * HW * 4 * 3
    vmem_limit = 2 * 2 * block_bytes + 2 * aux_bytes + work_bytes + (4 << 20)
    vmem_limit = int(min(64 << 20, max(32 << 20, vmem_limit)))

    out2 = pl.pallas_call(
        functools.partial(cbam_fused_kernel, Nb=Nb, W=W, K=K, P=P,
                          ew_dtype=ew_dtype),
        out_shape=jax.ShapeDtypeStruct((N, C, HW), x.dtype),
        grid_spec=pltpu.PrefetchScalarGridSpec(
            num_scalar_prefetch=0,
            grid=(N // Nb,),
            in_specs=[
                pl.BlockSpec((Nb, C, HW), lambda n: (n, 0, 0)),
                pl.BlockSpec((C, Cr), lambda n: (0, 0)),
                pl.BlockSpec((Cr, C), lambda n: (0, 0)),
                pl.BlockSpec((2 * Nb, KK), lambda n: (0, 0)),
                pl.BlockSpec((KK, HW), lambda n: (0, 0)),
            ],
            out_specs=pl.BlockSpec((Nb, C, HW), lambda n: (n, 0, 0)),
        ),
        compiler_params=pltpu.CompilerParams(
            dimension_semantics=("parallel",),
            vmem_limit_bytes=vmem_limit,
        ),
    )(x2, w1t, w2t, wc_exp, masks)
    return out2.reshape(N, C, H, W)


# ---------------------------------------------------------------------------
# Pure-JAX reference (for correctness check)
# ---------------------------------------------------------------------------
def cbam_ref(x, w1, w2, wc):
    avg = jnp.mean(x, axis=(2, 3))                   # (N, C)
    mx = jnp.max(x, axis=(2, 3))                     # (N, C)

    def fc(v):
        return jnp.maximum(v @ w1.T, 0.0) @ w2.T

    s = jax.nn.sigmoid(fc(avg) + fc(mx))[:, :, None, None]
    y = x * s

    avg_m = jnp.mean(y, axis=1, keepdims=True)
    max_m = jnp.max(y, axis=1, keepdims=True)
    cat = jnp.concatenate([avg_m, max_m], axis=1)    # (N, 2, H, W)
    conv = jax.lax.conv_general_dilated(
        cat, wc, window_strides=(1, 1), padding=((3, 3), (3, 3)),
        dimension_numbers=("NCHW", "OIHW", "NCHW"))
    return jax.nn.sigmoid(conv) * y


if __name__ == "__main__":
    key = jax.random.PRNGKey(0)
    kx, k1, k2, kc = jax.random.split(key, 4)

    # Small shapes consistent with CBAM(channels=32, reduction=16, kernel_size=7)
    N, C, H, W = 2, 32, 16, 16
    reduction, K = 16, 7
    Cr = C // reduction

    x = jax.random.normal(kx, (N, C, H, W), dtype=jnp.float32)
    w1 = jax.random.normal(k1, (Cr, C), dtype=jnp.float32) * 0.2       # Conv2d(C, C//r, 1, bias=False)
    w2 = jax.random.normal(k2, (C, Cr), dtype=jnp.float32) * 0.2       # Conv2d(C//r, C, 1, bias=False)
    wc = jax.random.normal(kc, (1, 2, K, K), dtype=jnp.float32) * 0.1  # Conv2d(2, 1, 7, pad=3, bias=False)

    out = cbam_pallas(x, w1, w2, wc, kernel_size=K)
    jax.block_until_ready(out)

    ref = cbam_ref(x, w1, w2, wc)
    assert out.shape == x.shape and out.dtype == x.dtype
    np.testing.assert_allclose(np.asarray(out), np.asarray(ref), atol=2e-4, rtol=2e-4)
    print("KERNEL_OK")
</pallas_src>

<mosaic_0001>
module attributes {stable_mosaic.version = 11 : i64} {
  func.func @cbam_fused_kernel(%arg0: i32, %arg1: memref<1x32x256xf32, #tpu.memory_space<vmem>>, %arg2: memref<32x2xf32, #tpu.memory_space<vmem>>, %arg3: memref<2x32xf32, #tpu.memory_space<vmem>>, %arg4: memref<2x49xf32, #tpu.memory_space<vmem>>, %arg5: memref<49x256xf32, #tpu.memory_space<vmem>>, %arg6: memref<1x32x256xf32, #tpu.memory_space<vmem>>) attributes {dimension_semantics = [#tpu.dimension_semantics<parallel>], iteration_bounds = array<i64: 2>, scalar_prefetch = 0 : i64, scratch_operands = 0 : i64, tpu.core_type = #tpu.core_type<tc>, window_params = [{transform_indices = @transform_0, window_bounds = array<i64: 1, 32, 256>}, {pipeline_mode = #tpu.pipeline_mode<synchronous>, transform_indices = @transform_1, window_bounds = array<i64: 32, 2>}, {pipeline_mode = #tpu.pipeline_mode<synchronous>, transform_indices = @transform_2, window_bounds = array<i64: 2, 32>}, {pipeline_mode = #tpu.pipeline_mode<synchronous>, transform_indices = @transform_3, window_bounds = array<i64: 2, 49>}, {pipeline_mode = #tpu.pipeline_mode<synchronous>, transform_indices = @transform_4, window_bounds = array<i64: 49, 256>}, {transform_indices = @transform_5, window_bounds = array<i64: 1, 32, 256>}]} {
    %c0 = arith.constant 0 : index
    %c0_0 = arith.constant 0 : index
    %c0_1 = arith.constant 0 : index
    %0 = vector.load %arg1[%c0, %c0_0, %c0_1] : memref<1x32x256xf32, #tpu.memory_space<vmem>>, vector<1x32x256xf32>
    %cst = arith.constant dense<0.000000e+00> : vector<1x32xf32>
    %1 = vector.multi_reduction <add>, %0, %cst [2] : vector<1x32x256xf32> to vector<1x32xf32>
    %cst_2 = arith.constant 2.560000e+02 : f32
    %2 = vector.broadcast %cst_2 : f32 to vector<1x32xf32>
    %3 = arith.divf %1, %2 : vector<1x32xf32>
    %cst_3 = arith.constant dense<0xFF800000> : vector<1x32xf32>
    %4 = vector.multi_reduction <maximumf>, %0, %cst_3 [2] : vector<1x32x256xf32> to vector<1x32xf32>
    %5 = tpu.concatenate %3, %4 in 0 : vector<1x32xf32>, vector<1x32xf32> -> vector<2x32xf32>
    %c0_4 = arith.constant 0 : index
    %c0_5 = arith.constant 0 : index
    %6 = vector.load %arg2[%c0_4, %c0_5] : memref<32x2xf32, #tpu.memory_space<vmem>>, vector<32x2xf32>
    %cst_6 = arith.constant dense<0.000000e+00> : vector<2x2xf32>
    %7 = tpu.matmul %5, %6, %cst_6 {dimension_numbers = #tpu.dot_dimension_numbers<[1], [0], [0], [1], [0, 0, 1, 1], [], []>} : vector<2x32xf32>, vector<32x2xf32>, vector<2x2xf32> -> vector<2x2xf32>
    %cst_7 = arith.constant 0.000000e+00 : f32
    %8 = vector.broadcast %cst_7 : f32 to vector<2x2xf32>
    %9 = arith.maximumf %7, %8 : vector<2x2xf32>
    %c0_8 = arith.constant 0 : index
    %c0_9 = arith.constant 0 : index
    %10 = vector.load %arg3[%c0_8, %c0_9] : memref<2x32xf32, #tpu.memory_space<vmem>>, vector<2x32xf32>
    %cst_10 = arith.constant dense<0.000000e+00> : vector<2x32xf32>
    %11 = tpu.matmul %9, %10, %cst_10 {dimension_numbers = #tpu.dot_dimension_numbers<[1], [0], [0], [1], [0, 0, 1, 1], [], []>} : vector<2x2xf32>, vector<2x32xf32>, vector<2x32xf32> -> vector<2x32xf32>
    %12 = vector.extract_strided_slice %11 {offsets = [0, 0], sizes = [1, 32], strides = [1, 1]} : vector<2x32xf32> to vector<1x32xf32>
    %13 = vector.extract_strided_slice %11 {offsets = [1, 0], sizes = [1, 32], strides = [1, 1]} : vector<2x32xf32> to vector<1x32xf32>
    %14 = arith.addf %12, %13 : vector<1x32xf32>
    %15 = arith.negf %14 : vector<1x32xf32>
    %16 = math.exp %15 : vector<1x32xf32>
    %cst_11 = arith.constant 1.000000e+00 : f32
    %17 = vector.broadcast %cst_11 : f32 to vector<1x32xf32>
    %18 = arith.addf %17, %16 : vector<1x32xf32>
    %19 = arith.divf %17, %18 : vector<1x32xf32>
    %20 = vector.shape_cast %19 : vector<1x32xf32> to vector<1x32x1xf32>
    %21 = vector.broadcast %20 : vector<1x32x1xf32> to vector<1x32x256xf32>
    %22 = arith.mulf %0, %21 : vector<1x32x256xf32>
    %c0_12 = arith.constant 0 : index
    %c0_13 = arith.constant 0 : index
    %c0_14 = arith.constant 0 : index
    %23 = vector.load %arg6[%c0_12, %c0_13, %c0_14] : memref<1x32x256xf32, #tpu.memory_space<vmem>>, vector<1x32x256xf32>
    tpu.vector_store %arg6[%c0_12, %c0_13, %c0_14], %22 {strides = array<i32>} : memref<1x32x256xf32, #tpu.memory_space<vmem>>, vector<1x32x256xf32>,
    %cst_15 = arith.constant 3.125000e-02 : f32
    %24 = vector.broadcast %cst_15 : f32 to vector<1x32xf32>
    %25 = vector.shape_cast %22 : vector<1x32x256xf32> to vector<32x256xf32>
    %cst_16 = arith.constant dense<0.000000e+00> : vector<1x256xf32>
    %26 = tpu.matmul %24, %25, %cst_16 {dimension_numbers = #tpu.dot_dimension_numbers<[1], [0], [0], [1], [0, 0, 1, 1], [], []>} : vector<1x32xf32>, vector<32x256xf32>, vector<1x256xf32> -> vector<1x256xf32>
    %cst_17 = arith.constant dense<0xFF800000> : vector<1x256xf32>
    %27 = vector.multi_reduction <maximumf>, %22, %cst_17 [1] : vector<1x32x256xf32> to vector<1x256xf32>
    %28 = tpu.concatenate %26, %27 in 0 : vector<1x256xf32>, vector<1x256xf32> -> vector<2x256xf32>
    %c0_18 = arith.constant 0 : index
    %c0_19 = arith.constant 0 : index
    %29 = vector.load %arg4[%c0_18, %c0_19] : memref<2x49xf32, #tpu.memory_space<vmem>>, vector<2x49xf32>
    %cst_20 = arith.constant 0.000000e+00 : f32
    %30 = vector.broadcast %cst_20 : f32 to vector<2x256xf32>
    %c51_i32 = arith.constant 51 : i32
    %31 = tpu.dynamic_rotate %28 by %c51_i32 dim 1 : vector<2x256xf32>, i32 -> vector<2x256xf32>
    %32 = vector.extract_strided_slice %29 {offsets = [0, 0], sizes = [2, 1], strides = [1, 1]} : vector<2x49xf32> to vector<2x1xf32>
    %c0_21 = arith.constant 0 : index
    %c0_22 = arith.constant 0 : index
    %33 = vector.load %arg5[%c0_21, %c0_22] : memref<49x256xf32, #tpu.memory_space<vmem>>, vector<1x256xf32>
    %34 = vector.broadcast %33 : vector<1x256xf32> to vector<2x256xf32>
    %35 = arith.mulf %31, %34 : vector<2x256xf32>
    %36 = vector.broadcast %32 : vector<2x1xf32> to vector<2x256xf32>
    %37 = arith.mulf %36, %35 : vector<2x256xf32>
    %38 = arith.addf %30, %37 : vector<2x256xf32>
    %c50_i32 = arith.constant 50 : i32
    %39 = tpu.dynamic_rotate %28 by %c50_i32 dim 1 : vector<2x256xf32>, i32 -> vector<2x256xf32>
    %40 = vector.extract_strided_slice %29 {offsets = [0, 1], sizes = [2, 1], strides = [1, 1]} : vector<2x49xf32> to vector<2x1xf32>
    %c1 = arith.constant 1 : index
    %c0_23 = arith.constant 0 : index
    %41 = vector.load %arg5[%c1, %c0_23] : memref<49x256xf32, #tpu.memory_space<vmem>>, vector<1x256xf32>
    %42 = vector.broadcast %41 : vector<1x256xf32> to vector<2x256xf32>
    %43 = arith.mulf %39, %42 : vector<2x256xf32>
    %44 = vector.broadcast %40 : vector<2x1xf32> to vector<2x256xf32>
    %45 = arith.mulf %44, %43 : vector<2x256xf32>
    %46 = arith.addf %38, %45 : vector<2x256xf32>
    %c49_i32 = arith.constant 49 : i32
    %47 = tpu.dynamic_rotate %28 by %c49_i32 dim 1 : vector<2x256xf32>, i32 -> vector<2x256xf32>
    %48 = vector.extract_strided_slice %29 {offsets = [0, 2], sizes = [2, 1], strides = [1, 1]} : vector<2x49xf32> to vector<2x1xf32>
    %c2 = arith.constant 2 : index
    %c0_24 = arith.constant 0 : index
    %49 = vector.load %arg5[%c2, %c0_24] : memref<49x256xf32, #tpu.memory_space<vmem>>, vector<1x256xf32>
    %50 = vector.broadcast %49 : vector<1x256xf32> to vector<2x256xf32>
    %51 = arith.mulf %47, %50 : vector<2x256xf32>
    %52 = vector.broadcast %48 : vector<2x1xf32> to vector<2x256xf32>
    %53 = arith.mulf %52, %51 : vector<2x256xf32>
    %54 = arith.addf %46, %53 : vector<2x256xf32>
    %c48_i32 = arith.constant 48 : i32
    %55 = tpu.dynamic_rotate %28 by %c48_i32 dim 1 : vector<2x256xf32>, i32 -> vector<2x256xf32>
    %56 = vector.extract_strided_slice %29 {offsets = [0, 3], sizes = [2, 1], strides = [1, 1]} : vector<2x49xf32> to vector<2x1xf32>
    %c3 = arith.constant 3 : index
    %c0_25 = arith.constant 0 : index
    %57 = vector.load %arg5[%c3, %c0_25] : memref<49x256xf32, #tpu.memory_space<vmem>>, vector<1x256xf32>
    %58 = vector.broadcast %57 : vector<1x256xf32> to vector<2x256xf32>
    %59 = arith.mulf %55, %58 : vector<2x256xf32>
    %60 = vector.broadcast %56 : vector<2x1xf32> to vector<2x256xf32>
    %61 = arith.mulf %60, %59 : vector<2x256xf32>
    %62 = arith.addf %54, %61 : vector<2x256xf32>
    %c47_i32 = arith.constant 47 : i32
    %63 = tpu.dynamic_rotate %28 by %c47_i32 dim 1 : vector<2x256xf32>, i32 -> vector<2x256xf32>
    %64 = vector.extract_strided_slice %29 {offsets = [0, 4], sizes = [2, 1], strides = [1, 1]} : vector<2x49xf32> to vector<2x1xf32>
    %c4 = arith.constant 4 : index
    %c0_26 = arith.constant 0 : index
    %65 = vector.load %arg5[%c4, %c0_26] : memref<49x256xf32, #tpu.memory_space<vmem>>, vector<1x256xf32>
    %66 = vector.broadcast %65 : vector<1x256xf32> to vector<2x256xf32>
    %67 = arith.mulf %63, %66 : vector<2x256xf32>
    %68 = vector.broadcast %64 : vector<2x1xf32> to vector<2x256xf32>
    %69 = arith.mulf %68, %67 : vector<2x256xf32>
    %70 = arith.addf %62, %69 : vector<2x256xf32>
    %c46_i32 = arith.constant 46 : i32
    %71 = tpu.dynamic_rotate %28 by %c46_i32 dim 1 : vector<2x256xf32>, i32 -> vector<2x256xf32>
    %72 = vector.extract_strided_slice %29 {offsets = [0, 5], sizes = [2, 1], strides = [1, 1]} : vector<2x49xf32> to vector<2x1xf32>
    %c5 = arith.constant 5 : index
    %c0_27 = arith.constant 0 : index
    %73 = vector.load %arg5[%c5, %c0_27] : memref<49x256xf32, #tpu.memory_space<vmem>>, vector<1x256xf32>
    %74 = vector.broadcast %73 : vector<1x256xf32> to vector<2x256xf32>
    %75 = arith.mulf %71, %74 : vector<2x256xf32>
    %76 = vector.broadcast %72 : vector<2x1xf32> to vector<2x256xf32>
    %77 = arith.mulf %76, %75 : vector<2x256xf32>
    %78 = arith.addf %70, %77 : vector<2x256xf32>
    %c45_i32 = arith.constant 45 : i32
    %79 = tpu.dynamic_rotate %28 by %c45_i32 dim 1 : vector<2x256xf32>, i32 -> vector<2x256xf32>
    %80 = vector.extract_strided_slice %29 {offsets = [0, 6], sizes = [2, 1], strides = [1, 1]} : vector<2x49xf32> to vector<2x1xf32>
    %c6 = arith.constant 6 : index
    %c0_28 = arith.constant 0 : index
    %81 = vector.load %arg5[%c6, %c0_28] : memref<49x256xf32, #tpu.memory_space<vmem>>, vector<1x256xf32>
    %82 = vector.broadcast %81 : vector<1x256xf32> to vector<2x256xf32>
    %83 = arith.mulf %79, %82 : vector<2x256xf32>
    %84 = vector.broadcast %80 : vector<2x1xf32> to vector<2x256xf32>
    %85 = arith.mulf %84, %83 : vector<2x256xf32>
    %86 = arith.addf %78, %85 : vector<2x256xf32>
    %c35_i32 = arith.constant 35 : i32
    %87 = tpu.dynamic_rotate %28 by %c35_i32 dim 1 : vector<2x256xf32>, i32 -> vector<2x256xf32>
    %88 = vector.extract_strided_slice %29 {offsets = [0, 7], sizes = [2, 1], strides = [1, 1]} : vector<2x49xf32> to vector<2x1xf32>
    %c7 = arith.constant 7 : index
    %c0_29 = arith.constant 0 : index
    %89 = vector.load %arg5[%c7, %c0_29] : memref<49x256xf32, #tpu.memory_space<vmem>>, vector<1x256xf32>
    %90 = vector.broadcast %89 : vector<1x256xf32> to vector<2x256xf32>
    %91 = arith.mulf %87, %90 : vector<2x256xf32>
    %92 = vector.broadcast %88 : vector<2x1xf32> to vector<2x256xf32>
    %93 = arith.mulf %92, %91 : vector<2x256xf32>
    %94 = arith.addf %86, %93 : vector<2x256xf32>
    %c34_i32 = arith.constant 34 : i32
    %95 = tpu.dynamic_rotate %28 by %c34_i32 dim 1 : vector<2x256xf32>, i32 -> vector<2x256xf32>
    %96 = vector.extract_strided_slice %29 {offsets = [0, 8], sizes = [2, 1], strides = [1, 1]} : vector<2x49xf32> to vector<2x1xf32>
    %c8 = arith.constant 8 : index
    %c0_30 = arith.constant 0 : index
    %97 = vector.load %arg5[%c8, %c0_30] : memref<49x256xf32, #tpu.memory_space<vmem>>, vector<1x256xf32>
    %98 = vector.broadcast %97 : vector<1x256xf32> to vector<2x256xf32>
    %99 = arith.mulf %95, %98 : vector<2x256xf32>
    %100 = vector.broadcast %96 : vector<2x1xf32> to vector<2x256xf32>
    %101 = arith.mulf %100, %99 : vector<2x256xf32>
    %102 = arith.addf %94, %101 : vector<2x256xf32>
    %c33_i32 = arith.constant 33 : i32
    %103 = tpu.dynamic_rotate %28 by %c33_i32 dim 1 : vector<2x256xf32>, i32 -> vector<2x256xf32>
    %104 = vector.extract_strided_slice %29 {offsets = [0, 9], sizes = [2, 1], strides = [1, 1]} : vector<2x49xf32> to vector<2x1xf32>
    %c9 = arith.constant 9 : index
    %c0_31 = arith.constant 0 : index
    %105 = vector.load %arg5[%c9, %c0_31] : memref<49x256xf32, #tpu.memory_space<vmem>>, vector<1x256xf32>
    %106 = vector.broadcast %105 : vector<1x256xf32> to vector<2x256xf32>
    %107 = arith.mulf %103, %106 : vector<2x256xf32>
    %108 = vector.broadcast %104 : vector<2x1xf32> to vector<2x256xf32>
    %109 = arith.mulf %108, %107 : vector<2x256xf32>
    %110 = arith.addf %102, %109 : vector<2x256xf32>
    %c32_i32 = arith.constant 32 : i32
    %111 = tpu.dynamic_rotate %28 by %c32_i32 dim 1 : vector<2x256xf32>, i32 -> vector<2x256xf32>
    %112 = vector.extract_strided_slice %29 {offsets = [0, 10], sizes = [2, 1], strides = [1, 1]} : vector<2x49xf32> to vector<2x1xf32>
    %c10 = arith.constant 10 : index
    %c0_32 = arith.constant 0 : index
    %113 = vector.load %arg5[%c10, %c0_32] : memref<49x256xf32, #tpu.memory_space<vmem>>, vector<1x256xf32>
    %114 = vector.broadcast %113 : vector<1x256xf32> to vector<2x256xf32>
    %115 = arith.mulf %111, %114 : vector<2x256xf32>
    %116 = vector.broadcast %112 : vector<2x1xf32> to vector<2x256xf32>
    %117 = arith.mulf %116, %115 : vector<2x256xf32>
    %118 = arith.addf %110, %117 : vector<2x256xf32>
    %c31_i32 = arith.constant 31 : i32
    %119 = tpu.dynamic_rotate %28 by %c31_i32 dim 1 : vector<2x256xf32>, i32 -> vector<2x256xf32>
    %120 = vector.extract_strided_slice %29 {offsets = [0, 11], sizes = [2, 1], strides = [1, 1]} : vector<2x49xf32> to vector<2x1xf32>
    %c11 = arith.constant 11 : index
    %c0_33 = arith.constant 0 : index
    %121 = vector.load %arg5[%c11, %c0_33] : memref<49x256xf32, #tpu.memory_space<vmem>>, vector<1x256xf32>
    %122 = vector.broadcast %121 : vector<1x256xf32> to vector<2x256xf32>
    %123 = arith.mulf %119, %122 : vector<2x256xf32>
    %124 = vector.broadcast %120 : vector<2x1xf32> to vector<2x256xf32>
    %125 = arith.mulf %124, %123 : vector<2x256xf32>
    %126 = arith.addf %118, %125 : vector<2x256xf32>
    %c30_i32 = arith.constant 30 : i32
    %127 = tpu.dynamic_rotate %28 by %c30_i32 dim 1 : vector<2x256xf32>, i32 -> vector<2x256xf32>
    %128 = vector.extract_strided_slice %29 {offsets = [0, 12], sizes = [2, 1], strides = [1, 1]} : vector<2x49xf32> to vector<2x1xf32>
    %c12 = arith.constant 12 : index
    %c0_34 = arith.constant 0 : index
    %129 = vector.load %arg5[%c12, %c0_34] : memref<49x256xf32, #tpu.memory_space<vmem>>, vector<1x256xf32>
    %130 = vector.broadcast %129 : vector<1x256xf32> to vector<2x256xf32>
    %131 = arith.mulf %127, %130 : vector<2x256xf32>
    %132 = vector.broadcast %128 : vector<2x1xf32> to vector<2x256xf32>
    %133 = arith.mulf %132, %131 : vector<2x256xf32>
    %134 = arith.addf %126, %133 : vector<2x256xf32>
    %c29_i32 = arith.constant 29 : i32
    %135 = tpu.dynamic_rotate %28 by %c29_i32 dim 1 : vector<2x256xf32>, i32 -> vector<2x256xf32>
    %136 = vector.extract_strided_slice %29 {offsets = [0, 13], sizes = [2, 1], strides = [1, 1]} : vector<2x49xf32> to vector<2x1xf32>
    %c13 = arith.constant 13 : index
    %c0_35 = arith.constant 0 : index
    %137 = vector.load %arg5[%c13, %c0_35] : memref<49x256xf32, #tpu.memory_space<vmem>>, vector<1x256xf32>
    %138 = vector.broadcast %137 : vector<1x256xf32> to vector<2x256xf32>
    %139 = arith.mulf %135, %138 : vector<2x256xf32>
    %140 = vector.broadcast %136 : vector<2x1xf32> to vector<2x256xf32>
    %141 = arith.mulf %140, %139 : vector<2x256xf32>
    %142 = arith.addf %134, %141 : vector<2x256xf32>
    %c19_i32 = arith.constant 19 : i32
    %143 = tpu.dynamic_rotate %28 by %c19_i32 dim 1 : vector<2x256xf32>, i32 -> vector<2x256xf32>
    %144 = vector.extract_strided_slice %29 {offsets = [0, 14], sizes = [2, 1], strides = [1, 1]} : vector<2x49xf32> to vector<2x1xf32>
    %c14 = arith.constant 14 : index
    %c0_36 = arith.constant 0 : index
    %145 = vector.load %arg5[%c14, %c0_36] : memref<49x256xf32, #tpu.memory_space<vmem>>, vector<1x256xf32>
    %146 = vector.broadcast %145 : vector<1x256xf32> to vector<2x256xf32>
    %147 = arith.mulf %143, %146 : vector<2x256xf32>
    %148 = vector.broadcast %144 : vector<2x1xf32> to vector<2x256xf32>
    %149 = arith.mulf %148, %147 : vector<2x256xf32>
    %150 = arith.addf %142, %149 : vector<2x256xf32>
    %c18_i32 = arith.constant 18 : i32
    %151 = tpu.dynamic_rotate %28 by %c18_i32 dim 1 : vector<2x256xf32>, i32 -> vector<2x256xf32>
    %152 = vector.extract_strided_slice %29 {offsets = [0, 15], sizes = [2, 1], strides = [1, 1]} : vector<2x49xf32> to vector<2x1xf32>
    %c15 = arith.constant 15 : index
    %c0_37 = arith.constant 0 : index
    %153 = vector.load %arg5[%c15, %c0_37] : memref<49x256xf32, #tpu.memory_space<vmem>>, vector<1x256xf32>
    %154 = vector.broadcast %153 : vector<1x256xf32> to vector<2x256xf32>
    %155 = arith.mulf %151, %154 : vector<2x256xf32>
    %156 = vector.broadcast %152 : vector<2x1xf32> to vector<2x256xf32>
    %157 = arith.mulf %156, %155 : vector<2x256xf32>
    %158 = arith.addf %150, %157 : vector<2x256xf32>
    %c17_i32 = arith.constant 17 : i32
    %159 = tpu.dynamic_rotate %28 by %c17_i32 dim 1 : vector<2x256xf32>, i32 -> vector<2x256xf32>
    %160 = vector.extract_strided_slice %29 {offsets = [0, 16], sizes = [2, 1], strides = [1, 1]} : vector<2x49xf32> to vector<2x1xf32>
    %c16 = arith.constant 16 : index
    %c0_38 = arith.constant 0 : index
    %161 = vector.load %arg5[%c16, %c0_38] : memref<49x256xf32, #tpu.memory_space<vmem>>, vector<1x256xf32>
    %162 = vector.broadcast %161 : vector<1x256xf32> to vector<2x256xf32>
    %163 = arith.mulf %159, %162 : vector<2x256xf32>
    %164 = vector.broadcast %160 : vector<2x1xf32> to vector<2x256xf32>
    %165 = arith.mulf %164, %163 : vector<2x256xf32>
    %166 = arith.addf %158, %165 : vector<2x256xf32>
    %c16_i32 = arith.constant 16 : i32
    %167 = tpu.dynamic_rotate %28 by %c16_i32 dim 1 : vector<2x256xf32>, i32 -> vector<2x256xf32>
    %168 = vector.extract_strided_slice %29 {offsets = [0, 17], sizes = [2, 1], strides = [1, 1]} : vector<2x49xf32> to vector<2x1xf32>
    %c17 = arith.constant 17 : index
    %c0_39 = arith.constant 0 : index
    %169 = vector.load %arg5[%c17, %c0_39] : memref<49x256xf32, #tpu.memory_space<vmem>>, vector<1x256xf32>
    %170 = vector.broadcast %169 : vector<1x256xf32> to vector<2x256xf32>
    %171 = arith.mulf %167, %170 : vector<2x256xf32>
    %172 = vector.broadcast %168 : vector<2x1xf32> to vector<2x256xf32>
    %173 = arith.mulf %172, %171 : vector<2x256xf32>
    %174 = arith.addf %166, %173 : vector<2x256xf32>
    %c15_i32 = arith.constant 15 : i32
    %175 = tpu.dynamic_rotate %28 by %c15_i32 dim 1 : vector<2x256xf32>, i32 -> vector<2x256xf32>
    %176 = vector.extract_strided_slice %29 {offsets = [0, 18], sizes = [2, 1], strides = [1, 1]} : vector<2x49xf32> to vector<2x1xf32>
    %c18 = arith.constant 18 : index
    %c0_40 = arith.constant 0 : index
    %177 = vector.load %arg5[%c18, %c0_40] : memref<49x256xf32, #tpu.memory_space<vmem>>, vector<1x256xf32>
    %178 = vector.broadcast %177 : vector<1x256xf32> to vector<2x256xf32>
    %179 = arith.mulf %175, %178 : vector<2x256xf32>
    %180 = vector.broadcast %176 : vector<2x1xf32> to vector<2x256xf32>
    %181 = arith.mulf %180, %179 : vector<2x256xf32>
    %182 = arith.addf %174, %181 : vector<2x256xf32>
    %c14_i32 = arith.constant 14 : i32
    %183 = tpu.dynamic_rotate %28 by %c14_i32 dim 1 : vector<2x256xf32>, i32 -> vector<2x256xf32>
    %184 = vector.extract_strided_slice %29 {offsets = [0, 19], sizes = [2, 1], strides = [1, 1]} : vector<2x49xf32> to vector<2x1xf32>
    %c19 = arith.constant 19 : index
    %c0_41 = arith.constant 0 : index
    %185 = vector.load %arg5[%c19, %c0_41] : memref<49x256xf32, #tpu.memory_space<vmem>>, vector<1x256xf32>
    %186 = vector.broadcast %185 : vector<1x256xf32> to vector<2x256xf32>
    %187 = arith.mulf %183, %186 : vector<2x256xf32>
    %188 = vector.broadcast %184 : vector<2x1xf32> to vector<2x256xf32>
    %189 = arith.mulf %188, %187 : vector<2x256xf32>
    %190 = arith.addf %182, %189 : vector<2x256xf32>
    %c13_i32 = arith.constant 13 : i32
    %191 = tpu.dynamic_rotate %28 by %c13_i32 dim 1 : vector<2x256xf32>, i32 -> vector<2x256xf32>
    %192 = vector.extract_strided_slice %29 {offsets = [0, 20], sizes = [2, 1], strides = [1, 1]} : vector<2x49xf32> to vector<2x1xf32>
    %c20 = arith.constant 20 : index
    %c0_42 = arith.constant 0 : index
    %193 = vector.load %arg5[%c20, %c0_42] : memref<49x256xf32, #tpu.memory_space<vmem>>, vector<1x256xf32>
    %194 = vector.broadcast %193 : vector<1x256xf32> to vector<2x256xf32>
    %195 = arith.mulf %191, %194 : vector<2x256xf32>
    %196 = vector.broadcast %192 : vector<2x1xf32> to vector<2x256xf32>
    %197 = arith.mulf %196, %195 : vector<2x256xf32>
    %198 = arith.addf %190, %197 : vector<2x256xf32>
    %c3_i32 = arith.constant 3 : i32
    %199 = tpu.dynamic_rotate %28 by %c3_i32 dim 1 : vector<2x256xf32>, i32 -> vector<2x256xf32>
    %200 = vector.extract_strided_slice %29 {offsets = [0, 21], sizes = [2, 1], strides = [1, 1]} : vector<2x49xf32> to vector<2x1xf32>
    %c21 = arith.constant 21 : index
    %c0_43 = arith.constant 0 : index
    %201 = vector.load %arg5[%c21, %c0_43] : memref<49x256xf32, #tpu.memory_space<vmem>>, vector<1x256xf32>
    %202 = vector.broadcast %201 : vector<1x256xf32> to vector<2x256xf32>
    %203 = arith.mulf %199, %202 : vector<2x256xf32>
    %204 = vector.broadcast %200 : vector<2x1xf32> to vector<2x256xf32>
    %205 = arith.mulf %204, %203 : vector<2x256xf32>
    %206 = arith.addf %198, %205 : vector<2x256xf32>
    %c2_i32 = arith.constant 2 : i32
    %207 = tpu.dynamic_rotate %28 by %c2_i32 dim 1 : vector<2x256xf32>, i32 -> vector<2x256xf32>
    %208 = vector.extract_strided_slice %29 {offsets = [0, 22], sizes = [2, 1], strides = [1, 1]} : vector<2x49xf32> to vector<2x1xf32>
    %c22 = arith.constant 22 : index
    %c0_44 = arith.constant 0 : index
    %209 = vector.load %arg5[%c22, %c0_44] : memref<49x256xf32, #tpu.memory_space<vmem>>, vector<1x256xf32>
    %210 = vector.broadcast %209 : vector<1x256xf32> to vector<2x256xf32>
    %211 = arith.mulf %207, %210 : vector<2x256xf32>
    %212 = vector.broadcast %208 : vector<2x1xf32> to vector<2x256xf32>
    %213 = arith.mulf %212, %211 : vector<2x256xf32>
    %214 = arith.addf %206, %213 : vector<2x256xf32>
    %c1_i32 = arith.constant 1 : i32
    %215 = tpu.dynamic_rotate %28 by %c1_i32 dim 1 : vector<2x256xf32>, i32 -> vector<2x256xf32>
    %216 = vector.extract_strided_slice %29 {offsets = [0, 23], sizes = [2, 1], strides = [1, 1]} : vector<2x49xf32> to vector<2x1xf32>
    %c23 = arith.constant 23 : index
    %c0_45 = arith.constant 0 : index
    %217 = vector.load %arg5[%c23, %c0_45] : memref<49x256xf32, #tpu.memory_space<vmem>>, vector<1x256xf32>
    %218 = vector.broadcast %217 : vector<1x256xf32> to vector<2x256xf32>
    %219 = arith.mulf %215, %218 : vector<2x256xf32>
    %220 = vector.broadcast %216 : vector<2x1xf32> to vector<2x256xf32>
    %221 = arith.mulf %220, %219 : vector<2x256xf32>
    %222 = arith.addf %214, %221 : vector<2x256xf32>
    %223 = vector.extract_strided_slice %29 {offsets = [0, 24], sizes = [2, 1], strides = [1, 1]} : vector<2x49xf32> to vector<2x1xf32>
    %c24 = arith.constant 24 : index
    %c0_46 = arith.constant 0 : index
    %224 = vector.load %arg5[%c24, %c0_46] : memref<49x256xf32, #tpu.memory_space<vmem>>, vector<1x256xf32>
    %225 = vector.broadcast %224 : vector<1x256xf32> to vector<2x256xf32>
    %226 = arith.mulf %28, %225 : vector<2x256xf32>
    %227 = vector.broadcast %223 : vector<2x1xf32> to vector<2x256xf32>
    %228 = arith.mulf %227, %226 : vector<2x256xf32>
    %229 = arith.addf %222, %228 : vector<2x256xf32>
    %c255_i32 = arith.constant 255 : i32
    %230 = tpu.dynamic_rotate %28 by %c255_i32 dim 1 : vector<2x256xf32>, i32 -> vector<2x256xf32>
    %231 = vector.extract_strided_slice %29 {offsets = [0, 25], sizes = [2, 1], strides = [1, 1]} : vector<2x49xf32> to vector<2x1xf32>
    %c25 = arith.constant 25 : index
    %c0_47 = arith.constant 0 : index
    %232 = vector.load %arg5[%c25, %c0_47] : memref<49x256xf32, #tpu.memory_space<vmem>>, vector<1x256xf32>
    %233 = vector.broadcast %232 : vector<1x256xf32> to vector<2x256xf32>
    %234 = arith.mulf %230, %233 : vector<2x256xf32>
    %235 = vector.broadcast %231 : vector<2x1xf32> to vector<2x256xf32>
    %236 = arith.mulf %235, %234 : vector<2x256xf32>
    %237 = arith.addf %229, %236 : vector<2x256xf32>
    %c254_i32 = arith.constant 254 : i32
    %238 = tpu.dynamic_rotate %28 by %c254_i32 dim 1 : vector<2x256xf32>, i32 -> vector<2x256xf32>
    %239 = vector.extract_strided_slice %29 {offsets = [0, 26], sizes = [2, 1], strides = [1, 1]} : vector<2x49xf32> to vector<2x1xf32>
    %c26 = arith.constant 26 : index
    %c0_48 = arith.constant 0 : index
    %240 = vector.load %arg5[%c26, %c0_48] : memref<49x256xf32, #tpu.memory_space<vmem>>, vector<1x256xf32>
    %241 = vector.broadcast %240 : vector<1x256xf32> to vector<2x256xf32>
    %242 = arith.mulf %238, %241 : vector<2x256xf32>
    %243 = vector.broadcast %239 : vector<2x1xf32> to vector<2x256xf32>
    %244 = arith.mulf %243, %242 : vector<2x256xf32>
    %245 = arith.addf %237, %244 : vector<2x256xf32>
    %c253_i32 = arith.constant 253 : i32
    %246 = tpu.dynamic_rotate %28 by %c253_i32 dim 1 : vector<2x256xf32>, i32 -> vector<2x256xf32>
    %247 = vector.extract_strided_slice %29 {offsets = [0, 27], sizes = [2, 1], strides = [1, 1]} : vector<2x49xf32> to vector<2x1xf32>
    %c27 = arith.constant 27 : index
    %c0_49 = arith.constant 0 : index
    %248 = vector.load %arg5[%c27, %c0_49] : memref<49x256xf32, #tpu.memory_space<vmem>>, vector<1x256xf32>
    %249 = vector.broadcast %248 : vector<1x256xf32> to vector<2x256xf32>
    %250 = arith.mulf %246, %249 : vector<2x256xf32>
    %251 = vector.broadcast %247 : vector<2x1xf32> to vector<2x256xf32>
    %252 = arith.mulf %251, %250 : vector<2x256xf32>
    %253 = arith.addf %245, %252 : vector<2x256xf32>
    %c243_i32 = arith.constant 243 : i32
    %254 = tpu.dynamic_rotate %28 by %c243_i32 dim 1 : vector<2x256xf32>, i32 -> vector<2x256xf32>
    %255 = vector.extract_strided_slice %29 {offsets = [0, 28], sizes = [2, 1], strides = [1, 1]} : vector<2x49xf32> to vector<2x1xf32>
    %c28 = arith.constant 28 : index
    %c0_50 = arith.constant 0 : index
    %256 = vector.load %arg5[%c28, %c0_50] : memref<49x256xf32, #tpu.memory_space<vmem>>, vector<1x256xf32>
    %257 = vector.broadcast %256 : vector<1x256xf32> to vector<2x256xf32>
    %258 = arith.mulf %254, %257 : vector<2x256xf32>
    %259 = vector.broadcast %255 : vector<2x1xf32> to vector<2x256xf32>
    %260 = arith.mulf %259, %258 : vector<2x256xf32>
    %261 = arith.addf %253, %260 : vector<2x256xf32>
    %c242_i32 = arith.constant 242 : i32
    %262 = tpu.dynamic_rotate %28 by %c242_i32 dim 1 : vector<2x256xf32>, i32 -> vector<2x256xf32>
    %263 = vector.extract_strided_slice %29 {offsets = [0, 29], sizes = [2, 1], strides = [1, 1]} : vector<2x49xf32> to vector<2x1xf32>
    %c29 = arith.constant 29 : index
    %c0_51 = arith.constant 0 : index
    %264 = vector.load %arg5[%c29, %c0_51] : memref<49x256xf32, #tpu.memory_space<vmem>>, vector<1x256xf32>
    %265 = vector.broadcast %264 : vector<1x256xf32> to vector<2x256xf32>
    %266 = arith.mulf %262, %265 : vector<2x256xf32>
    %267 = vector.broadcast %263 : vector<2x1xf32> to vector<2x256xf32>
    %268 = arith.mulf %267, %266 : vector<2x256xf32>
    %269 = arith.addf %261, %268 : vector<2x256xf32>
    %c241_i32 = arith.constant 241 : i32
    %270 = tpu.dynamic_rotate %28 by %c241_i32 dim 1 : vector<2x256xf32>, i32 -> vector<2x256xf32>
    %271 = vector.extract_strided_slice %29 {offsets = [0, 30], sizes = [2, 1], strides = [1, 1]} : vector<2x49xf32> to vector<2x1xf32>
    %c30 = arith.constant 30 : index
    %c0_52 = arith.constant 0 : index
    %272 = vector.load %arg5[%c30, %c0_52] : memref<49x256xf32, #tpu.memory_space<vmem>>, vector<1x256xf32>
    %273 = vector.broadcast %272 : vector<1x256xf32> to vector<2x256xf32>
    %274 = arith.mulf %270, %273 : vector<2x256xf32>
    %275 = vector.broadcast %271 : vector<2x1xf32> to vector<2x256xf32>
    %276 = arith.mulf %275, %274 : vector<2x256xf32>
    %277 = arith.addf %269, %276 : vector<2x256xf32>
    %c240_i32 = arith.constant 240 : i32
    %278 = tpu.dynamic_rotate %28 by %c240_i32 dim 1 : vector<2x256xf32>, i32 -> vector<2x256xf32>
    %279 = vector.extract_strided_slice %29 {offsets = [0, 31], sizes = [2, 1], strides = [1, 1]} : vector<2x49xf32> to vector<2x1xf32>
    %c31 = arith.constant 31 : index
    %c0_53 = arith.constant 0 : index
    %280 = vector.load %arg5[%c31, %c0_53] : memref<49x256xf32, #tpu.memory_space<vmem>>, vector<1x256xf32>
    %281 = vector.broadcast %280 : vector<1x256xf32> to vector<2x256xf32>
    %282 = arith.mulf %278, %281 : vector<2x256xf32>
    %283 = vector.broadcast %279 : vector<2x1xf32> to vector<2x256xf32>
    %284 = arith.mulf %283, %282 : vector<2x256xf32>
    %285 = arith.addf %277, %284 : vector<2x256xf32>
    %c239_i32 = arith.constant 239 : i32
    %286 = tpu.dynamic_rotate %28 by %c239_i32 dim 1 : vector<2x256xf32>, i32 -> vector<2x256xf32>
    %287 = vector.extract_strided_slice %29 {offsets = [0, 32], sizes = [2, 1], strides = [1, 1]} : vector<2x49xf32> to vector<2x1xf32>
    %c32 = arith.constant 32 : index
    %c0_54 = arith.constant 0 : index
    %288 = vector.load %arg5[%c32, %c0_54] : memref<49x256xf32, #tpu.memory_space<vmem>>, vector<1x256xf32>
    %289 = vector.broadcast %288 : vector<1x256xf32> to vector<2x256xf32>
    %290 = arith.mulf %286, %289 : vector<2x256xf32>
    %291 = vector.broadcast %287 : vector<2x1xf32> to vector<2x256xf32>
    %292 = arith.mulf %291, %290 : vector<2x256xf32>
    %293 = arith.addf %285, %292 : vector<2x256xf32>
    %c238_i32 = arith.constant 238 : i32
    %294 = tpu.dynamic_rotate %28 by %c238_i32 dim 1 : vector<2x256xf32>, i32 -> vector<2x256xf32>
    %295 = vector.extract_strided_slice %29 {offsets = [0, 33], sizes = [2, 1], strides = [1, 1]} : vector<2x49xf32> to vector<2x1xf32>
    %c33 = arith.constant 33 : index
    %c0_55 = arith.constant 0 : index
    %296 = vector.load %arg5[%c33, %c0_55] : memref<49x256xf32, #tpu.memory_space<vmem>>, vector<1x256xf32>
    %297 = vector.broadcast %296 : vector<1x256xf32> to vector<2x256xf32>
    %298 = arith.mulf %294, %297 : vector<2x256xf32>
    %299 = vector.broadcast %295 : vector<2x1xf32> to vector<2x256xf32>
    %300 = arith.mulf %299, %298 : vector<2x256xf32>
    %301 = arith.addf %293, %300 : vector<2x256xf32>
    %c237_i32 = arith.constant 237 : i32
    %302 = tpu.dynamic_rotate %28 by %c237_i32 dim 1 : vector<2x256xf32>, i32 -> vector<2x256xf32>
    %303 = vector.extract_strided_slice %29 {offsets = [0, 34], sizes = [2, 1], strides = [1, 1]} : vector<2x49xf32> to vector<2x1xf32>
    %c34 = arith.constant 34 : index
    %c0_56 = arith.constant 0 : index
    %304 = vector.load %arg5[%c34, %c0_56] : memref<49x256xf32, #tpu.memory_space<vmem>>, vector<1x256xf32>
    %305 = vector.broadcast %304 : vector<1x256xf32> to vector<2x256xf32>
    %306 = arith.mulf %302, %305 : vector<2x256xf32>
    %307 = vector.broadcast %303 : vector<2x1xf32> to vector<2x256xf32>
    %308 = arith.mulf %307, %306 : vector<2x256xf32>
    %309 = arith.addf %301, %308 : vector<2x256xf32>
    %c227_i32 = arith.constant 227 : i32
    %310 = tpu.dynamic_rotate %28 by %c227_i32 dim 1 : vector<2x256xf32>, i32 -> vector<2x256xf32>
    %311 = vector.extract_strided_slice %29 {offsets = [0, 35], sizes = [2, 1], strides = [1, 1]} : vector<2x49xf32> to vector<2x1xf32>
    %c35 = arith.constant 35 : index
    %c0_57 = arith.constant 0 : index
    %312 = vector.load %arg5[%c35, %c0_57] : memref<49x256xf32, #tpu.memory_space<vmem>>, vector<1x256xf32>
    %313 = vector.broadcast %312 : vector<1x256xf32> to vector<2x256xf32>
    %314 = arith.mulf %310, %313 : vector<2x256xf32>
    %315 = vector.broadcast %311 : vector<2x1xf32> to vector<2x256xf32>
    %316 = arith.mulf %315, %314 : vector<2x256xf32>
    %317 = arith.addf %309, %316 : vector<2x256xf32>
    %c226_i32 = arith.constant 226 : i32
    %318 = tpu.dynamic_rotate %28 by %c226_i32 dim 1 : vector<2x256xf32>, i32 -> vector<2x256xf32>
    %319 = vector.extract_strided_slice %29 {offsets = [0, 36], sizes = [2, 1], strides = [1, 1]} : vector<2x49xf32> to vector<2x1xf32>
    %c36 = arith.constant 36 : index
    %c0_58 = arith.constant 0 : index
    %320 = vector.load %arg5[%c36, %c0_58] : memref<49x256xf32, #tpu.memory_space<vmem>>, vector<1x256xf32>
    %321 = vector.broadcast %320 : vector<1x256xf32> to vector<2x256xf32>
    %322 = arith.mulf %318, %321 : vector<2x256xf32>
    %323 = vector.broadcast %319 : vector<2x1xf32> to vector<2x256xf32>
    %324 = arith.mulf %323, %322 : vector<2x256xf32>
    %325 = arith.addf %317, %324 : vector<2x256xf32>
    %c225_i32 = arith.constant 225 : i32
    %326 = tpu.dynamic_rotate %28 by %c225_i32 dim 1 : vector<2x256xf32>, i32 -> vector<2x256xf32>
    %327 = vector.extract_strided_slice %29 {offsets = [0, 37], sizes = [2, 1], strides = [1, 1]} : vector<2x49xf32> to vector<2x1xf32>
    %c37 = arith.constant 37 : index
    %c0_59 = arith.constant 0 : index
    %328 = vector.load %arg5[%c37, %c0_59] : memref<49x256xf32, #tpu.memory_space<vmem>>, vector<1x256xf32>
    %329 = vector.broadcast %328 : vector<1x256xf32> to vector<2x256xf32>
    %330 = arith.mulf %326, %329 : vector<2x256xf32>
    %331 = vector.broadcast %327 : vector<2x1xf32> to vector<2x256xf32>
    %332 = arith.mulf %331, %330 : vector<2x256xf32>
    %333 = arith.addf %325, %332 : vector<2x256xf32>
    %c224_i32 = arith.constant 224 : i32
    %334 = tpu.dynamic_rotate %28 by %c224_i32 dim 1 : vector<2x256xf32>, i32 -> vector<2x256xf32>
    %335 = vector.extract_strided_slice %29 {offsets = [0, 38], sizes = [2, 1], strides = [1, 1]} : vector<2x49xf32> to vector<2x1xf32>
    %c38 = arith.constant 38 : index
    %c0_60 = arith.constant 0 : index
    %336 = vector.load %arg5[%c38, %c0_60] : memref<49x256xf32, #tpu.memory_space<vmem>>, vector<1x256xf32>
    %337 = vector.broadcast %336 : vector<1x256xf32> to vector<2x256xf32>
    %338 = arith.mulf %334, %337 : vector<2x256xf32>
    %339 = vector.broadcast %335 : vector<2x1xf32> to vector<2x256xf32>
    %340 = arith.mulf %339, %338 : vector<2x256xf32>
    %341 = arith.addf %333, %340 : vector<2x256xf32>
    %c223_i32 = arith.constant 223 : i32
    %342 = tpu.dynamic_rotate %28 by %c223_i32 dim 1 : vector<2x256xf32>, i32 -> vector<2x256xf32>
    %343 = vector.extract_strided_slice %29 {offsets = [0, 39], sizes = [2, 1], strides = [1, 1]} : vector<2x49xf32> to vector<2x1xf32>
    %c39 = arith.constant 39 : index
    %c0_61 = arith.constant 0 : index
    %344 = vector.load %arg5[%c39, %c0_61] : memref<49x256xf32, #tpu.memory_space<vmem>>, vector<1x256xf32>
    %345 = vector.broadcast %344 : vector<1x256xf32> to vector<2x256xf32>
    %346 = arith.mulf %342, %345 : vector<2x256xf32>
    %347 = vector.broadcast %343 : vector<2x1xf32> to vector<2x256xf32>
    %348 = arith.mulf %347, %346 : vector<2x256xf32>
    %349 = arith.addf %341, %348 : vector<2x256xf32>
    %c222_i32 = arith.constant 222 : i32
    %350 = tpu.dynamic_rotate %28 by %c222_i32 dim 1 : vector<2x256xf32>, i32 -> vector<2x256xf32>
    %351 = vector.extract_strided_slice %29 {offsets = [0, 40], sizes = [2, 1], strides = [1, 1]} : vector<2x49xf32> to vector<2x1xf32>
    %c40 = arith.constant 40 : index
    %c0_62 = arith.constant 0 : index
    %352 = vector.load %arg5[%c40, %c0_62] : memref<49x256xf32, #tpu.memory_space<vmem>>, vector<1x256xf32>
    %353 = vector.broadcast %352 : vector<1x256xf32> to vector<2x256xf32>
    %354 = arith.mulf %350, %353 : vector<2x256xf32>
    %355 = vector.broadcast %351 : vector<2x1xf32> to vector<2x256xf32>
    %356 = arith.mulf %355, %354 : vector<2x256xf32>
    %357 = arith.addf %349, %356 : vector<2x256xf32>
    %c221_i32 = arith.constant 221 : i32
    %358 = tpu.dynamic_rotate %28 by %c221_i32 dim 1 : vector<2x256xf32>, i32 -> vector<2x256xf32>
    %359 = vector.extract_strided_slice %29 {offsets = [0, 41], sizes = [2, 1], strides = [1, 1]} : vector<2x49xf32> to vector<2x1xf32>
    %c41 = arith.constant 41 : index
    %c0_63 = arith.constant 0 : index
    %360 = vector.load %arg5[%c41, %c0_63] : memref<49x256xf32, #tpu.memory_space<vmem>>, vector<1x256xf32>
    %361 = vector.broadcast %360 : vector<1x256xf32> to vector<2x256xf32>
    %362 = arith.mulf %358, %361 : vector<2x256xf32>
    %363 = vector.broadcast %359 : vector<2x1xf32> to vector<2x256xf32>
    %364 = arith.mulf %363, %362 : vector<2x256xf32>
    %365 = arith.addf %357, %364 : vector<2x256xf32>
    %c211_i32 = arith.constant 211 : i32
    %366 = tpu.dynamic_rotate %28 by %c211_i32 dim 1 : vector<2x256xf32>, i32 -> vector<2x256xf32>
    %367 = vector.extract_strided_slice %29 {offsets = [0, 42], sizes = [2, 1], strides = [1, 1]} : vector<2x49xf32> to vector<2x1xf32>
    %c42 = arith.constant 42 : index
    %c0_64 = arith.constant 0 : index
    %368 = vector.load %arg5[%c42, %c0_64] : memref<49x256xf32, #tpu.memory_space<vmem>>, vector<1x256xf32>
    %369 = vector.broadcast %368 : vector<1x256xf32> to vector<2x256xf32>
    %370 = arith.mulf %366, %369 : vector<2x256xf32>
    %371 = vector.broadcast %367 : vector<2x1xf32> to vector<2x256xf32>
    %372 = arith.mulf %371, %370 : vector<2x256xf32>
    %373 = arith.addf %365, %372 : vector<2x256xf32>
    %c210_i32 = arith.constant 210 : i32
    %374 = tpu.dynamic_rotate %28 by %c210_i32 dim 1 : vector<2x256xf32>, i32 -> vector<2x256xf32>
    %375 = vector.extract_strided_slice %29 {offsets = [0, 43], sizes = [2, 1], strides = [1, 1]} : vector<2x49xf32> to vector<2x1xf32>
    %c43 = arith.constant 43 : index
    %c0_65 = arith.constant 0 : index
    %376 = vector.load %arg5[%c43, %c0_65] : memref<49x256xf32, #tpu.memory_space<vmem>>, vector<1x256xf32>
    %377 = vector.broadcast %376 : vector<1x256xf32> to vector<2x256xf32>
    %378 = arith.mulf %374, %377 : vector<2x256xf32>
    %379 = vector.broadcast %375 : vector<2x1xf32> to vector<2x256xf32>
    %380 = arith.mulf %379, %378 : vector<2x256xf32>
    %381 = arith.addf %373, %380 : vector<2x256xf32>
    %c209_i32 = arith.constant 209 : i32
    %382 = tpu.dynamic_rotate %28 by %c209_i32 dim 1 : vector<2x256xf32>, i32 -> vector<2x256xf32>
    %383 = vector.extract_strided_slice %29 {offsets = [0, 44], sizes = [2, 1], strides = [1, 1]} : vector<2x49xf32> to vector<2x1xf32>
    %c44 = arith.constant 44 : index
    %c0_66 = arith.constant 0 : index
    %384 = vector.load %arg5[%c44, %c0_66] : memref<49x256xf32, #tpu.memory_space<vmem>>, vector<1x256xf32>
    %385 = vector.broadcast %384 : vector<1x256xf32> to vector<2x256xf32>
    %386 = arith.mulf %382, %385 : vector<2x256xf32>
    %387 = vector.broadcast %383 : vector<2x1xf32> to vector<2x256xf32>
    %388 = arith.mulf %387, %386 : vector<2x256xf32>
    %389 = arith.addf %381, %388 : vector<2x256xf32>
    %c208_i32 = arith.constant 208 : i32
    %390 = tpu.dynamic_rotate %28 by %c208_i32 dim 1 : vector<2x256xf32>, i32 -> vector<2x256xf32>
    %391 = vector.extract_strided_slice %29 {offsets = [0, 45], sizes = [2, 1], strides = [1, 1]} : vector<2x49xf32> to vector<2x1xf32>
    %c45 = arith.constant 45 : index
    %c0_67 = arith.constant 0 : index
    %392 = vector.load %arg5[%c45, %c0_67] : memref<49x256xf32, #tpu.memory_space<vmem>>, vector<1x256xf32>
    %393 = vector.broadcast %392 : vector<1x256xf32> to vector<2x256xf32>
    %394 = arith.mulf %390, %393 : vector<2x256xf32>
    %395 = vector.broadcast %391 : vector<2x1xf32> to vector<2x256xf32>
    %396 = arith.mulf %395, %394 : vector<2x256xf32>
    %397 = arith.addf %389, %396 : vector<2x256xf32>
    %c207_i32 = arith.constant 207 : i32
    %398 = tpu.dynamic_rotate %28 by %c207_i32 dim 1 : vector<2x256xf32>, i32 -> vector<2x256xf32>
    %399 = vector.extract_strided_slice %29 {offsets = [0, 46], sizes = [2, 1], strides = [1, 1]} : vector<2x49xf32> to vector<2x1xf32>
    %c46 = arith.constant 46 : index
    %c0_68 = arith.constant 0 : index
    %400 = vector.load %arg5[%c46, %c0_68] : memref<49x256xf32, #tpu.memory_space<vmem>>, vector<1x256xf32>
    %401 = vector.broadcast %400 : vector<1x256xf32> to vector<2x256xf32>
    %402 = arith.mulf %398, %401 : vector<2x256xf32>
    %403 = vector.broadcast %399 : vector<2x1xf32> to vector<2x256xf32>
    %404 = arith.mulf %403, %402 : vector<2x256xf32>
    %405 = arith.addf %397, %404 : vector<2x256xf32>
    %c206_i32 = arith.constant 206 : i32
    %406 = tpu.dynamic_rotate %28 by %c206_i32 dim 1 : vector<2x256xf32>, i32 -> vector<2x256xf32>
    %407 = vector.extract_strided_slice %29 {offsets = [0, 47], sizes = [2, 1], strides = [1, 1]} : vector<2x49xf32> to vector<2x1xf32>
    %c47 = arith.constant 47 : index
    %c0_69 = arith.constant 0 : index
    %408 = vector.load %arg5[%c47, %c0_69] : memref<49x256xf32, #tpu.memory_space<vmem>>, vector<1x256xf32>
    %409 = vector.broadcast %408 : vector<1x256xf32> to vector<2x256xf32>
    %410 = arith.mulf %406, %409 : vector<2x256xf32>
    %411 = vector.broadcast %407 : vector<2x1xf32> to vector<2x256xf32>
    %412 = arith.mulf %411, %410 : vector<2x256xf32>
    %413 = arith.addf %405, %412 : vector<2x256xf32>
    %c205_i32 = arith.constant 205 : i32
    %414 = tpu.dynamic_rotate %28 by %c205_i32 dim 1 : vector<2x256xf32>, i32 -> vector<2x256xf32>
    %415 = vector.extract_strided_slice %29 {offsets = [0, 48], sizes = [2, 1], strides = [1, 1]} : vector<2x49xf32> to vector<2x1xf32>
    %c48 = arith.constant 48 : index
    %c0_70 = arith.constant 0 : index
    %416 = vector.load %arg5[%c48, %c0_70] : memref<49x256xf32, #tpu.memory_space<vmem>>, vector<1x256xf32>
    %417 = vector.broadcast %416 : vector<1x256xf32> to vector<2x256xf32>
    %418 = arith.mulf %414, %417 : vector<2x256xf32>
    %419 = vector.broadcast %415 : vector<2x1xf32> to vector<2x256xf32>
    %420 = arith.mulf %419, %418 : vector<2x256xf32>
    %421 = arith.addf %413, %420 : vector<2x256xf32>
    %422 = vector.extract_strided_slice %421 {offsets = [0, 0], sizes = [1, 256], strides = [1, 1]} : vector<2x256xf32> to vector<1x256xf32>
    %423 = vector.extract_strided_slice %421 {offsets = [1, 0], sizes = [1, 256], strides = [1, 1]} : vector<2x256xf32> to vector<1x256xf32>
    %424 = arith.addf %422, %423 : vector<1x256xf32>
    %425 = arith.negf %424 : vector<1x256xf32>
    %426 = math.exp %425 : vector<1x256xf32>
    %cst_71 = arith.constant 1.000000e+00 : f32
    %427 = vector.broadcast %cst_71 : f32 to vector<1x256xf32>
    %428 = arith.addf %427, %426 : vector<1x256xf32>
    %429 = arith.divf %427, %428 : vector<1x256xf32>
    %c0_72 = arith.constant 0 : index
    %c0_73 = arith.constant 0 : index
    %c0_74 = arith.constant 0 : index
    %430 = vector.load %arg6[%c0_72, %c0_73, %c0_74] : memref<1x32x256xf32, #tpu.memory_space<vmem>>, vector<1x32x256xf32>
    %431 = vector.shape_cast %429 : vector<1x256xf32> to vector<1x1x256xf32>
    %432 = vector.broadcast %431 : vector<1x1x256xf32> to vector<1x32x256xf32>
    %433 = arith.mulf %430, %432 : vector<1x32x256xf32>
    %c0_75 = arith.constant 0 : index
    %c0_76 = arith.constant 0 : index
    %c0_77 = arith.constant 0 : index
    %434 = vector.load %arg6[%c0_75, %c0_76, %c0_77] : memref<1x32x256xf32, #tpu.memory_space<vmem>>, vector<1x32x256xf32>
    tpu.vector_store %arg6[%c0_75, %c0_76, %c0_77], %433 {strides = array<i32>} : memref<1x32x256xf32, #tpu.memory_space<vmem>>, vector<1x32x256xf32>,
    return
  }
  func.func @transform_0(%arg0: i32) -> (i32, i32, i32) {
    %c0_i32 = arith.constant 0 : i32
    %c0_i32_0 = arith.constant 0 : i32
    %c0_i32_1 = arith.constant 0 : i32
    return %arg0, %c0_i32, %c0_i32_0 : i32, i32, i32
  }
  func.func @transform_1(%arg0: i32) -> (i32, i32) {
    %c0_i32 = arith.constant 0 : i32
    %c0_i32_0 = arith.constant 0 : i32
    %c0_i32_1 = arith.constant 0 : i32
    return %c0_i32, %c0_i32_0 : i32, i32
  }
  func.func @transform_2(%arg0: i32) -> (i32, i32) {
    %c0_i32 = arith.constant 0 : i32
    %c0_i32_0 = arith.constant 0 : i32
    %c0_i32_1 = arith.constant 0 : i32
    return %c0_i32, %c0_i32_0 : i32, i32
  }
  func.func @transform_3(%arg0: i32) -> (i32, i32) {
    %c0_i32 = arith.constant 0 : i32
    %c0_i32_0 = arith.constant 0 : i32
    %c0_i32_1 = arith.constant 0 : i32
    return %c0_i32, %c0_i32_0 : i32, i32
  }
  func.func @transform_4(%arg0: i32) -> (i32, i32) {
    %c0_i32 = arith.constant 0 : i32
    %c0_i32_0 = arith.constant 0 : i32
    %c0_i32_1 = arith.constant 0 : i32
    return %c0_i32, %c0_i32_0 : i32, i32
  }
  func.func @transform_5(%arg0: i32) -> (i32, i32, i32) {
    %c0_i32 = arith.constant 0 : i32
    %c0_i32_0 = arith.constant 0 : i32
    %c0_i32_1 = arith.constant 0 : i32
    return %arg0, %c0_i32, %c0_i32_0 : i32, i32, i32
  }
}

</mosaic_0001>

<bundles_post_ra>
// kernel: tpu_custom_call.1
= control target key start
LH: loop header
LB: loop body
LE: loop exit
PB: predicated region body
PF: predicated region fallthrough
CT: control target
= control target key end

     0   :  { %10 = vsyncpa [#allocation3], 0  ;;  %s4196_s0 = inlined_call_operand.hbm [shape: f32[2,32,256], index: 0, kind: input, shape index: {}]   ;;  %s4197_s1 = inlined_call_operand.vmem [shape: f32[32,2], index: 1, kind: input, shape index: {}]   ;;  %s4198_s2 = inlined_call_operand.vmem [shape: f32[2,32], index: 2, kind: input, shape index: {}]   ;;  %s4199_s3 = inlined_call_operand.vmem [shape: f32[2,49], index: 3, kind: input, shape index: {}]   ;;  %s4200_s4 = inlined_call_operand.hbm [shape: f32[49,256], index: 4, kind: input, shape index: {}]   ;;  %s4201_s5 = inlined_call_operand.hbm [shape: f32[2,32,256], index: 5, kind: output, shape index: {}]  }
   0x1   :  { %12 = vsyncpa [#allocation3 + $0x1], 0 }
   0x2   :  { %13 = vsyncpa [#allocation6], 0 }
   0x3   :  { %14 = vsyncpa [#allocation4], 0 }
   0x4   :  { %16 = vsyncpa [#allocation4 + $0x1], 0  ;;  %s2814_s18 = smov 0   ;;  %s2816_s19 = smov 0  }
   0x5   :  { %s2818_s20 = smov 0   ;;  %s2820_s21 = smov 0  }
   0x6 LB: > { %s2835_s22 = sadd.s32 4294967295, %s2675_s21   ;;  %s2263_s23 = sadd.s32 4294967294, %s2675_s21   ;;  %s2675_s21 = sphi %s2820_s21, %s4402_s21   ;;  %s2671_s20 = sphi %s2818_s20, %s4401_s20   ;;  %s2667_s19 = sphi %s2816_s19, %s4400_s19   ;;  %s2663_s18 = sphi %s2814_s18, %s4399_s18  }
   0x7   : > { %p42_p0 = scmp.ne.s32.totalorder %s2667_s19, %s2663_s18  ;;  %p4202_p1 = scmp.eq.s32.totalorder %s2835_s22, 0 }
   0x8   : > { %p156_p3 = scmp.eq.s32.totalorder %s2263_s23, 1  ;;  %p2264_p5 = scmp.ge.s32.totalorder %s2675_s21, 1 }
   0x9   : > { %p2844_p4 = por %p4202_p1, %p42_p0  ;;  %p163_p7 = scmp.lt.s32.totalorder %s2675_s21, 3 }
   0xa   : > { %p2849_p6 = por %p156_p3, %p42_p0  ;;  %s2677_s27 = smov [#allocation5]  }
   0xb   : > { %s4275_s24 = scalar_select %p2844_p4, 1, 0 }
   0xc   : > { %s4276_s25 = scalar_select %p2849_p6, 1, 0 }
   0xd   : > { %p2854_p8 = pnand %p2264_p5, %p163_p7  ;;  %s184_s28 = sshll.u32 %s2677_s27, 4  ;;  %s2858_s28 = int_to_ptr.vmem [resolvable:$true] %s184_s28 }
   0xe   : > { %s2870_s30 = sadd.s32 1, %s2675_s21   ;;  %s29_s6 = sadd.s32 1, %s2671_s20 }
   0xf   : > { %s4277_s26 = scalar_select %p2854_p8, 1, 0 }
  0x10   : > { %p2333_p9 = pneg %p2854_p8  ;;  %s26_s7 = ssub.s32 %s2675_s21, %s2870_s30 }
  0x11   : > { %s2547_s10 = scalar_lea.hbm %s4200_s4, 1792 }
  0x12   : > { %p2865_p11 = pnand %p2333_p9, %p4202_p1  ;;  %p2548_p12 = scmp.ne.s32.totalorder %s4200_s4, %s2547_s10 }
  0x13   : > { %p2554_p5 = scmp.lt.u32.totalorder %s2547_s10, %s4200_s4 }
  0x14   : > { %p2549_p13 = pneg %p2865_p11 }
  0x16   : > { %p2550_p0 = pnand %p2549_p13, %p2548_p12 }
  0x18   : > { %p2551_p3 = pneg %p2550_p0 }
  0x1a   : > { %p2556_p7 = pnand %p2554_p5, %p2551_p3 }
  0x1c   : > { %2559 = shalt.err (!%p2556_p7)
}
  0x1d   : > { %s2560_s15 = scalar_lea.vmem %s2858_s28, 1792  ;;  %p2568_p2 = scmp.lt.s32.totalorder %s2858_s28, %s2858_s28 }
  0x1e   : > { %p2561_p9 = scmp.ne.s32.totalorder %s2858_s28, %s2560_s15  ;;  %p2569_p6 = scmp.lt.s32.totalorder %s2560_s15, %s2560_s15 }
  0x20   : > { %p2563_p10 = pnand %p2561_p9, %p2549_p13  ;;  %p2570_p4 = por %p2569_p6, %p2568_p2 }
  0x22   : > { %p2564_p1 = pneg %p2563_p10 }
  0x24   : > { %p2571_p8 = pnand %p2570_p4, %p2564_p1 }
  0x26   : > { %2574 = shalt.err (!%p2571_p8)
}
  0x27   : > { %s2678_s16 = smov 256   ;;  %s2679_s17 = smov 16  }
  0x28   : > { %2336 = dma.hbm_to_vmem [thread:$0]  (!%p2865_p11), %s4200_s4, 1792, %s2858_s28, [#allocation6], %s2678_s16, %s2678_s16, %s2679_s17  }
  0x29   : > { %p27_p1 = scmp.eq.s32.totalorder %s26_s7, 0  ;;  %p36_p2 = scmp.ne.s32.totalorder %s2671_s20, %s2667_s19 }
  0x2a   : > { %p37_p4 = scmp.eq.s32.totalorder %s2675_s21, 0  ;;  %p2346_p6 = scmp.lt.s32.totalorder %s2675_s21, 2 }
  0x2b   : > { %s2904_s8 = scalar_select %p27_p1, %s2671_s20, %s29_s6  }
  0x2c   : > { %p38_p8 = por %p37_p4, %p36_p2  ;;  %p4279_p10 = scmp.eq.s32.totalorder %s2835_s22, 1 }
  0x2d   : > { %s198_s29 = sand.u32 1, %s2671_s20   ;;  %s2286_s10 = sshll.u32 %s2675_s21, 10 }
  0x2e   : > { %p2908_p12 = por %p4279_p10, %p36_p2  ;;  %s2267_s11 = sshll.u32 %s198_s29, 6 }
  0x2f   : > { %s2917_s14 = scalar_lea.hbm %s4196_s0, %s2286_s10  ;;  %s202_s28 = scalar_lea.vmem [#allocation2], %s2267_s11 }
  0x30   : > { %s209_s6 = sshll.u32 %s202_s28, 4  ;;  %p2919_p11 = pnand %p2346_p6, %p38_p8  ;;  %s2923_s6 = int_to_ptr.vmem [resolvable:$true] %s209_s6 }
  0x31   : > { %s2925_s15 = scalar_lea.sflag [#allocation3], %s198_s29  ;;  %s2575_s23 = scalar_lea.hbm %s2917_s14, 1024 }
  0x32   : > { %p2576_p13 = scmp.ne.s32.totalorder %s2917_s14, %s2575_s23  ;;  %p2577_p0 = pneg %p2919_p11 }
  0x33   : > { %s2580_s11 = scalar_lea.hbm %s4196_s0, 2048  ;;  %p2581_p7 = scmp.lt.u32.totalorder %s2917_s14, %s4196_s0 }
  0x34   : > { %p2578_p3 = pnand %p2577_p0, %p2576_p13  ;;  %p2582_p9 = scmp.lt.u32.totalorder %s2580_s11, %s2575_s23 }
  0x35   : > { %p2584_p2 = scmp.lt.u32.totalorder %s2575_s23, %s2917_s14 }
  0x36   : > { %p2579_p5 = pneg %p2578_p3  ;;  %p2583_p1 = por %p2582_p9, %p2581_p7 }
  0x38   : > { %p2585_p4 = por %p2584_p2, %p2583_p1 }
  0x3a   : > { %p2586_p6 = pnand %p2585_p4, %p2579_p5 }
  0x3c   : > { %2589 = shalt.err (!%p2586_p6)
}
  0x3d   : > { %s2590_s29 = scalar_lea.vmem %s2923_s6, 1024  ;;  %s2680_s28 = smov [#allocation2]  }
  0x3e   : > { %p2591_p8 = scmp.ne.s32.totalorder %s2923_s6, %s2590_s29  ;;  %s2595_s27 = sshll.u32 %s2680_s28, 4  ;;  %s2596_s27 = int_to_ptr.vmem [resolvable:$false] %s2595_s27 }
  0x3f   : > { %s2597_s10 = scalar_lea.vmem %s2596_s27, 2048  ;;  %p2598_p3 = scmp.lt.s32.totalorder %s2923_s6, %s2596_s27 }
  0x40   : > { %p2593_p10 = pnand %p2591_p8, %p2577_p0  ;;  %p2599_p7 = scmp.lt.s32.totalorder %s2597_s10, %s2590_s29 }
  0x42   : > { %p2594_p13 = pneg %p2593_p10  ;;  %p2600_p9 = por %p2599_p7, %p2598_p3 }
  0x44   : > { %p2601_p1 = pnand %p2600_p9, %p2594_p13 }
  0x46   : > { %2604 = shalt.err (!%p2601_p1)
}
  0x47   : > { %2340 = dma.hbm_to_vmem [thread:$0]  (!%p2919_p11), %s2917_s14, 1024, %s2923_s6, %s2925_s15, %s2678_s16, %s2678_s16, %s2679_s17  }
  0x48   : > { %p4282_p0 = scmp.ne.s32.totalorder %s4277_s26, 0 }
  0x4a   : > { %221 = sbr.rel (%p4282_p0) target bundleno = 1587 (0x633), region = 40 }
  0x51   : > { %s2959_s23 = sand.u32 1, %s2667_s19   ;;  %p4283_p5 = scmp.ne.s32.totalorder %s4275_s24, 0 }
  0x52   : > { %s2271_s11 = sshll.u32 %s2959_s23, 6  ;;  %s224_s12 = scalar_lea.sflag [#allocation3], %s2959_s23 }
  0x53   : > { %s227_s7 = scalar_lea.vmem [#allocation2], %s2271_s11 }
  0x54   : > { %2650 = dma.done.wait (%p4283_p5), %s224_s12, 1024  }
  0x55   : > { %2652 = vsyncadd (%p4283_p5), %s224_s12, 4294966272  ;;  %p4284_p11 = scmp.eq.s32.totalorder %s2835_s22, 0 }
  0x57   : > { %2654 = dma.done.wait (%p4284_p11), [#allocation6], 1792   ;;  %p4285_p2 = pmov %p4284_p11 }
  0x58   : > { %v2973_v0 = vld [vmem:[%s227_s7 + $0x20] sm:$0xff]  ;;  %v2975_v1 = vld [vmem:[%s227_s7 + $0x28] sm:$0xff]  ;;  %v2983_v5 = vld [vmem:[%s227_s7 + $0x30] sm:$0xff]  ;;  %v2681_v19 = vmov 0.0|0.0   ;;  %vm2682_vm0 = vmmov 0   ;;  %v2683_v23 = vmov 0.0   ;;  %v299_v24 = vlaneseq }
  0x59   : > { %2656 = vsyncadd (%p4285_p2), [#allocation6], 4294965504  ;;  %v2977_v2 = vld [vmem:[%s227_s7] sm:$0xff]  ;;  %v272_v3 = vadd.f32 %v2975_v1, %v2973_v0  ;;  %v2981_v4 = vld [vmem:[%s227_s7 + $0x8] sm:$0xff]  ;;  %v289_v15 = vmax.f32 %v2973_v0, %v2975_v1  ;;  %2311 = vmatprep.subr.bf16.mxu0 %v2681_v19  ;;  %2303 = vmatprep.mubr.msk.f32.mxu0 %vm2682_vm0, %v2683_v23  ;;  %vm310_vm1 = vcmask 130112   ;;  %vm317_vm2 = vcmask 195712  }
  0x5a   : > { %v2985_v6 = vld [vmem:[%s227_s7 + $0x38] sm:$0xff]  ;;  %v266_v7 = vadd.f32 %v2981_v4, %v2977_v2  ;;  %v2989_v8 = vld [vmem:[%s227_s7 + $0x10] sm:$0xff]  ;;  %v283_v13 = vmax.f32 %v2977_v2, %v2981_v4  ;;  %v353_v16 = vld [vmem:[%s4197_s1] sm:$0xff]  ;;  %2306 = vmatprep.subr.mxu1 %v2683_v23  ;;  %2308 = vmatprep.mubr.msk.f32.mxu1 %vm2682_vm0, %v2683_v23  ;;  %v3017_v25 = vand.u32 127, %v299_v24  ;;  %v3020_v28 = vshrl.u32 %v299_v24, 7  ;;  %s3078_s12 = scalar_lea.vmem [#allocation7], %s2271_s11 }
  0x5b   : > { %v2991_v9 = vld [vmem:[%s227_s7 + $0x18] sm:$0xff]  ;;  %273 = vadd.xlane.f32.xlu1 %v272_v3  ;;  %v275_v10 = vadd.f32 %v2985_v6, %v2983_v5  ;;  %v292_v14 = vmax.f32 %v2983_v5, %v2985_v6  ;;  %v354_v17 = vld [vmem:[%s4197_s1 + $0x8] sm:$0xff]  ;;  %v355_v20 = vld [vmem:[%s4197_s1 + $0x10] sm:$0xff]  ;;  %vm324_vm3 = vcmask 261312   ;;  %vm351_vm4 = vcmask 1040384   ;;  %s2725_s11 = smov 50  }
  0x5c   : > { %267 = vadd.xlane.f32.xlu0 %v266_v7  ;;  %v269_v11 = vadd.f32 %v2991_v9, %v2989_v8  ;;  %v286_v12 = vmax.f32 %v2989_v8, %v2991_v9  ;;  %v2312_v18 = vpack.c.bf16 %v354_v17, %v353_v16  ;;  %v356_v21 = vld [vmem:[%s4197_s1 + $0x18] sm:$0xff]  ;;  %v305_v27 = vadd.s32 4294967288, %v3017_v25  ;;  %v432_v61 = vld [vmem:[%s4198_s2] sm:$0x3]  ;;  %s2726_s7 = smov 51   ;;  %s2727_s24 = smov 49  }
  0x5d   : > { %v2315_v22 = vpack.c.bf16 %v356_v21, %v355_v20  ;;  %v312_v30 = vadd.s32 4294967280, %v3017_v25  ;;  %v303_v33 = vsub.s32 %v3017_v25, %v3020_v28  ;;  %v319_v35 = vadd.s32 4294967272, %v3017_v25  ;;  %s2728_s26 = smov 48   ;;  %s2730_s16 = smov 47  }
  0x5e   : > { %2313 = vmatpush3.bf16.msra.mxu0 %v2312_v18  ;;  %v308_v32 = vsub.s32 %v305_v27, %v3020_v28  ;;  %vm357_vm5 = vcmask 261120   ;;  %vm437_vm6 = vcmask 1041408   ;;  %vm433_vm7 = vcmask 15360   ;;  %s2732_s17 = smov 46   ;;  %s2734_s14 = smov 45  }
  0x5f   : > { %276 = vadd.xlane.f32.xlu1 %v275_v10  ;;  %2314 = vmatprep.subr.bf16.mxu0 %v2681_v19  ;;  %v315_v38 = vsub.s32 %v312_v30, %v3020_v28  ;;  %v322_v43 = vsub.s32 %v319_v35, %v3020_v28  ;;  %v2684_v7 = vmov 24   ;;  %v3039_v10 = vld [vmem:[%s4199_s3] sm:$0x3]  ;;  %v3043_v18 = vsub.s32 0, %v3020_v28  ;;  %s4206_s6 = smov 126   ;;  %s2736_s15 = smov 35  }
  0x60   : > { %270 = vadd.xlane.f32.xlu0 %v269_v11  ;;  %2307 = vmatpush3.msk.msra.mxu1 %vm437_vm6, %v432_v61  ;;  %v2685_v21 = vmov 0   ;;  %v2688_v24 = vmov 3   ;;  %v2690_v27 = vmov 5   ;;  %v2692_v30 = vmov 6   ;;  %s4205_s13 = smov 111   ;;  %s4213_s29 = smov 34  }
  0x61   : > { %2510 = vset.pattern.permute.xlu1 %v2684_v7  ;;  %2486 = vset.pattern.permute.xlu0 %v2685_v21  ;;  %v2697_v35 = vmov 9   ;;  %v2722_v21 = vmov 37   ;;  %s2740_s28 = smov 127   ;;  %s4207_s27 = smov 33   ;;  %vm685_vm8 = vcmp.lt.s32.totalorder %v3017_v25, 50  ;;  %vm655_vm9 = vcmp.lt.s32.totalorder %v3017_v25, 51 }
  0x62   : > { %2316 = vmatpush3.bf16.msra.mxu0 %v2315_v22  ;;  %v2686_v22 = vmov 1   ;;  %s4208_s10 = smov 32   ;;  %vm715_vm10 = vcmp.lt.s32.totalorder %v3017_v25, 49  ;;  %vm745_vm11 = vcmp.lt.s32.totalorder %v3017_v25, 48  ;;  %vm775_vm12 = vcmp.lt.s32.totalorder %v3017_v25, 47 }
  0x63   : > { %287 = vmax.xlane.f32.xlu1 %v286_v12  ;;  %vm805_vm13 = vcmp.lt.s32.totalorder %v3017_v25, 46  ;;  %vm835_vm14 = vcmp.lt.s32.totalorder %v3017_v25, 45  ;;  %vm865_vm15 = vcmp.lt.s32.totalorder %v3017_v25, 35  ;;  %vm895_vm0 = vcmp.lt.s32.totalorder %v3017_v25, 34 }
  0x64   : > { %284 = vmax.xlane.f32.xlu0 %v283_v13  ;;  %vm1075_vm6 = vcmp.lt.s32.totalorder %v3017_v25, 19 }
  0x67   : > { %293 = vmax.xlane.f32.xlu1 %v292_v14 }
  0x68   : > { %290 = vmax.xlane.f32.xlu0 %v289_v15 }
  0x78   : > { %1387 = vperm.xlu1 %2510, %v3039_v10  }
  0xe8   : > { %v274_v26 = vpop.xlane.xlu1 %273 }
  0xe9   : > { %v268_v29 = vpop.xlane.xlu0 %267  ;;  %v281_v39 = vmul.f32 0.00390625, %v274_v26  ;;  %v2689_v26 = vmov 4  }
  0xea   : > { %v279_v34 = vmul.f32 0.00390625, %v268_v29  ;;  %v2691_v29 = vmov 25  }
  0xeb   : > { %v316_v49 = vrot.slane %v281_v39, %v315_v38  ;;  %2511 = vset.pattern.permute.xlu1 %v2691_v29  ;;  %v2701_v39 = vmov 13  }
  0xec   : > { %v277_v31 = vpop.xlane.xlu1 %276  ;;  %v304_v42 = vrot.slane %v279_v34, %v303_v33  ;;  %v2696_v34 = vmov 8  }
  0xed   : > { %v271_v36 = vpop.xlane.xlu0 %270  ;;  %v282_v44 = vmul.f32 0.00390625, %v277_v31  ;;  %v2693_v31 = vmov 32  }
  0xee   : > { %v280_v37 = vmul.f32 0.00390625, %v271_v36  ;;  %v2698_v36 = vmov 10  }
  0xef   : > { %v323_v51 = vrot.slane %v282_v44, %v322_v43  ;;  %v2706_v44 = vmov 18  }
  0xf0   : > { %v309_v40 = vrot.slane %v280_v37, %v308_v32  ;;  %v288_v41 = vpop.xlane.xlu1 %287  ;;  %v2699_v37 = vmov 11  }
  0xf1   : > { %v285_v45 = vpop.xlane.xlu0 %284  ;;  %v338_v47 = vrot.slane %v288_v41, %v308_v32  ;;  %v2694_v32 = vmov 7   ;;  %v2703_v41 = vmov 15  }
  0xf2   : > { %v311_v46 = vsel %vm310_vm1, %v309_v40, %v304_v42  ;;  %v334_v48 = vrot.slane %v285_v45, %v303_v33  ;;  %v2695_v33 = vmov 33   ;;  %v2702_v40 = vmov 14  }
  0xf3   : > { %v318_v55 = vsel %vm317_vm2, %v316_v49, %v311_v46  ;;  %v2704_v42 = vmov 16   ;;  %v2707_v45 = vmov 19  }
  0xf4   : > { %v294_v50 = vpop.xlane.xlu1 %293  ;;  %v339_v56 = vsel %vm310_vm1, %v338_v47, %v334_v48  ;;  %v325_v58 = vsel %vm324_vm3, %v323_v51, %v318_v55  ;;  %v2708_v47 = vmov 20   ;;  %vm925_vm1 = vcmp.lt.s32.totalorder %v3017_v25, 33 }
  0xf5   : > { %v291_v52 = vpop.xlane.xlu0 %290  ;;  %v348_v53 = vrot.slane %v294_v50, %v322_v43  ;;  %v2705_v43 = vmov 17  }
  0xf6   : > { %v343_v54 = vrot.slane %v291_v52, %v315_v38  ;;  %v2700_v38 = vmov 12  }
  0xf8   : > { %v344_v57 = vsel %vm317_vm2, %v343_v54, %v339_v56  ;;  %v3068_v46 = vpop.permute.xlu1 %1387  ;;  %vm955_vm2 = vcmp.lt.s32.totalorder %v3017_v25, 32 }
  0xf9   : > { %v349_v59 = vsel %vm324_vm3, %v348_v53, %v344_v57  ;;  %4286 = vst [vmem:[#allocation11_spill] sm:$0xff] %v3068_v46  ;;  %vm985_vm3 = vcmp.lt.s32.totalorder %v3017_v25, 31 }
  0xfa   : > { %v352_v60 = vsel %vm351_vm4, %v325_v58, %v349_v59  ;;  %v2710_v59 = vmov 22  }
  0xfb   : > { %2304 = vmatmul.mubr.msk.f32.vlgmr.msra.gmra.mrb[0].mxu0 %vm357_vm5, %v352_v60 }
 0x1ce   : > { %v427_v62 = vpop.f32.mrb[0].mxu0 }
 0x1cf   : > { %v431_v63 = vmax.f32 %v427_v62, 0.0  ;;  %v2305_v3 = vpop.f32.mrb[1].mxu0 }
 0x1d1   : > { %2309 = vmatmul.mubr.msk.f32.vlgmr.msra.gmra.mrb[0].mxu1 %vm433_vm7, %v431_v63  ;;  %vm1105_vm7 = vcmp.lt.s32.totalorder %v3017_v25, 18 }
 0x1d2   : > { %623 = vmatprep.mubr.f32.mxu1 %v2683_v23  ;;  %v2687_v23 = vmov 2  }
 0x2a4   : > { %v507_v11 = vpop.f32.mrb[0].mxu1 }
 0x2a5   : > { %v512_v12 = vrot.slane %v507_v11, 1  ;;  %v2310_v13 = vpop.f32.mrb[1].mxu1 }
 0x2a6   : > { %v2715_v13 = vmov 28  }
 0x2a7   : > { %v514_v14 = vadd.f32 %v512_v12, %v507_v11  ;;  %v2711_v11 = vmov 23   ;;  %v2712_v12 = vmov 0.03125  }
 0x2a9   : > { %v2277_v15 = vmul.f32 -1.442695, %v514_v14  ;;  %v2716_v14 = vmov 29  }
 0x2ab   : > { %2535 = vpow2.f32 %v2277_v15  ;;  %v2717_v15 = vmov 30  }
 0x2b5   : > { %v2536_v16 = vpop.eup %2535 }
 0x2b6   : > { %v518_v17 = vadd.f32 1.0, %v2536_v16  ;;  %v2718_v16 = vmov 31  }
 0x2b8   : > { %2537 = vrcp.f32 %v518_v17  ;;  %v2719_v17 = vmov 34  }
 0x2c2   : > { %v2538_v19 = vpop.eup %2537 }
 0x2c3   : > { %v524_v20 = vrot.slane %v2538_v19, %v3043_v18  ;;  %v2720_v19 = vmov 35  }
 0x2c5   : > { %530 = vbcast.lane.b32.xlu1 %v524_v20, 264  ;;  %526 = vbcast.lane.b32.xlu0 %v524_v20, 256 }
 0x2c9   : > { %534 = vbcast.lane.b32.xlu1 %v524_v20, 272  ;;  %674 = vperm.xlu0 %2486, %v3039_v10  }
 0x2cd   : > { %538 = vbcast.lane.b32.xlu1 %v524_v20, 280  ;;  %2487 = vset.pattern.permute.xlu0 %v2686_v22  ;;  %v2721_v20 = vmov 36   ;;  %v2723_v22 = vmov 38  }
 0x2ce   : > { %704 = vperm.xlu0 %2487, %v3039_v10  }
 0x2d1   : > { %1417 = vperm.xlu1 %2511, %v3039_v10  }
 0x2d2   : > { %2488 = vset.pattern.permute.xlu0 %v2687_v23  ;;  %v2724_v23 = vmov 39  }
 0x2d3   : > { %734 = vperm.xlu0 %2488, %v3039_v10  }
 0x2d5   : > { %2518 = vset.pattern.permute.xlu1 %v2693_v31 }
 0x2d6   : > { %1627 = vperm.xlu1 %2518, %v3039_v10  }
 0x2d7   : > { %2489 = vset.pattern.permute.xlu0 %v2688_v24 }
 0x2d8   : > { %764 = vperm.xlu0 %2489, %v3039_v10  }
 0x2da   : > { %2519 = vset.pattern.permute.xlu1 %v2695_v33 }
 0x2db   : > { %1657 = vperm.xlu1 %2519, %v3039_v10  }
 0x2dc   : > { %2490 = vset.pattern.permute.xlu0 %v2689_v26 }
 0x2dd   : > { %794 = vperm.xlu0 %2490, %v3039_v10  }
 0x2e1   : > { %2491 = vset.pattern.permute.xlu0 %v2690_v27 }
 0x2e2   : > { %824 = vperm.xlu0 %2491, %v3039_v10  }
 0x2e6   : > { %2492 = vset.pattern.permute.xlu0 %v2692_v30 }
 0x2e7   : > { %854 = vperm.xlu0 %2492, %v3039_v10  }
 0x2eb   : > { %2493 = vset.pattern.permute.xlu0 %v2694_v32 }
 0x2ec   : > { %884 = vperm.xlu0 %2493, %v3039_v10  }
 0x2f0   : > { %2494 = vset.pattern.permute.xlu0 %v2696_v34 }
 0x2f1   : > { %914 = vperm.xlu0 %2494, %v3039_v10  }
 0x2f5   : > { %2495 = vset.pattern.permute.xlu0 %v2697_v35 }
 0x2f6   : > { %944 = vperm.xlu0 %2495, %v3039_v10  }
 0x2fa   : > { %2496 = vset.pattern.permute.xlu0 %v2698_v36 }
 0x2fb   : > { %974 = vperm.xlu0 %2496, %v3039_v10  }
 0x2ff   : > { %2497 = vset.pattern.permute.xlu0 %v2699_v37 }
 0x300   : > { %1004 = vperm.xlu0 %2497, %v3039_v10  }
 0x304   : > { %2498 = vset.pattern.permute.xlu0 %v2700_v38 }
 0x305   : > { %1034 = vperm.xlu0 %2498, %v3039_v10  }
 0x309   : > { %2499 = vset.pattern.permute.xlu0 %v2701_v39 }
 0x30a   : > { %1064 = vperm.xlu0 %2499, %v3039_v10  }
 0x30e   : > { %2500 = vset.pattern.permute.xlu0 %v2702_v40 }
 0x30f   : > { %1094 = vperm.xlu0 %2500, %v3039_v10  }
 0x313   : > { %2501 = vset.pattern.permute.xlu0 %v2703_v41 }
 0x314   : > { %1124 = vperm.xlu0 %2501, %v3039_v10  }
 0x318   : > { %2502 = vset.pattern.permute.xlu0 %v2704_v42  ;;  %v2729_v42 = vmov 40  }
 0x319   : > { %1154 = vperm.xlu0 %2502, %v3039_v10  }
 0x31d   : > { %2503 = vset.pattern.permute.xlu0 %v2705_v43  ;;  %v2731_v43 = vmov 41  }
 0x31e   : > { %1184 = vperm.xlu0 %2503, %v3039_v10  }
 0x322   : > { %2504 = vset.pattern.permute.xlu0 %v2706_v44  ;;  %v2733_v44 = vmov 42  }
 0x323   : > { %1214 = vperm.xlu0 %2504, %v3039_v10  }
 0x327   : > { %2505 = vset.pattern.permute.xlu0 %v2707_v45  ;;  %v2737_v45 = vmov 43  }
 0x328   : > { %1244 = vperm.xlu0 %2505, %v3039_v10  }
 0x32c   : > { %2506 = vset.pattern.permute.xlu0 %v2708_v47  ;;  %v2743_v47 = vmov 44  }
 0x32d   : > { %1274 = vperm.xlu0 %2506, %v3039_v10  }
 0x337   : > { %v531_v48 = vpop.permute.xlu1 %530  ;;  %v527_v49 = vpop.permute.xlu0 %526 }
 0x338   : > { %v542_v50 = vmul.f32 %v531_v48, %v2989_v8  ;;  %v543_v51 = vmul.f32 %v531_v48, %v2991_v9  ;;  %v540_v52 = vmul.f32 %v527_v49, %v2977_v2  ;;  %v541_v53 = vmul.f32 %v527_v49, %v2981_v4 }
 0x339   : > { %v2709_v9 = vmov 21   ;;  %v2746_v48 = vmov 45   ;;  %v2748_v49 = vmov 46  }
 0x33a   : > { %550 = vst [vmem:[%s3078_s12 + $0x10] sm:$0xff] %v542_v50  ;;  %551 = vst [vmem:[%s3078_s12 + $0x18] sm:$0xff] %v543_v51  ;;  %v2317_v8 = vpack.c.bf16 %v543_v51, %v541_v53  ;;  %v2319_v54 = vpack.c.bf16 %v542_v50, %v540_v52  ;;  %2507 = vset.pattern.permute.xlu0 %v2709_v9 }
 0x33b   : > { %548 = vst [vmem:[%s3078_s12] sm:$0xff] %v540_v52  ;;  %549 = vst [vmem:[%s3078_s12 + $0x8] sm:$0xff] %v541_v53  ;;  %v535_v2 = vpop.permute.xlu1 %534  ;;  %1304 = vperm.xlu0 %2507, %v3039_v10  }
 0x33c   : > { %v544_v4 = vmul.f32 %v535_v2, %v2973_v0  ;;  %v545_v55 = vmul.f32 %v535_v2, %v2975_v1  ;;  %2318 = vmatprep.subr.bf16.mxu1 %v2317_v8 }
 0x33d   : > { %2320 = vmatpush1.bf16.msra.mxu1 %v2319_v54 }
 0x33e   : > { %552 = vst [vmem:[%s3078_s12 + $0x20] sm:$0xff] %v544_v4  ;;  %553 = vst [vmem:[%s3078_s12 + $0x28] sm:$0xff] %v545_v55  ;;  %v630_v56 = vmax.f32 %v540_v52, %v544_v4  ;;  %v639_v57 = vmax.f32 %v541_v53, %v545_v55 }
 0x33f   : > { %v539_v58 = vpop.permute.xlu1 %538  ;;  %2508 = vset.pattern.permute.xlu0 %v2710_v59 }
 0x340   : > { %v546_v60 = vmul.f32 %v539_v58, %v2983_v5  ;;  %v547_v61 = vmul.f32 %v539_v58, %v2985_v6  ;;  %1334 = vperm.xlu0 %2508, %v3039_v10   ;;  %v2713_v5 = vmov 26   ;;  %v2714_v6 = vmov 27  }
 0x342   : > { %554 = vst [vmem:[%s3078_s12 + $0x30] sm:$0xff] %v546_v60  ;;  %555 = vst [vmem:[%s3078_s12 + $0x38] sm:$0xff] %v547_v61  ;;  %v631_v0 = vmax.f32 %v542_v50, %v546_v60  ;;  %v640_v62 = vmax.f32 %v543_v51, %v547_v61  ;;  %v2321_v1 = vpack.c.bf16 %v547_v61, %v545_v55  ;;  %v2750_v50 = vmov 47  }
 0x343   : > { %v2323_v63 = vpack.c.bf16 %v546_v60, %v544_v4  ;;  %v2752_v51 = vmov 48  }
 0x344   : > { %v632_v3 = vmax.f32 %v630_v56, %v631_v0  ;;  %v641_v7 = vmax.f32 %v639_v57, %v640_v62  ;;  %2322 = vmatprep.subr.bf16.mxu1 %v2321_v1  ;;  %2509 = vset.pattern.permute.xlu0 %v2711_v11 }
 0x345   : > { %2324 = vmatpush1.bf16.msra.mxu1 %v2323_v63  ;;  %1364 = vperm.xlu0 %2509, %v3039_v10  }
 0x346   : > { %v633_v24 = vrot.slane %v632_v3, 4  ;;  %v642_v26 = vrot.slane %v641_v7, 4 }
 0x348   : > { %2278 = vmatmul.mubr.msk.f32.vlgmr.msra.gmra.mrb[2].mxu1 %vm357_vm5, %v2712_v12  ;;  %v634_v27 = vmax.f32 %v632_v3, %v633_v24  ;;  %v643_v29 = vmax.f32 %v641_v7, %v642_v26  ;;  %v3163_v52 = vpop.permute.xlu0 %674  ;;  %vm1045_vm5 = vcmp.lt.s32.totalorder %v3017_v25, 29 }
 0x349   : > { %2512 = vset.pattern.permute.xlu0 %v2713_v5 }
 0x34a   : > { %1447 = vperm.xlu0 %2512, %v3039_v10   ;;  %v635_v30 = vrot.slane %v634_v27, 2  ;;  %v644_v31 = vrot.slane %v643_v29, 2 }
 0x34c   : > { %v636_v32 = vmax.f32 %v634_v27, %v635_v30  ;;  %v645_v33 = vmax.f32 %v643_v29, %v644_v31 }
 0x34d   : > { %v3171_v53 = vpop.permute.xlu0 %704 }
 0x34e   : > { %2513 = vset.pattern.permute.xlu0 %v2714_v6  ;;  %v637_v34 = vrot.slane %v636_v32, 1  ;;  %v646_v35 = vrot.slane %v645_v33, 1 }
 0x34f   : > { %1477 = vperm.xlu0 %2513, %v3039_v10  }
 0x350   : > { %v638_v36 = vmax.f32 %v636_v32, %v637_v34  ;;  %v647_v37 = vmax.f32 %v645_v33, %v646_v35  ;;  %v3195_v2 = vpop.permute.xlu1 %1417 }
 0x351   : > { %4288 = vst [vmem:[#allocation13_spill] sm:$0xff] %v3195_v2 }
 0x353   : > { %2514 = vset.pattern.permute.xlu0 %v2715_v13 }
 0x354   : > { %1507 = vperm.xlu0 %2514, %v3039_v10  }
 0x355   : > { %v3201_v55 = vpop.permute.xlu1 %1627 }
 0x356   : > { %4289 = vst [vmem:[#allocation14_spill] sm:$0xff] %v3201_v55 }
 0x358   : > { %2515 = vset.pattern.permute.xlu0 %v2716_v14 }
 0x359   : > { %1537 = vperm.xlu0 %2515, %v3039_v10  }
 0x35a   : > { %v3209_v57 = vpop.permute.xlu1 %1657 }
 0x35b   : > { %4290 = vst [vmem:[#allocation15_spill] sm:$0xff] %v3209_v57 }
 0x35d   : > { %2516 = vset.pattern.permute.xlu0 %v2717_v15 }
 0x35e   : > { %1567 = vperm.xlu0 %2516, %v3039_v10  }
 0x362   : > { %2517 = vset.pattern.permute.xlu0 %v2718_v16 }
 0x363   : > { %1597 = vperm.xlu0 %2517, %v3039_v10  }
 0x367   : > { %2520 = vset.pattern.permute.xlu0 %v2719_v17 }
 0x368   : > { %1687 = vperm.xlu0 %2520, %v3039_v10  }
 0x36c   : > { %2521 = vset.pattern.permute.xlu0 %v2720_v19 }
 0x36d   : > { %1717 = vperm.xlu0 %2521, %v3039_v10  }
 0x371   : > { %2522 = vset.pattern.permute.xlu0 %v2721_v20 }
 0x372   : > { %1747 = vperm.xlu0 %2522, %v3039_v10  }
 0x376   : > { %2523 = vset.pattern.permute.xlu0 %v2722_v21 }
 0x377   : > { %1777 = vperm.xlu0 %2523, %v3039_v10  }
 0x37b   : > { %2524 = vset.pattern.permute.xlu0 %v2723_v22 }
 0x37c   : > { %1807 = vperm.xlu0 %2524, %v3039_v10  }
 0x380   : > { %2525 = vset.pattern.permute.xlu0 %v2724_v23 }
 0x41b   : > { %v625_v38 = vpop.f32.mrb[2].mxu1 }
 0x41c   : > { %v3108_v39 = vsel %vm351_vm4, %v625_v38, %v638_v36  ;;  %v627_v40 = vpop.f32.mrb[3].mxu1 }
 0x41d   : > { %4287 = vst [vmem:[#allocation12_spill] sm:$0xff] %v3108_v39  ;;  %v3111_v41 = vsel %vm351_vm4, %v627_v40, %v647_v37  ;;  %681 = vrot.lane.b32.xlu1 %v3108_v39, %s2725_s11  ;;  %651 = vrot.lane.b32.xlu0 %v3108_v39, %s2726_s7  ;;  %vm1015_vm4 = vcmp.lt.s32.totalorder %v3017_v25, 30 }
 0x421   : > { %711 = vrot.lane.b32.xlu1 %v3108_v39, %s2727_s24  ;;  %1837 = vperm.xlu0 %2525, %v3039_v10  }
 0x425   : > { %741 = vrot.lane.b32.xlu1 %v3108_v39, %s2728_s26  ;;  %2526 = vset.pattern.permute.xlu0 %v2729_v42 }
 0x426   : > { %1867 = vperm.xlu0 %2526, %v3039_v10  }
 0x429   : > { %771 = vrot.lane.b32.xlu1 %v3108_v39, %s2730_s16 }
 0x42a   : > { %2527 = vset.pattern.permute.xlu0 %v2731_v43 }
 0x42b   : > { %1897 = vperm.xlu0 %2527, %v3039_v10  }
 0x42d   : > { %801 = vrot.lane.b32.xlu1 %v3108_v39, %s2732_s17 }
 0x42f   : > { %2528 = vset.pattern.permute.xlu0 %v2733_v44 }
 0x430   : > { %1927 = vperm.xlu0 %2528, %v3039_v10  }
 0x431   : > { %831 = vrot.lane.b32.xlu1 %v3108_v39, %s2734_s14 }
 0x434   : > { %1424 = vrot.lane.b32.xlu0 %v3108_v39, %s4206_s6  ;;  %s4209_s6 = smov 30  }
 0x435   : > { %861 = vrot.lane.b32.xlu1 %v3108_v39, %s2736_s15  ;;  %2529 = vset.pattern.permute.xlu0 %v2737_v45 }
 0x438   : > { %1604 = vrot.lane.b32.xlu0 %v3108_v39, %s4205_s13  ;;  %s4210_s13 = smov 31  }
 0x439   : > { %891 = vrot.lane.b32.xlu1 %v3108_v39, %s4213_s29  ;;  %s4219_s29 = smov 15  }
 0x43c   : > { %1396 = vrot.lane.b32.xlu0 %v3111_v41, %s2740_s28 }
 0x43d   : > { %921 = vrot.lane.b32.xlu1 %v3108_v39, %s4207_s27  ;;  %s4211_s27 = smov 29  }
 0x440   : > { %1957 = vperm.xlu0 %2529, %v3039_v10  }
 0x441   : > { %951 = vrot.lane.b32.xlu1 %v3108_v39, %s4208_s10  ;;  %s4212_s10 = smov 19  }
 0x444   : > { %2530 = vset.pattern.permute.xlu0 %v2743_v47 }
 0x445   : > { %981 = vrot.lane.b32.xlu1 %v3108_v39, %s4210_s13  ;;  %1987 = vperm.xlu0 %2530, %v3039_v10   ;;  %s4215_s13 = smov 17  }
 0x449   : > { %1011 = vrot.lane.b32.xlu1 %v3108_v39, %s4209_s6  ;;  %2531 = vset.pattern.permute.xlu0 %v2746_v48  ;;  %s4214_s6 = smov 18  }
 0x44a   : > { %2017 = vperm.xlu0 %2531, %v3039_v10  }
 0x44d   : > { %1041 = vrot.lane.b32.xlu1 %v3108_v39, %s4211_s27  ;;  %s4216_s27 = smov 16  }
 0x44e   : > { %2532 = vset.pattern.permute.xlu0 %v2748_v49 }
 0x44f   : > { %2047 = vperm.xlu0 %2532, %v3039_v10  }
 0x451   : > { %1071 = vrot.lane.b32.xlu1 %v3108_v39, %s4212_s10  ;;  %s4218_s10 = smov 77  }
 0x453   : > { %2533 = vset.pattern.permute.xlu0 %v2750_v50 }
 0x454   : > { %2077 = vperm.xlu0 %2533, %v3039_v10  }
 0x455   : > { %1101 = vrot.lane.b32.xlu1 %v3108_v39, %s4214_s6  ;;  %s2757_s6 = smov 14  }
 0x458   : > { %2534 = vset.pattern.permute.xlu0 %v2752_v51 }
 0x459   : > { %1131 = vrot.lane.b32.xlu1 %v3108_v39, %s4215_s13  ;;  %2107 = vperm.xlu0 %2534, %v3039_v10   ;;  %v3175_v10 = vpop.permute.xlu0 %734  ;;  %s4220_s13 = smov 13  }
 0x45d   : > { %1161 = vrot.lane.b32.xlu1 %v3108_v39, %s4216_s27  ;;  %2084 = vrot.lane.b32.xlu0 %v3108_v39, %s4218_s10  ;;  %s2759_s27 = smov 3   ;;  %v3181_v8 = vpop.permute.xlu0 %764  ;;  %s4221_s10 = smov 2  }
 0x461   : > { %1191 = vrot.lane.b32.xlu1 %v3108_v39, %s4219_s29  ;;  %v3185_v54 = vpop.permute.xlu0 %794  ;;  %s4222_s29 = smov 1  }
 0x465   : > { %1221 = vrot.lane.b32.xlu1 %v3108_v39, %s2757_s6  ;;  %v3191_v9 = vpop.permute.xlu0 %824 }
 0x469   : > { %1251 = vrot.lane.b32.xlu1 %v3108_v39, %s4220_s13  ;;  %s4223_s13 = smov 125   ;;  %v3197_v4 = vpop.permute.xlu0 %854 }
 0x46d   : > { %1281 = vrot.lane.b32.xlu1 %v3108_v39, %s2759_s27  ;;  %v3205_v56 = vpop.permute.xlu0 %884 }
 0x471   : > { %1311 = vrot.lane.b32.xlu1 %v3108_v39, %s4221_s10  ;;  %s4224_s10 = smov 115   ;;  %v3211_v58 = vpop.permute.xlu0 %914 }
 0x475   : > { %1341 = vrot.lane.b32.xlu1 %v3108_v39, %s4222_s29  ;;  %s4225_s29 = smov 114   ;;  %v3219_v60 = vpop.permute.xlu0 %944 }
 0x479   : > { %1394 = vrot.lane.b32.xlu1 %v3108_v39, %s2740_s28  ;;  %s4226_s28 = smov 113   ;;  %v3227_v62 = vpop.permute.xlu0 %974 }
 0x47d   : > { %1454 = vrot.lane.b32.xlu1 %v3108_v39, %s4223_s13  ;;  %s4227_s13 = smov 112   ;;  %v3235_v63 = vpop.permute.xlu0 %1004 }
 0x481   : > { %1484 = vrot.lane.b32.xlu1 %v3108_v39, %s4224_s10  ;;  %s4228_s10 = smov 110   ;;  %v3243_v11 = vpop.permute.xlu0 %1034 }
 0x485   : > { %1514 = vrot.lane.b32.xlu1 %v3108_v39, %s4225_s29  ;;  %s4229_s29 = smov 109   ;;  %v3251_v5 = vpop.permute.xlu0 %1064 }
 0x489   : > { %1544 = vrot.lane.b32.xlu1 %v3108_v39, %s4226_s28  ;;  %s4230_s28 = smov 99   ;;  %v3259_v14 = vpop.permute.xlu0 %1094 }
 0x48d   : > { %1574 = vrot.lane.b32.xlu1 %v3108_v39, %s4227_s13  ;;  %s4231_s13 = smov 98   ;;  %v3267_v16 = vpop.permute.xlu0 %1124 }
 0x48f   : > { %v3215_v59 = vpop.permute.xlu1 %681 }
 0x491   : > { %1634 = vrot.lane.b32.xlu1 %v3108_v39, %s4228_s10  ;;  %s4232_s10 = smov 97   ;;  %v3275_v20 = vpop.permute.xlu0 %1154 }
 0x493   : > { %v3221_v61 = vpop.permute.xlu1 %711 }
 0x495   : > { %1664 = vrot.lane.b32.xlu1 %v3108_v39, %s4229_s29  ;;  %s2772_s29 = smov 96   ;;  %v3283_v22 = vpop.permute.xlu0 %1184 }
 0x497   : > { %v3225_v0 = vpop.permute.xlu1 %741 }
 0x499   : > { %1694 = vrot.lane.b32.xlu1 %v3108_v39, %s4230_s28  ;;  %s2773_s28 = smov 95   ;;  %v3291_v26 = vpop.permute.xlu0 %1214 }
 0x49a   : > { %4291 = vst [vmem:[#allocation16_spill] sm:$0xff] %v3291_v26 }
 0x49b   : > { %v3231_v1 = vpop.permute.xlu1 %771 }
 0x49d   : > { %1724 = vrot.lane.b32.xlu1 %v3108_v39, %s4231_s13  ;;  %s2774_s13 = smov 94   ;;  %v3299_v29 = vpop.permute.xlu0 %1244 }
 0x49e   : > { %4292 = vst [vmem:[#allocation17_spill] sm:$0xff] %v3299_v29 }
 0x49f   : > { %v3237_v3 = vpop.permute.xlu1 %801 }
 0x4a1   : > { %1754 = vrot.lane.b32.xlu1 %v3108_v39, %s4232_s10  ;;  %s2775_s10 = smov 93   ;;  %v3307_v32 = vpop.permute.xlu0 %1274 }
 0x4a2   : > { %4293 = vst [vmem:[#allocation18_spill] sm:$0xff] %v3307_v32 }
 0x4a3   : > { %v3241_v7 = vpop.permute.xlu1 %831 }
 0x4a5   : > { %1784 = vrot.lane.b32.xlu1 %v3108_v39, %s2772_s29  ;;  %v3315_v34 = vpop.permute.xlu0 %1304 }
 0x4a6   : > { %4297 = vst [vmem:[#allocation20_spill] sm:$0xff] %v3315_v34 }
 0x4a7   : > { %v3247_v12 = vpop.permute.xlu1 %861 }
 0x4a9   : > { %1814 = vrot.lane.b32.xlu1 %v3108_v39, %s2773_s28  ;;  %v3323_v37 = vpop.permute.xlu0 %1334 }
 0x4aa   : > { %4301 = vst [vmem:[#allocation23_spill] sm:$0xff] %v3323_v37 }
 0x4ab   : > { %v3253_v6 = vpop.permute.xlu1 %891 }
 0x4ad   : > { %1844 = vrot.lane.b32.xlu1 %v3108_v39, %s2774_s13  ;;  %v3331_v40 = vpop.permute.xlu0 %1364 }
 0x4ae   : > { %4305 = vst [vmem:[#allocation25_spill] sm:$0xff] %v3331_v40 }
 0x4af   : > { %v3257_v13 = vpop.permute.xlu1 %921 }
 0x4b1   : > { %1874 = vrot.lane.b32.xlu1 %v3108_v39, %s2775_s10  ;;  %v3339_v44 = vpop.permute.xlu0 %1447 }
 0x4b2   : > { %4309 = vst [vmem:[#allocation28_spill] sm:$0xff] %v3339_v44 }
 0x4b3   : > { %v3263_v15 = vpop.permute.xlu1 %951 }
 0x4b5   : > { %653 = vrot.lane.b32.xlu1 %v3111_v41, %s2726_s7  ;;  %s4296_s7 = smov 33   ;;  %v3347_v47 = vpop.permute.xlu0 %1477 }
 0x4b6   : > { %4313 = vst [vmem:[#allocation30_spill] sm:$0xff] %v3347_v47 }
 0x4b7   : > { %v3269_v17 = vpop.permute.xlu1 %981 }
 0x4b9   : > { %683 = vrot.lane.b32.xlu1 %v3111_v41, %s2725_s11  ;;  %s4294_s11 = smov 34   ;;  %v3355_v50 = vpop.permute.xlu0 %1507 }
 0x4ba   : > { %4317 = vst [vmem:[#allocation33_spill] sm:$0xff] %v3355_v50 }
 0x4bb   : > { %v3273_v19 = vpop.permute.xlu1 %1011 }
 0x4bd   : > { %713 = vrot.lane.b32.xlu1 %v3111_v41, %s2727_s24  ;;  %s4299_s24 = smov 32   ;;  %v3363_v57 = vpop.permute.xlu0 %1537 }
 0x4be   : > { %4321 = vst [vmem:[#allocation35_spill] sm:$0xff] %v3363_v57 }
 0x4bf   : > { %v3279_v21 = vpop.permute.xlu1 %1041 }
 0x4c1   : > { %743 = vrot.lane.b32.xlu1 %v3111_v41, %s2728_s26  ;;  %s4302_s26 = smov 31  }
 0x4c3   : > { %v3285_v23 = vpop.permute.xlu1 %1071 }
 0x4c5   : > { %773 = vrot.lane.b32.xlu1 %v3111_v41, %s2730_s16  ;;  %s4304_s16 = smov 30  }
 0x4c7   : > { %v3289_v24 = vpop.permute.xlu1 %1101 }
 0x4c9   : > { %803 = vrot.lane.b32.xlu1 %v3111_v41, %s2732_s17  ;;  %s4307_s17 = smov 29  }
 0x4cb   : > { %v3295_v27 = vpop.permute.xlu1 %1131 }
 0x4cd   : > { %833 = vrot.lane.b32.xlu1 %v3111_v41, %s2734_s14  ;;  %s4310_s14 = smov 19  }
 0x4cf   : > { %v3301_v30 = vpop.permute.xlu1 %1161 }
 0x4d1   : > { %863 = vrot.lane.b32.xlu1 %v3111_v41, %s2736_s15  ;;  %s4312_s15 = smov 18  }
 0x4d3   : > { %v3305_v31 = vpop.permute.xlu1 %1191 }
 0x4d5   : > { %893 = vrot.lane.b32.xlu1 %v3111_v41, %s4294_s11  ;;  %s4315_s11 = smov 17  }
 0x4d7   : > { %v3311_v33 = vpop.permute.xlu1 %1221 }
 0x4d8   : > { %4295 = vst [vmem:[#allocation19_spill] sm:$0xff] %v3311_v33 }
 0x4d9   : > { %923 = vrot.lane.b32.xlu1 %v3111_v41, %s4296_s7  ;;  %s4318_s7 = smov 16  }
 0x4db   : > { %v3317_v35 = vpop.permute.xlu1 %1251 }
 0x4dc   : > { %4298 = vst [vmem:[#allocation21_spill] sm:$0xff] %v3317_v35  ;;  %v779_v35 = vld [vmem:[#allocation5 + $0x4] ss:$8 sm:$0x3] }
 0x4dd   : > { %953 = vrot.lane.b32.xlu1 %v3111_v41, %s4299_s24  ;;  %s4320_s24 = smov 15  }
 0x4df   : > { %v3321_v36 = vpop.permute.xlu1 %1281 }
 0x4e0   : > { %4300 = vst [vmem:[#allocation22_spill] sm:$0xff] %v3321_v36 }
 0x4e1   : > { %983 = vrot.lane.b32.xlu1 %v3111_v41, %s4302_s26  ;;  %s4325_s26 = smov 13  }
 0x4e3   : > { %v3327_v38 = vpop.permute.xlu1 %1311 }
 0x4e4   : > { %4303 = vst [vmem:[#allocation24_spill] sm:$0xff] %v3327_v38 }
 0x4e5   : > { %1013 = vrot.lane.b32.xlu1 %v3111_v41, %s4304_s16  ;;  %s4329_s16 = smov 2  }
 0x4e7   : > { %v3333_v42 = vpop.permute.xlu1 %1341 }
 0x4e8   : > { %4306 = vst [vmem:[#allocation26_spill] sm:$0xff] %v3333_v42 }
 0x4e9   : > { %1043 = vrot.lane.b32.xlu1 %v3111_v41, %s4307_s17  ;;  %s2776_s17 = smov 83  }
 0x4eb   : > { %v3337_v43 = vpop.permute.xlu1 %1394 }
 0x4ec   : > { %4308 = vst [vmem:[#allocation27_spill] sm:$0xff] %v3337_v43  ;;  %v749_v43 = vld [vmem:[#allocation5 + $0x3] ss:$8 sm:$0x3] }
 0x4ed   : > { %1073 = vrot.lane.b32.xlu1 %v3111_v41, %s4310_s14  ;;  %s2778_s14 = smov 81  }
 0x4ef   : > { %v3343_v45 = vpop.permute.xlu1 %1454 }
 0x4f0   : > { %4311 = vst [vmem:[#allocation29_spill] sm:$0xff] %v3343_v45  ;;  %v719_v45 = vld [vmem:[#allocation5 + $0x2] ss:$8 sm:$0x3] }
 0x4f1   : > { %1103 = vrot.lane.b32.xlu1 %v3111_v41, %s4312_s15  ;;  %s2779_s15 = smov 80  }
 0x4f3   : > { %v3349_v48 = vpop.permute.xlu1 %1484 }
 0x4f4   : > { %4314 = vst [vmem:[#allocation31_spill] sm:$0xff] %v3349_v48 }
 0x4f5   : > { %1133 = vrot.lane.b32.xlu1 %v3111_v41, %s4315_s11  ;;  %s2780_s11 = smov 79  }
 0x4f7   : > { %v3353_v49 = vpop.permute.xlu1 %1514 }
 0x4f8   : > { %4316 = vst [vmem:[#allocation32_spill] sm:$0xff] %v3353_v49  ;;  %v3371_v49 = vpop.permute.xlu0 %1567 }
 0x4f9   : > { %1163 = vrot.lane.b32.xlu1 %v3111_v41, %s4318_s7  ;;  %4324 = vst [vmem:[#allocation38_spill] sm:$0xff] %v3371_v49 }
 0x4fb   : > { %v3359_v51 = vpop.permute.xlu1 %1544 }
 0x4fc   : > { %4319 = vst [vmem:[#allocation34_spill] sm:$0xff] %v3359_v51  ;;  %v3379_v51 = vpop.permute.xlu0 %1597 }
 0x4fd   : > { %1193 = vrot.lane.b32.xlu1 %v3111_v41, %s4320_s24  ;;  %4327 = vst [vmem:[#allocation40_spill] sm:$0xff] %v3379_v51  ;;  %s2781_s24 = smov 78  }
 0x4ff   : > { %v3365_v55 = vpop.permute.xlu1 %1574 }
 0x500   : > { %4322 = vst [vmem:[#allocation36_spill] sm:$0xff] %v3365_v55 }
 0x501   : > { %1223 = vrot.lane.b32.xlu1 %v3111_v41, %s2757_s6  ;;  %s4332_s6 = smov 1  }
 0x503   : > { %v3369_v47 = vpop.permute.xlu1 %1634 }
 0x504   : > { %4323 = vst [vmem:[#allocation37_spill] sm:$0xff] %v3369_v47  ;;  %v3387_v47 = vpop.permute.xlu0 %1687 }
 0x505   : > { %1253 = vrot.lane.b32.xlu1 %v3111_v41, %s4325_s26  ;;  %4331 = vst [vmem:[#allocation43_spill] sm:$0xff] %v3387_v47  ;;  %s4342_s26 = smov 126  }
 0x507   : > { %v3375_v50 = vpop.permute.xlu1 %1664 }
 0x508   : > { %4326 = vst [vmem:[#allocation39_spill] sm:$0xff] %v3375_v50  ;;  %v3395_v50 = vpop.permute.xlu0 %1717 }
 0x509   : > { %1283 = vrot.lane.b32.xlu1 %v3111_v41, %s2759_s27  ;;  %4334 = vst [vmem:[#allocation45_spill] sm:$0xff] %v3395_v50  ;;  %s2777_s27 = smov 82  }
 0x50b   : > { %v3381_v57 = vpop.permute.xlu1 %1694 }
 0x50c   : > { %4328 = vst [vmem:[#allocation41_spill] sm:$0xff] %v3381_v57  ;;  %v3403_v47 = vpop.permute.xlu0 %1747  ;;  %v3422_v57 = vsub.s32 1, %v3020_v28 }
 0x50d   : > { %1313 = vrot.lane.b32.xlu1 %v3111_v41, %s4329_s16  ;;  %4337 = vst [vmem:[#allocation48_spill] sm:$0xff] %v3403_v47  ;;  %s4343_s16 = smov 125  }
 0x50e   : > { %v728_v37 = vrot.slane %v719_v45, %v3422_v57 }
 0x50f   : > { %v3385_v55 = vpop.permute.xlu1 %1724 }
 0x510   : > { %4330 = vst [vmem:[#allocation42_spill] sm:$0xff] %v3385_v55  ;;  %v3411_v50 = vpop.permute.xlu0 %1777 }
 0x511   : > { %1343 = vrot.lane.b32.xlu1 %v3111_v41, %s4332_s6  ;;  %4339 = vst [vmem:[#allocation50_spill] sm:$0xff] %v3411_v50  ;;  %v658_v50 = vld [vmem:[#allocation5] ss:$8 sm:$0x3]  ;;  %s4344_s6 = smov 115  }
 0x512   : > { %v663_v46 = vrot.slane %v658_v50, %v3043_v18 }
 0x513   : > { %v3391_v49 = vpop.permute.xlu1 %1754 }
 0x514   : > { %4333 = vst [vmem:[#allocation44_spill] sm:$0xff] %v3391_v49  ;;  %v3417_v47 = vpop.permute.xlu0 %1807 }
 0x515   : > { %1904 = vrot.lane.b32.xlu1 %v3108_v39, %s2776_s17  ;;  %4341 = vst [vmem:[#allocation52_spill] sm:$0xff] %v3417_v47 }
 0x517   : > { %v3397_v51 = vpop.permute.xlu1 %1784 }
 0x518   : > { %4335 = vst [vmem:[#allocation46_spill] sm:$0xff] %v3397_v51  ;;  %v652_v28 = vpop.permute.xlu0 %651 }
 0x519   : > { %1934 = vrot.lane.b32.xlu1 %v3108_v39, %s2777_s27 }
 0x51b   : > { %v3401_v55 = vpop.permute.xlu1 %1814 }
 0x51c   : > { %4336 = vst [vmem:[#allocation47_spill] sm:$0xff] %v3401_v55 }
 0x51d   : > { %1964 = vrot.lane.b32.xlu1 %v3108_v39, %s2778_s14 }
 0x51f   : > { %v3407_v49 = vpop.permute.xlu1 %1844 }
 0x520   : > { %4338 = vst [vmem:[#allocation49_spill] sm:$0xff] %v3407_v49  ;;  %v689_v49 = vld [vmem:[#allocation5 + $0x1] ss:$8 sm:$0x3] }
 0x521   : > { %1994 = vrot.lane.b32.xlu1 %v3108_v39, %s2779_s15  ;;  %v698_v48 = vrot.slane %v689_v49, %v3422_v57 }
 0x523   : > { %v3413_v51 = vpop.permute.xlu1 %1874 }
 0x524   : > { %4340 = vst [vmem:[#allocation51_spill] sm:$0xff] %v3413_v51  ;;  %v694_v51 = vrot.slane %v689_v49, %v3043_v18  ;;  %v724_v49 = vrot.slane %v719_v45, %v3043_v18 }
 0x525   : > { %2024 = vrot.lane.b32.xlu1 %v3108_v39, %s2780_s11 }
 0x527   : > { %v654_v55 = vpop.permute.xlu1 %653 }
 0x528   : > { %v656_v40 = vsel %vm655_vm9, %v652_v28, %v654_v55  ;;  %v657_v42 = vsel %vm655_vm9, %v654_v55, %v652_v28  ;;  %v758_v55 = vrot.slane %v749_v43, %v3422_v57  ;;  %vm1165_vm9 = vcmp.lt.s32.totalorder %v3017_v25, 16 }
 0x529   : > { %2054 = vrot.lane.b32.xlu1 %v3108_v39, %s2781_s24  ;;  %v667_v39 = vrot.slane %v658_v50, %v3422_v57  ;;  %v754_v50 = vrot.slane %v749_v43, %v3043_v18  ;;  %v670_v28 = vmul.f32 %v663_v46, %v657_v42  ;;  %v784_v46 = vrot.slane %v779_v35, %v3043_v18 }
 0x52b   : > { %v684_v44 = vpop.permute.xlu1 %683  ;;  %v671_v32 = vmul.f32 %v667_v39, %v656_v40  ;;  %v788_v39 = vrot.slane %v779_v35, %v3422_v57 }
 0x52c   : > { %v686_v47 = vsel %vm685_vm8, %v3215_v59, %v684_v44  ;;  %v687_v2 = vsel %vm685_vm8, %v684_v44, %v3215_v59  ;;  %vm1135_vm8 = vcmp.lt.s32.totalorder %v3017_v25, 17 }
 0x52d   : > { %1426 = vrot.lane.b32.xlu1 %v3111_v41, %s4342_s26  ;;  %v701_v34 = vmul.f32 %v694_v51, %v687_v2  ;;  %v702_v59 = vmul.f32 %v698_v48, %v686_v47  ;;  %v809_v51 = vld [vmem:[#allocation5 + $0x5] ss:$8 sm:$0x3]  ;;  %s4345_s26 = smov 114  }
 0x52e   : > { %v814_v40 = vrot.slane %v809_v51, %v3043_v18  ;;  %v818_v42 = vrot.slane %v809_v51, %v3422_v57 }
 0x52f   : > { %v714_v38 = vpop.permute.xlu1 %713  ;;  %v707_v47 = vmul.f32 %v3171_v53, %v701_v34  ;;  %v678_v34 = vmul.f32 %v3163_v52, %v671_v32 }
 0x530   : > { %v716_v44 = vsel %vm715_vm10, %v3221_v61, %v714_v38  ;;  %v717_v36 = vsel %vm715_vm10, %v714_v38, %v3221_v61  ;;  %v708_v61 = vmul.f32 %v3171_v53, %v702_v59  ;;  %vm1195_vm10 = vcmp.lt.s32.totalorder %v3017_v25, 15 }
 0x531   : > { %1456 = vrot.lane.b32.xlu1 %v3111_v41, %s4343_s16  ;;  %v731_v45 = vmul.f32 %v724_v49, %v717_v36  ;;  %v732_v29 = vmul.f32 %v728_v37, %v716_v44  ;;  %v677_v36 = vmul.f32 %v3163_v52, %v670_v28  ;;  %v839_v44 = vld [vmem:[#allocation5 + $0x6] ss:$8 sm:$0x3]  ;;  %s4346_s16 = smov 113  }
 0x532   : > { %v710_v49 = vadd.f32 %v708_v61, %v678_v34 }
 0x533   : > { %v744_v2 = vpop.permute.xlu1 %743  ;;  %v737_v53 = vmul.f32 %v3175_v10, %v731_v45  ;;  %v709_v43 = vadd.f32 %v707_v47, %v677_v36 }
 0x534   : > { %v746_v38 = vsel %vm745_vm11, %v3225_v0, %v744_v2  ;;  %v747_v48 = vsel %vm745_vm11, %v744_v2, %v3225_v0  ;;  %v738_v0 = vmul.f32 %v3175_v10, %v732_v29  ;;  %vm1225_vm11 = vcmp.lt.s32.totalorder %v3017_v25, 14 }
 0x535   : > { %v761_v33 = vmul.f32 %v754_v50, %v747_v48  ;;  %v762_v26 = vmul.f32 %v758_v55, %v746_v38  ;;  %1486 = vrot.lane.b32.xlu1 %v3111_v41, %s4344_s6  ;;  %v739_v50 = vadd.f32 %v737_v53, %v709_v43  ;;  %s4347_s6 = smov 112  }
 0x536   : > { %v740_v55 = vadd.f32 %v738_v0, %v710_v49 }
 0x537   : > { %v774_v37 = vpop.permute.xlu1 %773  ;;  %v767_v32 = vmul.f32 %v3181_v8, %v761_v33  ;;  %v768_v59 = vmul.f32 %v3181_v8, %v762_v26  ;;  %v844_v26 = vrot.slane %v839_v44, %v3043_v18  ;;  %v848_v33 = vrot.slane %v839_v44, %v3422_v57 }
 0x538   : > { %v776_v35 = vsel %vm775_vm12, %v3231_v1, %v774_v37  ;;  %v777_v52 = vsel %vm775_vm12, %v774_v37, %v3231_v1  ;;  %vm1255_vm12 = vcmp.lt.s32.totalorder %v3017_v25, 13 }
 0x539   : > { %v791_v10 = vmul.f32 %v784_v46, %v777_v52  ;;  %v792_v29 = vmul.f32 %v788_v39, %v776_v35  ;;  %1516 = vrot.lane.b32.xlu1 %v3111_v41, %s4345_s26  ;;  %v769_v47 = vadd.f32 %v767_v32, %v739_v50  ;;  %v770_v61 = vadd.f32 %v768_v59, %v740_v55  ;;  %s4348_s26 = smov 111  }
 0x53b   : > { %v797_v28 = vmul.f32 %v3185_v54, %v791_v10  ;;  %v798_v45 = vmul.f32 %v3185_v54, %v792_v29  ;;  %v804_v2 = vpop.permute.xlu1 %803  ;;  %v869_v54 = vld [vmem:[#allocation5 + $0x7] ss:$8 sm:$0x3] }
 0x53c   : > { %v806_v1 = vsel %vm805_vm13, %v3237_v3, %v804_v2  ;;  %v807_v8 = vsel %vm805_vm13, %v804_v2, %v3237_v3  ;;  %v874_v0 = vrot.slane %v869_v54, %v3043_v18  ;;  %v878_v37 = vrot.slane %v869_v54, %v3422_v57 }
 0x53d   : > { %v821_v38 = vmul.f32 %v814_v40, %v807_v8  ;;  %v822_v48 = vmul.f32 %v818_v42, %v806_v1  ;;  %1546 = vrot.lane.b32.xlu1 %v3111_v41, %s4346_s16  ;;  %v799_v51 = vadd.f32 %v797_v28, %v769_v47  ;;  %v800_v46 = vadd.f32 %v798_v45, %v770_v61  ;;  %s4349_s16 = smov 110  }
 0x53e   : > { %vm1285_vm13 = vcmp.lt.s32.totalorder %v3017_v25, 3 }
 0x53f   : > { %v827_v39 = vmul.f32 %v3191_v9, %v821_v38  ;;  %v828_v3 = vmul.f32 %v3191_v9, %v822_v48  ;;  %v834_v36 = vpop.permute.xlu1 %833  ;;  %v899_v9 = vld [vmem:[#allocation5 + $0x10] ss:$8 sm:$0x3] }
 0x540   : > { %v836_v34 = vsel %vm835_vm14, %v3241_v7, %v834_v36  ;;  %v837_v53 = vsel %vm835_vm14, %v834_v36, %v3241_v7  ;;  %v904_v10 = vrot.slane %v899_v9, %v3043_v18  ;;  %v908_v29 = vrot.slane %v899_v9, %v3422_v57 }
 0x541   : > { %v829_v40 = vadd.f32 %v827_v39, %v799_v51  ;;  %v830_v42 = vadd.f32 %v828_v3, %v800_v46  ;;  %v851_v43 = vmul.f32 %v844_v26, %v837_v53  ;;  %v852_v49 = vmul.f32 %v848_v33, %v836_v34  ;;  %1576 = vrot.lane.b32.xlu1 %v3111_v41, %s4347_s6  ;;  %s4350_s6 = smov 109  }
 0x542   : > { %vm1315_vm14 = vcmp.lt.s32.totalorder %v3017_v25, 2 }
 0x543   : > { %v857_v35 = vmul.f32 %v3197_v4, %v851_v43  ;;  %v858_v52 = vmul.f32 %v3197_v4, %v852_v49  ;;  %v864_v32 = vpop.permute.xlu1 %863  ;;  %v929_v4 = vld [vmem:[#allocation5 + $0x11] ss:$8 sm:$0x3] }
 0x544   : > { %v866_v7 = vsel %vm865_vm15, %v3247_v12, %v864_v32  ;;  %v867_v59 = vsel %vm865_vm15, %v864_v32, %v3247_v12  ;;  %v934_v26 = vrot.slane %v929_v4, %v3043_v18  ;;  %v938_v33 = vrot.slane %v929_v4, %v3422_v57 }
 0x545   : > { %v859_v44 = vadd.f32 %v857_v35, %v829_v40  ;;  %v860_v50 = vadd.f32 %v858_v52, %v830_v42  ;;  %v881_v55 = vmul.f32 %v874_v0, %v867_v59  ;;  %v882_v28 = vmul.f32 %v878_v37, %v866_v7  ;;  %1606 = vrot.lane.b32.xlu1 %v3111_v41, %s4348_s26  ;;  %s4351_s26 = smov 99  }
 0x546   : > { %vm1345_vm15 = vcmp.lt.s32.totalorder %v3017_v25, 1 }
 0x547   : > { %v887_v45 = vmul.f32 %v3205_v56, %v881_v55  ;;  %v888_v2 = vmul.f32 %v3205_v56, %v882_v28  ;;  %v894_v1 = vpop.permute.xlu1 %893  ;;  %v959_v56 = vld [vmem:[#allocation5 + $0x12] ss:$8 sm:$0x3] }
 0x548   : > { %v896_v12 = vsel %vm895_vm0, %v3253_v6, %v894_v1  ;;  %v897_v8 = vsel %vm895_vm0, %v894_v1, %v3253_v6  ;;  %v964_v3 = vrot.slane %v959_v56, %v3043_v18  ;;  %v968_v36 = vrot.slane %v959_v56, %v3422_v57 }
 0x549   : > { %v889_v47 = vadd.f32 %v887_v45, %v859_v44  ;;  %v890_v61 = vadd.f32 %v888_v2, %v860_v50  ;;  %v911_v38 = vmul.f32 %v904_v10, %v897_v8  ;;  %v912_v48 = vmul.f32 %v908_v29, %v896_v12  ;;  %1636 = vrot.lane.b32.xlu1 %v3111_v41, %s4349_s16  ;;  %s4352_s16 = smov 98  }
 0x54a   : > { %vm1398_vm0 = vcmp.lt.s32.totalorder %v3017_v25, 127 }
 0x54b   : > { %v917_v54 = vmul.f32 %v3211_v58, %v911_v38  ;;  %v918_v51 = vmul.f32 %v3211_v58, %v912_v48  ;;  %v924_v46 = vpop.permute.xlu1 %923  ;;  %v989_v58 = vld [vmem:[#allocation5 + $0x13] ss:$8 sm:$0x3] }
 0x54c   : > { %v926_v6 = vsel %vm925_vm1, %v3257_v13, %v924_v46  ;;  %v927_v39 = vsel %vm925_vm1, %v924_v46, %v3257_v13  ;;  %v994_v9 = vrot.slane %v989_v58, %v3043_v18  ;;  %v998_v35 = vrot.slane %v989_v58, %v3422_v57 }
 0x54d   : > { %v919_v34 = vadd.f32 %v917_v54, %v889_v47  ;;  %v920_v53 = vadd.f32 %v918_v51, %v890_v61  ;;  %v941_v0 = vmul.f32 %v934_v26, %v927_v39  ;;  %v942_v37 = vmul.f32 %v938_v33, %v926_v6  ;;  %1666 = vrot.lane.b32.xlu1 %v3111_v41, %s4350_s6  ;;  %s4353_s6 = smov 97  }
 0x54e   : > { %vm1428_vm1 = vcmp.lt.s32.totalorder %v3017_v25, 126 }
 0x54f   : > { %v947_v40 = vmul.f32 %v3219_v60, %v941_v0  ;;  %v948_v42 = vmul.f32 %v3219_v60, %v942_v37  ;;  %v954_v43 = vpop.permute.xlu1 %953  ;;  %v1019_v60 = vld [vmem:[#allocation5 + $0x14] ss:$8 sm:$0x3] }
 0x550   : > { %v956_v13 = vsel %vm955_vm2, %v3263_v15, %v954_v43  ;;  %v957_v49 = vsel %vm955_vm2, %v954_v43, %v3263_v15  ;;  %v1024_v55 = vrot.slane %v1019_v60, %v3043_v18  ;;  %v1028_v28 = vrot.slane %v1019_v60, %v3422_v57 }
 0x551   : > { %v949_v52 = vadd.f32 %v947_v40, %v919_v34  ;;  %v950_v32 = vadd.f32 %v948_v42, %v920_v53  ;;  %v971_v7 = vmul.f32 %v964_v3, %v957_v49  ;;  %v972_v59 = vmul.f32 %v968_v36, %v956_v13  ;;  %1696 = vrot.lane.b32.xlu1 %v3111_v41, %s4351_s26 }
 0x552   : > { %vm1458_vm2 = vcmp.lt.s32.totalorder %v3017_v25, 125 }
 0x553   : > { %v977_v10 = vmul.f32 %v3227_v62, %v971_v7  ;;  %v978_v29 = vmul.f32 %v3227_v62, %v972_v59  ;;  %v984_v44 = vpop.permute.xlu1 %983  ;;  %v1049_v62 = vld [vmem:[#allocation5 + $0x15] ss:$8 sm:$0x3] }
 0x554   : > { %v986_v15 = vsel %vm985_vm3, %v3269_v17, %v984_v44  ;;  %v987_v50 = vsel %vm985_vm3, %v984_v44, %v3269_v17  ;;  %v1054_v47 = vrot.slane %v1049_v62, %v3043_v18  ;;  %v1058_v61 = vrot.slane %v1049_v62, %v3422_v57 }
 0x555   : > { %v979_v4 = vadd.f32 %v977_v10, %v949_v52  ;;  %v980_v45 = vadd.f32 %v978_v29, %v950_v32  ;;  %v1001_v2 = vmul.f32 %v994_v9, %v987_v50  ;;  %v1002_v1 = vmul.f32 %v998_v35, %v986_v15  ;;  %1726 = vrot.lane.b32.xlu1 %v3111_v41, %s4352_s16 }
 0x556   : > { %vm1488_vm3 = vcmp.lt.s32.totalorder %v3017_v25, 115 }
 0x557   : > { %v1007_v12 = vmul.f32 %v3235_v63, %v1001_v2  ;;  %v1008_v8 = vmul.f32 %v3235_v63, %v1002_v1  ;;  %v1014_v26 = vpop.permute.xlu1 %1013  ;;  %v1079_v63 = vld [vmem:[#allocation5 + $0x16] ss:$8 sm:$0x3] }
 0x558   : > { %v1016_v17 = vsel %vm1015_vm4, %v3273_v19, %v1014_v26  ;;  %v1017_v33 = vsel %vm1015_vm4, %v1014_v26, %v3273_v19  ;;  %v1084_v3 = vrot.slane %v1079_v63, %v3043_v18  ;;  %v1088_v36 = vrot.slane %v1079_v63, %v3422_v57 }
 0x559   : > { %v1009_v38 = vadd.f32 %v1007_v12, %v979_v4  ;;  %v1010_v48 = vadd.f32 %v1008_v8, %v980_v45  ;;  %v1031_v56 = vmul.f32 %v1024_v55, %v1017_v33  ;;  %v1032_v54 = vmul.f32 %v1028_v28, %v1016_v17  ;;  %1756 = vrot.lane.b32.xlu1 %v3111_v41, %s4353_s6 }
 0x55a   : > { %vm1518_vm4 = vcmp.lt.s32.totalorder %v3017_v25, 114 }
 0x55b   : > { %v1037_v51 = vmul.f32 %v3243_v11, %v1031_v56  ;;  %v1038_v46 = vmul.f32 %v3243_v11, %v1032_v54  ;;  %v1044_v6 = vpop.permute.xlu1 %1043  ;;  %v1109_v11 = vld [vmem:[#allocation5 + $0x17] ss:$8 sm:$0x3] }
 0x55c   : > { %v1046_v19 = vsel %vm1045_vm5, %v3279_v21, %v1044_v6  ;;  %v1047_v39 = vsel %vm1045_vm5, %v1044_v6, %v3279_v21  ;;  %v1114_v13 = vrot.slane %v1109_v11, %v3043_v18  ;;  %v1118_v49 = vrot.slane %v1109_v11, %v3422_v57 }
 0x55d   : > { %v1039_v34 = vadd.f32 %v1037_v51, %v1009_v38  ;;  %v1040_v53 = vadd.f32 %v1038_v46, %v1010_v48  ;;  %v1061_v0 = vmul.f32 %v1054_v47, %v1047_v39  ;;  %v1062_v37 = vmul.f32 %v1058_v61, %v1046_v19  ;;  %1786 = vrot.lane.b32.xlu1 %v3111_v41, %s2772_s29  ;;  %s2287_s29 = sshll.u32 %s2835_s22, 10 }
 0x55e   : > { %vm1548_vm5 = vcmp.lt.s32.totalorder %v3017_v25, 113 }
 0x55f   : > { %v1067_v58 = vmul.f32 %v3251_v5, %v1061_v0  ;;  %v1068_v40 = vmul.f32 %v3251_v5, %v1062_v37  ;;  %v1074_v42 = vpop.permute.xlu1 %1073  ;;  %v1139_v5 = vld [vmem:[#allocation5 + $0x20] ss:$8 sm:$0x3] }
 0x560   : > { %v1076_v21 = vsel %vm1075_vm6, %v3285_v23, %v1074_v42  ;;  %v1077_v43 = vsel %vm1075_vm6, %v1074_v42, %v3285_v23  ;;  %v1144_v29 = vrot.slane %v1139_v5, %v3043_v18  ;;  %v1148_v44 = vrot.slane %v1139_v5, %v3422_v57 }
 0x561   : > { %v1069_v9 = vadd.f32 %v1067_v58, %v1039_v34  ;;  %v1070_v35 = vadd.f32 %v1068_v40, %v1040_v53  ;;  %v1091_v52 = vmul.f32 %v1084_v3, %v1077_v43  ;;  %v1092_v32 = vmul.f32 %v1088_v36, %v1076_v21  ;;  %1816 = vrot.lane.b32.xlu1 %v3111_v41, %s2773_s28  ;;  %v4354_v40 = vld [vmem:[#allocation16_spill] sm:$0xff] }
 0x562   : > { %vm1578_vm6 = vcmp.lt.s32.totalorder %v3017_v25, 112 }
 0x563   : > { %v1097_v7 = vmul.f32 %v3259_v14, %v1091_v52  ;;  %v1098_v59 = vmul.f32 %v3259_v14, %v1092_v32  ;;  %v1104_v60 = vpop.permute.xlu1 %1103  ;;  %v1169_v14 = vld [vmem:[#allocation5 + $0x21] ss:$8 sm:$0x3] }
 0x564   : > { %v1106_v23 = vsel %vm1105_vm7, %v3289_v24, %v1104_v60  ;;  %v1107_v10 = vsel %vm1105_vm7, %v1104_v60, %v3289_v24  ;;  %v1174_v62 = vrot.slane %v1169_v14, %v3043_v18  ;;  %v1178_v12 = vrot.slane %v1169_v14, %v3422_v57  ;;  %v4356_v60 = vld [vmem:[#allocation17_spill] sm:$0xff] }
 0x565   : > { %v1099_v15 = vadd.f32 %v1097_v7, %v1069_v9  ;;  %v1100_v50 = vadd.f32 %v1098_v59, %v1070_v35  ;;  %v1121_v55 = vmul.f32 %v1114_v13, %v1107_v10  ;;  %v1122_v28 = vmul.f32 %v1118_v49, %v1106_v23  ;;  %1846 = vrot.lane.b32.xlu1 %v3111_v41, %s2774_s13  ;;  %v1289_v59 = vld [vmem:[#allocation5 + $0x25] ss:$8 sm:$0x3]  ;;  %s4364_s13 = smov 77  }
 0x566   : > { %vm1608_vm7 = vcmp.lt.s32.totalorder %v3017_v25, 111 }
 0x567   : > { %v1127_v4 = vmul.f32 %v3267_v16, %v1121_v55  ;;  %v1128_v45 = vmul.f32 %v3267_v16, %v1122_v28  ;;  %v1134_v2 = vpop.permute.xlu1 %1133  ;;  %v1199_v16 = vld [vmem:[#allocation5 + $0x22] ss:$8 sm:$0x3]  ;;  %v1294_v55 = vrot.slane %v1289_v59, %v3043_v18  ;;  %v1298_v28 = vrot.slane %v1289_v59, %v3422_v57  ;;  %v3720_v59 = vpop.permute.xlu0 %1837 }
 0x568   : > { %v1136_v24 = vsel %vm1135_vm8, %v3295_v27, %v1134_v2  ;;  %v1137_v1 = vsel %vm1135_vm8, %v1134_v2, %v3295_v27  ;;  %v1204_v56 = vrot.slane %v1199_v16, %v3043_v18  ;;  %v1208_v54 = vrot.slane %v1199_v16, %v3422_v57 }
 0x569   : > { %v1129_v8 = vadd.f32 %v1127_v4, %v1099_v15  ;;  %v1130_v26 = vadd.f32 %v1128_v45, %v1100_v50  ;;  %v1151_v17 = vmul.f32 %v1144_v29, %v1137_v1  ;;  %v1152_v33 = vmul.f32 %v1148_v44, %v1136_v24  ;;  %1876 = vrot.lane.b32.xlu1 %v3111_v41, %s2775_s10  ;;  %v4357_v44 = vld [vmem:[#allocation21_spill] sm:$0xff]  ;;  %v4358_v1 = vld [vmem:[#allocation18_spill] sm:$0xff]  ;;  %s2180_s10 = sshll.u32 %s3078_s12, 4  ;;  %s4143_s10 = int_to_ptr.vmem [resolvable:$true] %s2180_s10 }
 0x56a   : > { %v1319_v24 = vld [vmem:[#allocation5 + $0x26] ss:$8 sm:$0x3]  ;;  %vm1638_vm8 = vcmp.lt.s32.totalorder %v3017_v25, 110 }
 0x56b   : > { %v1157_v47 = vmul.f32 %v3275_v20, %v1151_v17  ;;  %v1158_v61 = vmul.f32 %v3275_v20, %v1152_v33  ;;  %v1164_v38 = vpop.permute.xlu1 %1163  ;;  %v1229_v20 = vld [vmem:[#allocation5 + $0x23] ss:$8 sm:$0x3]  ;;  %v1324_v16 = vrot.slane %v1319_v24, %v3043_v18 }
 0x56c   : > { %v1166_v27 = vsel %vm1165_vm9, %v3301_v30, %v1164_v38  ;;  %v1167_v48 = vsel %vm1165_vm9, %v1164_v38, %v3301_v30  ;;  %v1234_v34 = vrot.slane %v1229_v20, %v3043_v18  ;;  %v1238_v53 = vrot.slane %v1229_v20, %v3422_v57 }
 0x56d   : > { %v1159_v63 = vadd.f32 %v1157_v47, %v1129_v8  ;;  %v1160_v51 = vadd.f32 %v1158_v61, %v1130_v26  ;;  %v1181_v46 = vmul.f32 %v1174_v62, %v1167_v48  ;;  %v1182_v6 = vmul.f32 %v1178_v12, %v1166_v27  ;;  %1906 = vrot.lane.b32.xlu1 %v3111_v41, %s2776_s17  ;;  %v4359_v26 = vld [vmem:[#allocation22_spill] sm:$0xff]  ;;  %s4141_s17 = scalar_lea.hbm %s4201_s5, %s2287_s29 }
 0x56e   : > { %v1328_v47 = vrot.slane %v1319_v24, %v3422_v57  ;;  %v1372_v24 = vld [vmem:[#allocation5 + $0x30] ss:$8 sm:$0x3]  ;;  %vm1668_vm9 = vcmp.lt.s32.totalorder %v3017_v25, 109 }
 0x56f   : > { %v1187_v19 = vmul.f32 %v3283_v22, %v1181_v46  ;;  %v1188_v39 = vmul.f32 %v3283_v22, %v1182_v6  ;;  %v1194_v3 = vpop.permute.xlu1 %1193  ;;  %v1259_v22 = vld [vmem:[#allocation5 + $0x24] ss:$8 sm:$0x3]  ;;  %v4361_v6 = vld [vmem:[#allocation24_spill] sm:$0xff] }
 0x570   : > { %v1196_v30 = vsel %vm1195_vm10, %v3305_v31, %v1194_v3  ;;  %v1197_v36 = vsel %vm1195_vm10, %v1194_v3, %v3305_v31  ;;  %v4355_v31 = vld [vmem:[#allocation19_spill] sm:$0xff]  ;;  %v1264_v9 = vrot.slane %v1259_v22, %v3043_v18  ;;  %v1268_v35 = vrot.slane %v1259_v22, %v3422_v57  ;;  %v4363_v22 = vld [vmem:[#allocation26_spill] sm:$0xff] }
 0x571   : > { %v1189_v0 = vadd.f32 %v1187_v19, %v1159_v63  ;;  %v1190_v37 = vadd.f32 %v1188_v39, %v1160_v51  ;;  %v1211_v11 = vmul.f32 %v1204_v56, %v1197_v36  ;;  %v1212_v58 = vmul.f32 %v1208_v54, %v1196_v30  ;;  %1936 = vrot.lane.b32.xlu1 %v3111_v41, %s2777_s27  ;;  %v1349_v56 = vld [vmem:[#allocation5 + $0x27] ss:$8 sm:$0x3]  ;;  %v4360_v54 = vld [vmem:[#allocation20_spill] sm:$0xff]  ;;  %s2167_s27 = scalar_lea.sflag [#allocation4], %s2959_s23 }
 0x572   : > { %v1354_v39 = vrot.slane %v1349_v56, %v3043_v18  ;;  %v1358_v3 = vrot.slane %v1349_v56, %v3422_v57  ;;  %vm1698_vm10 = vcmp.lt.s32.totalorder %v3017_v25, 99 }
 0x573   : > { %v1217_v42 = vmul.f32 %v4354_v40, %v1211_v11  ;;  %v1218_v21 = vmul.f32 %v4354_v40, %v1212_v58  ;;  %v1224_v43 = vpop.permute.xlu1 %1223 }
 0x574   : > { %v1226_v13 = vsel %vm1225_vm11, %v4355_v31, %v1224_v43  ;;  %v1227_v49 = vsel %vm1225_vm11, %v1224_v43, %v4355_v31  ;;  %vm1728_vm11 = vcmp.lt.s32.totalorder %v3017_v25, 98 }
 0x575   : > { %v1219_v52 = vadd.f32 %v1217_v42, %v1189_v0  ;;  %v1220_v32 = vadd.f32 %v1218_v21, %v1190_v37  ;;  %v1241_v5 = vmul.f32 %v1234_v34, %v1227_v49  ;;  %v1242_v7 = vmul.f32 %v1238_v53, %v1226_v13  ;;  %1966 = vrot.lane.b32.xlu1 %v3111_v41, %s2778_s14  ;;  %v4362_v0 = vld [vmem:[#allocation23_spill] sm:$0xff]  ;;  %v4365_v49 = vld [vmem:[#allocation25_spill] sm:$0xff]  ;;  %s2605_s14 = scalar_lea.vmem %s4143_s10, 1024 }
 0x576   : > { %p2606_p4 = scmp.ne.s32.totalorder %s4143_s10, %s2605_s14 }
 0x577   : > { %v1247_v23 = vmul.f32 %v4356_v60, %v1241_v5  ;;  %v1248_v10 = vmul.f32 %v4356_v60, %v1242_v7  ;;  %v1254_v29 = vpop.permute.xlu1 %1253 }
 0x578   : > { %v1256_v15 = vsel %vm1255_vm12, %v4357_v44, %v1254_v29  ;;  %v1257_v50 = vsel %vm1255_vm12, %v1254_v29, %v4357_v44  ;;  %vm1758_vm12 = vcmp.lt.s32.totalorder %v3017_v25, 97  ;;  %p2607_p6 = pnand %p2606_p4, %p2908_p12 }
 0x579   : > { %v1249_v14 = vadd.f32 %v1247_v23, %v1219_v52  ;;  %v1250_v4 = vadd.f32 %v1248_v10, %v1220_v32  ;;  %v1271_v45 = vmul.f32 %v1264_v9, %v1257_v50  ;;  %v1272_v2 = vmul.f32 %v1268_v35, %v1256_v15  ;;  %1996 = vrot.lane.b32.xlu1 %v3111_v41, %s2779_s15  ;;  %v3726_v10 = vpop.permute.xlu0 %1867  ;;  %s2782_s15 = smov [#allocation7]  }
 0x57a   : > { %p2608_p8 = pneg %p2607_p6 }
 0x57b   : > { %v1277_v62 = vmul.f32 %v4358_v1, %v1271_v45  ;;  %v1278_v12 = vmul.f32 %v4358_v1, %v1272_v2  ;;  %v1284_v8 = vpop.permute.xlu1 %1283  ;;  %v1402_v1 = vld [vmem:[#allocation5 + $0x31] ss:$8 sm:$0x3] }
 0x57c   : > { %v1286_v17 = vsel %vm1285_vm13, %v4359_v26, %v1284_v8  ;;  %v1287_v33 = vsel %vm1285_vm13, %v1284_v8, %v4359_v26  ;;  %v1381_v8 = vrot.slane %v1372_v24, %v3422_v57  ;;  %vm1788_vm13 = vcmp.lt.s32.totalorder %v3017_v25, 96 }
 0x57d   : > { %v1279_v61 = vadd.f32 %v1277_v62, %v1249_v14  ;;  %v1280_v38 = vadd.f32 %v1278_v12, %v1250_v4  ;;  %v1301_v27 = vmul.f32 %v1294_v55, %v1287_v33  ;;  %v1302_v48 = vmul.f32 %v1298_v28, %v1286_v17  ;;  %2026 = vrot.lane.b32.xlu1 %v3111_v41, %s2780_s11  ;;  %v3730_v44 = vpop.permute.xlu0 %1897  ;;  %s2609_s11 = sshll.u32 %s2782_s15, 4  ;;  %s2610_s11 = int_to_ptr.vmem [resolvable:$false] %s2609_s11 }
 0x57e   : > { %v1377_v12 = vrot.slane %v1372_v24, %v3043_v18  ;;  %v1407_v17 = vrot.slane %v1402_v1, %v3043_v18  ;;  %v1411_v33 = vrot.slane %v1402_v1, %v3422_v57  ;;  %v1385_v56 = vmul.f32 %v1381_v8, %v3111_v41  ;;  %v4370_v24 = vld [vmem:[#allocation29_spill] sm:$0xff]  ;;  %p2612_p10 = scmp.lt.s32.totalorder %s4143_s10, %s2610_s11 }
 0x57f   : > { %v1307_v63 = vmul.f32 %v4360_v54, %v1301_v27  ;;  %v1308_v51 = vmul.f32 %v4360_v54, %v1302_v48  ;;  %v1314_v46 = vpop.permute.xlu1 %1313  ;;  %v4367_v27 = vld [vmem:[#allocation12_spill] sm:$0xff]  ;;  %v3790_v8 = vld [vmem:[#allocation5 + $0x40] ss:$8 sm:$0x3] }
 0x580   : > { %v1316_v20 = vsel %vm1315_vm14, %v4361_v6, %v1314_v46  ;;  %v1317_v19 = vsel %vm1315_vm14, %v1314_v46, %v4361_v6  ;;  %v1384_v48 = vmul.f32 %v1377_v12, %v4367_v27  ;;  %v1432_v46 = vld [vmem:[#allocation5 + $0x32] ss:$8 sm:$0x3]  ;;  %v1462_v6 = vld [vmem:[#allocation5 + $0x33] ss:$8 sm:$0x3] }
 0x581   : > { %v1309_v30 = vadd.f32 %v1307_v63, %v1279_v61  ;;  %v1310_v36 = vadd.f32 %v1308_v51, %v1280_v38  ;;  %v1331_v34 = vmul.f32 %v1324_v16, %v1317_v19  ;;  %v1332_v53 = vmul.f32 %v1328_v47, %v1316_v20  ;;  %2056 = vrot.lane.b32.xlu1 %v3111_v41, %s2781_s24  ;;  %v3734_v55 = vpop.permute.xlu0 %1927  ;;  %v4366_v16 = vld [vmem:[#allocation27_spill] sm:$0xff]  ;;  %s2611_s24 = scalar_lea.vmem %s2610_s11, 2048 }
 0x582   : > { %v4368_v20 = vld [vmem:[#allocation11_spill] sm:$0xff]  ;;  %vm1818_vm14 = vcmp.lt.s32.totalorder %v3017_v25, 95  ;;  %p2613_p13 = scmp.lt.s32.totalorder %s2611_s24, %s2605_s14 }
 0x583   : > { %v1337_v37 = vmul.f32 %v4362_v0, %v1331_v34  ;;  %v1338_v11 = vmul.f32 %v4362_v0, %v1332_v53  ;;  %v1344_v58 = vpop.permute.xlu1 %1343  ;;  %v1390_v19 = vmul.f32 %v4368_v20, %v1384_v48  ;;  %v1492_v34 = vld [vmem:[#allocation5 + $0x34] ss:$8 sm:$0x3]  ;;  %v1522_v53 = vld [vmem:[#allocation5 + $0x35] ss:$8 sm:$0x3]  ;;  %v1441_v0 = vrot.slane %v1432_v46, %v3422_v57 }
 0x584   : > { %v1346_v40 = vsel %vm1345_vm15, %v4363_v22, %v1344_v58  ;;  %v1347_v42 = vsel %vm1345_vm15, %v1344_v58, %v4363_v22  ;;  %vm1848_vm15 = vcmp.lt.s32.totalorder %v3017_v25, 94  ;;  %p2614_p3 = por %p2613_p13, %p2612_p10 }
 0x585   : > { %v1339_v21 = vadd.f32 %v1337_v37, %v1309_v30  ;;  %v1340_v43 = vadd.f32 %v1338_v11, %v1310_v36  ;;  %v1361_v31 = vmul.f32 %v1354_v39, %v1347_v42  ;;  %v1362_v13 = vmul.f32 %v1358_v3, %v1346_v40  ;;  %2086 = vrot.lane.b32.xlu1 %v3111_v41, %s4364_s13  ;;  %v1425_v14 = vpop.permute.xlu0 %1424  ;;  %v4369_v3 = vld [vmem:[#allocation13_spill] sm:$0xff]  ;;  %v3766_v11 = vld [vmem:[#allocation5 + $0x36] ss:$8 sm:$0x3] }
 0x586   : > { %v1391_v39 = vmul.f32 %v4368_v20, %v1385_v56  ;;  %v1437_v41 = vrot.slane %v1432_v46, %v3043_v18  ;;  %v1467_v37 = vrot.slane %v1462_v6, %v3043_v18  ;;  %v1471_v42 = vrot.slane %v1462_v6, %v3422_v57  ;;  %v3816_v46 = vld [vmem:[#allocation5 + $0x42] ss:$8 sm:$0x3]  ;;  %p2615_p7 = pnand %p2614_p3, %p2608_p8 }
 0x587   : > { %v1367_v9 = vmul.f32 %v4365_v49, %v1361_v31  ;;  %v1368_v35 = vmul.f32 %v4365_v49, %v1362_v13  ;;  %v3712_v52 = vpop.permute.xlu1 %1904  ;;  %v1527_v31 = vrot.slane %v1522_v53, %v3043_v18  ;;  %v3776_v13 = vld [vmem:[#allocation5 + $0x37] ss:$8 sm:$0x3]  ;;  %v1531_v49 = vrot.slane %v1522_v53, %v3422_v57 }
 0x588   : > { %v4373_v53 = vld [vmem:[#allocation32_spill] sm:$0xff] }
 0x589   : > { %v3714_v32 = vadd.f32 %v1367_v9, %v1339_v21  ;;  %v3716_v5 = vadd.f32 %v1368_v35, %v1340_v43  ;;  %v3740_v2 = vpop.permute.xlu0 %1604  ;;  %v1497_v21 = vrot.slane %v1492_v34, %v3043_v18  ;;  %v1501_v43 = vrot.slane %v1492_v34, %v3422_v57 }
 0x58a   : > { %v1557_v9 = vrot.slane %v3766_v11, %v3043_v18  ;;  %v1561_v35 = vrot.slane %v3766_v11, %v3422_v57 }
 0x58b   : > { %v3718_v7 = vpop.permute.xlu1 %1934 }
 0x58d   : > { %v1397_v26 = vpop.permute.xlu0 %1396 }
 0x58e   : > { %v1399_v47 = vsel %vm1398_vm0, %v4366_v16, %v1397_v26  ;;  %v1400_v61 = vsel %vm1398_vm0, %v1397_v26, %v4366_v16  ;;  %v3800_v16 = vld [vmem:[#allocation5 + $0x41] ss:$8 sm:$0x3]  ;;  %vm1878_vm0 = vcmp.lt.s32.totalorder %v3017_v25, 93 }
 0x58f   : > { %v3722_v60 = vpop.permute.xlu1 %1964  ;;  %v1414_v54 = vmul.f32 %v1407_v17, %v1399_v47  ;;  %v1415_v63 = vmul.f32 %v1411_v33, %v1400_v61  ;;  %v1587_v17 = vrot.slane %v3776_v13, %v3043_v18  ;;  %v1591_v33 = vrot.slane %v3776_v13, %v3422_v57  ;;  %v4371_v61 = vld [vmem:[#allocation31_spill] sm:$0xff] }
 0x590   : > { %v1392_v47 = vadd.f32 %v1390_v19, %v3714_v32  ;;  %v1621_v32 = vrot.slane %v3790_v8, %v3422_v57  ;;  %v1647_v19 = vrot.slane %v3800_v16, %v3043_v18 }
 0x591   : > { %v1420_v30 = vmul.f32 %v4369_v3, %v1414_v54  ;;  %v1421_v36 = vmul.f32 %v4369_v3, %v1415_v63  ;;  %v1617_v63 = vrot.slane %v3790_v8, %v3043_v18 }
 0x593   : > { %v3724_v23 = vpop.permute.xlu1 %1994  ;;  %v1422_v11 = vadd.f32 %v1420_v30, %v1392_v47 }
 0x597   : > { %v3728_v29 = vpop.permute.xlu1 %2024 }
 0x59b   : > { %v3732_v15 = vpop.permute.xlu1 %2054 }
 0x59f   : > { %v1427_v50 = vpop.permute.xlu1 %1426 }
 0x5a0   : > { %v1429_v22 = vsel %vm1428_vm1, %v1425_v14, %v1427_v50  ;;  %v1430_v40 = vsel %vm1428_vm1, %v1427_v50, %v1425_v14  ;;  %vm1908_vm1 = vcmp.lt.s32.totalorder %v3017_v25, 83 }
 0x5a1   : > { %v1444_v50 = vmul.f32 %v1437_v41, %v1429_v22  ;;  %v1445_v14 = vmul.f32 %v1441_v0, %v1430_v40  ;;  %v1677_v40 = vrot.slane %v3816_v46, %v3043_v18 }
 0x5a3   : > { %v1457_v28 = vpop.permute.xlu1 %1456 }
 0x5a4   : > { %v1459_v1 = vsel %vm1458_vm2, %v4370_v24, %v1457_v28  ;;  %v1460_v12 = vsel %vm1458_vm2, %v1457_v28, %v4370_v24  ;;  %v1393_v28 = vadd.f32 %v1391_v39, %v3716_v5  ;;  %v4372_v5 = vld [vmem:[#allocation28_spill] sm:$0xff]  ;;  %vm1938_vm2 = vcmp.lt.s32.totalorder %v3017_v25, 82 }
 0x5a5   : > { %v1474_v56 = vmul.f32 %v1467_v37, %v1459_v1  ;;  %v1475_v54 = vmul.f32 %v1471_v42, %v1460_v12  ;;  %v1450_v6 = vmul.f32 %v4372_v5, %v1444_v50  ;;  %v1451_v20 = vmul.f32 %v4372_v5, %v1445_v14  ;;  %v3835_v37 = vld [vmem:[#allocation5 + $0x43] ss:$8 sm:$0x3]  ;;  %v3856_v12 = vld [vmem:[#allocation5 + $0x44] ss:$8 sm:$0x3] }
 0x5a6   : > { %v1423_v22 = vadd.f32 %v1421_v36, %v1393_v28  ;;  %v1681_v42 = vrot.slane %v3816_v46, %v3422_v57  ;;  %v4375_v50 = vld [vmem:[#allocation34_spill] sm:$0xff]  ;;  %v1707_v24 = vrot.slane %v3835_v37, %v3043_v18  ;;  %v1711_v1 = vrot.slane %v3835_v37, %v3422_v57  ;;  %v4385_v46 = vld [vmem:[#allocation15_spill] sm:$0xff] }
 0x5a7   : > { %v3736_v4 = vpop.permute.xlu1 %1486  ;;  %v1452_v47 = vadd.f32 %v1450_v6, %v1422_v11  ;;  %v3871_v5 = vld [vmem:[#allocation5 + $0x45] ss:$8 sm:$0x3] }
 0x5a8   : > { %v1489_v27 = vsel %vm1488_vm3, %v4371_v61, %v3736_v4  ;;  %v1490_v48 = vsel %vm1488_vm3, %v3736_v4, %v4371_v61  ;;  %v1651_v4 = vrot.slane %v3800_v16, %v3422_v57  ;;  %v1453_v28 = vadd.f32 %v1451_v20, %v1423_v22  ;;  %v4376_v61 = vld [vmem:[#allocation33_spill] sm:$0xff] }
 0x5a9   : > { %v1504_v3 = vmul.f32 %v1497_v21, %v1489_v27  ;;  %v1505_v34 = vmul.f32 %v1501_v43, %v1490_v48  ;;  %v4374_v21 = vld [vmem:[#allocation30_spill] sm:$0xff]  ;;  %vm1968_vm3 = vcmp.lt.s32.totalorder %v3017_v25, 81 }
 0x5aa   : > { %v1480_v43 = vmul.f32 %v4374_v21, %v1474_v56  ;;  %v1481_v13 = vmul.f32 %v4374_v21, %v1475_v54  ;;  %v1767_v21 = vrot.slane %v3871_v5, %v3043_v18 }
 0x5ab   : > { %v3738_v45 = vpop.permute.xlu1 %1516  ;;  %v1510_v27 = vmul.f32 %v4376_v61, %v1504_v3  ;;  %v1511_v48 = vmul.f32 %v4376_v61, %v1505_v34  ;;  %v4378_v3 = vld [vmem:[#allocation35_spill] sm:$0xff] }
 0x5ac   : > { %v1519_v41 = vsel %vm1518_vm4, %v4373_v53, %v3738_v45  ;;  %v1520_v0 = vsel %vm1518_vm4, %v3738_v45, %v4373_v53  ;;  %v1482_v6 = vadd.f32 %v1480_v43, %v1452_v47  ;;  %v1483_v20 = vadd.f32 %v1481_v13, %v1453_v28  ;;  %v3894_v13 = vld [vmem:[#allocation5 + $0x46] ss:$8 sm:$0x3]  ;;  %v3907_v28 = vld [vmem:[#allocation5 + $0x47] ss:$8 sm:$0x3] }
 0x5ad   : > { %v1534_v36 = vmul.f32 %v1527_v31, %v1519_v41  ;;  %v1535_v14 = vmul.f32 %v1531_v49, %v1520_v0  ;;  %v4377_v49 = vld [vmem:[#allocation36_spill] sm:$0xff]  ;;  %v1771_v43 = vrot.slane %v3871_v5, %v3422_v57  ;;  %v4392_v5 = vld [vmem:[#allocation47_spill] sm:$0xff]  ;;  %vm1998_vm4 = vcmp.lt.s32.totalorder %v3017_v25, 80 }
 0x5af   : > { %v3742_v62 = vpop.permute.xlu1 %1546  ;;  %v1540_v34 = vmul.f32 %v4378_v3, %v1534_v36  ;;  %v1541_v53 = vmul.f32 %v4378_v3, %v1535_v14  ;;  %v1827_v3 = vrot.slane %v3907_v28, %v3043_v18 }
 0x5b0   : > { %v1549_v45 = vsel %vm1548_vm5, %v4375_v50, %v3742_v62  ;;  %v1550_v30 = vsel %vm1548_vm5, %v3742_v62, %v4375_v50  ;;  %v1512_v50 = vadd.f32 %v1510_v27, %v1482_v6  ;;  %vm2028_vm5 = vcmp.lt.s32.totalorder %v3017_v25, 79 }
 0x5b1   : > { %v1564_v62 = vmul.f32 %v1557_v9, %v1549_v45  ;;  %v1565_v31 = vmul.f32 %v1561_v35, %v1550_v30  ;;  %v1737_v9 = vrot.slane %v3856_v12, %v3043_v18  ;;  %v1741_v35 = vrot.slane %v3856_v12, %v3422_v57  ;;  %v4379_v30 = vld [vmem:[#allocation38_spill] sm:$0xff] }
 0x5b2   : > { %v1513_v45 = vadd.f32 %v1511_v48, %v1483_v20  ;;  %v1542_v61 = vadd.f32 %v1540_v34, %v1512_v50  ;;  %v4381_v48 = vld [vmem:[#allocation40_spill] sm:$0xff]  ;;  %v1801_v20 = vrot.slane %v3894_v13, %v3422_v57 }
 0x5b3   : > { %v3751_v38 = vpop.permute.xlu1 %1576  ;;  %v1570_v36 = vmul.f32 %v4379_v30, %v1564_v62  ;;  %v1571_v14 = vmul.f32 %v4379_v30, %v1565_v31  ;;  %v3951_v30 = vld [vmem:[#allocation5 + $0x50] ss:$8 sm:$0x3] }
 0x5b4   : > { %v1579_v56 = vsel %vm1578_vm6, %v4377_v49, %v3751_v38  ;;  %v1580_v54 = vsel %vm1578_vm6, %v3751_v38, %v4377_v49  ;;  %v1543_v27 = vadd.f32 %v1541_v53, %v1513_v45  ;;  %v4382_v49 = vld [vmem:[#allocation39_spill] sm:$0xff]  ;;  %vm2058_vm6 = vcmp.lt.s32.totalorder %v3017_v25, 78 }
 0x5b5   : > { %v1594_v11 = vmul.f32 %v1587_v17, %v1579_v56  ;;  %v1595_v22 = vmul.f32 %v1591_v33, %v1580_v54  ;;  %v4380_v17 = vld [vmem:[#allocation37_spill] sm:$0xff]  ;;  %v1572_v34 = vadd.f32 %v1570_v36, %v1542_v61  ;;  %v1857_v61 = vrot.slane %v3951_v30, %v3043_v18 }
 0x5b6   : > { %v1573_v53 = vadd.f32 %v1571_v14, %v1543_v27  ;;  %v1861_v27 = vrot.slane %v3951_v30, %v3422_v57  ;;  %v1912_v30 = vld [vmem:[#allocation5 + $0x52] ss:$8 sm:$0x3] }
 0x5b7   : > { %v3755_v51 = vpop.permute.xlu1 %1606  ;;  %v1600_v62 = vmul.f32 %v4381_v48, %v1594_v11  ;;  %v1601_v31 = vmul.f32 %v4381_v48, %v1595_v22  ;;  %v3935_v11 = vpop.permute.xlu0 %1957  ;;  %v3976_v48 = vld [vmem:[#allocation5 + $0x51] ss:$8 sm:$0x3] }
 0x5b8   : > { %v1609_v38 = vsel %vm1608_vm7, %v3740_v2, %v3755_v51  ;;  %v1610_v41 = vsel %vm1608_vm7, %v3755_v51, %v3740_v2  ;;  %v1887_v12 = vrot.slane %v3976_v48, %v3043_v18  ;;  %vm2088_vm7 = vcmp.lt.s32.totalorder %v3017_v25, 77 }
 0x5b9   : > { %v1624_v2 = vmul.f32 %v1617_v63, %v1609_v38  ;;  %v1625_v51 = vmul.f32 %v1621_v32, %v1610_v41  ;;  %v1797_v63 = vrot.slane %v3894_v13, %v3043_v18  ;;  %v4383_v38 = vld [vmem:[#allocation14_spill] sm:$0xff]  ;;  %v1602_v36 = vadd.f32 %v1600_v62, %v1572_v34 }
 0x5ba   : > { %v1603_v14 = vadd.f32 %v1601_v31, %v1573_v53  ;;  %v4393_v13 = vld [vmem:[#allocation50_spill] sm:$0xff] }
 0x5bb   : > { %v3768_v58 = vpop.permute.xlu1 %1636  ;;  %v1630_v41 = vmul.f32 %v4383_v38, %v1624_v2  ;;  %v3994_v34 = vpop.permute.xlu0 %1987 }
 0x5bc   : > { %v1639_v33 = vsel %vm1638_vm8, %v4380_v17, %v3768_v58  ;;  %v1640_v47 = vsel %vm1638_vm8, %v3768_v58, %v4380_v17 }
 0x5bd   : > { %v1654_v54 = vmul.f32 %v1647_v19, %v1639_v33  ;;  %v1655_v6 = vmul.f32 %v1651_v4, %v1640_v47  ;;  %v4384_v4 = vld [vmem:[#allocation41_spill] sm:$0xff]  ;;  %v1632_v62 = vadd.f32 %v1630_v41, %v1602_v36 }
 0x5bf   : > { %v3792_v26 = vpop.permute.xlu1 %1666  ;;  %v1661_v2 = vmul.f32 %v4385_v46, %v1655_v6 }
 0x5c0   : > { %v1669_v56 = vsel %vm1668_vm9, %v4382_v49, %v3792_v26  ;;  %v1670_v58 = vsel %vm1668_vm9, %v3792_v26, %v4382_v49  ;;  %v1631_v26 = vmul.f32 %v4383_v38, %v1625_v51  ;;  %v4386_v51 = vld [vmem:[#allocation42_spill] sm:$0xff]  ;;  %v4387_v49 = vld [vmem:[#allocation43_spill] sm:$0xff] }
 0x5c1   : > { %v1684_v16 = vmul.f32 %v1677_v40, %v1669_v56  ;;  %v1685_v19 = vmul.f32 %v1681_v42, %v1670_v58  ;;  %v1831_v40 = vrot.slane %v3907_v28, %v3422_v57  ;;  %v1660_v42 = vmul.f32 %v4385_v46, %v1654_v54  ;;  %v4391_v46 = vld [vmem:[#allocation48_spill] sm:$0xff] }
 0x5c2   : > { %v1633_v31 = vadd.f32 %v1631_v26, %v1603_v14  ;;  %v4390_v26 = vld [vmem:[#allocation46_spill] sm:$0xff] }
 0x5c3   : > { %v3825_v39 = vpop.permute.xlu1 %1696  ;;  %v1691_v56 = vmul.f32 %v4387_v49, %v1685_v19  ;;  %v1662_v53 = vadd.f32 %v1660_v42, %v1632_v62  ;;  %v4029_v62 = vpop.permute.xlu0 %2017 }
 0x5c4   : > { %v1699_v22 = vsel %vm1698_vm10, %v4384_v4, %v3825_v39  ;;  %v1700_v50 = vsel %vm1698_vm10, %v3825_v39, %v4384_v4  ;;  %v1663_v38 = vadd.f32 %v1661_v2, %v1633_v31  ;;  %v4394_v31 = vld [vmem:[#allocation49_spill] sm:$0xff] }
 0x5c5   : > { %v1714_v33 = vmul.f32 %v1707_v24, %v1699_v22  ;;  %v1715_v47 = vmul.f32 %v1711_v1, %v1700_v50  ;;  %v4388_v1 = vld [vmem:[#allocation44_spill] sm:$0xff]  ;;  %v1891_v22 = vrot.slane %v3976_v48, %v3422_v57  ;;  %v1921_v48 = vrot.slane %v1912_v30, %v3422_v57 }
 0x5c6   : > { %v1693_v14 = vadd.f32 %v1691_v56, %v1663_v38 }
 0x5c7   : > { %v3858_v8 = vpop.permute.xlu1 %1726 }
 0x5c8   : > { %v1729_v17 = vsel %vm1728_vm11, %v4386_v51, %v3858_v8  ;;  %v1730_v39 = vsel %vm1728_vm11, %v3858_v8, %v4386_v51  ;;  %v1690_v8 = vmul.f32 %v4387_v49, %v1684_v16 }
 0x5c9   : > { %v1744_v37 = vmul.f32 %v1737_v9, %v1729_v17  ;;  %v1745_v24 = vmul.f32 %v1741_v35, %v1730_v39  ;;  %v4389_v9 = vld [vmem:[#allocation45_spill] sm:$0xff]  ;;  %v1942_v17 = vld [vmem:[#allocation5 + $0x53] ss:$8 sm:$0x3] }
 0x5ca   : > { %v1720_v35 = vmul.f32 %v4389_v9, %v1714_v33  ;;  %v1721_v41 = vmul.f32 %v4389_v9, %v1715_v47  ;;  %v1692_v36 = vadd.f32 %v1690_v8, %v1662_v53  ;;  %v1917_v47 = vrot.slane %v1912_v30, %v3043_v18 }
 0x5cb   : > { %v3888_v0 = vpop.permute.xlu1 %1756  ;;  %v1750_v42 = vmul.f32 %v4391_v46, %v1744_v37 }
 0x5cc   : > { %v1759_v54 = vsel %vm1758_vm12, %v4388_v1, %v3888_v0  ;;  %v1760_v6 = vsel %vm1758_vm12, %v3888_v0, %v4388_v1  ;;  %v1722_v39 = vadd.f32 %v1720_v35, %v1692_v36  ;;  %v1723_v33 = vadd.f32 %v1721_v41, %v1693_v14  ;;  %v4396_v41 = vld [vmem:[#allocation51_spill] sm:$0xff] }
 0x5cd   : > { %v1774_v19 = vmul.f32 %v1767_v21, %v1759_v54  ;;  %v1775_v4 = vmul.f32 %v1771_v43, %v1760_v6  ;;  %v4395_v6 = vld [vmem:[#allocation52_spill] sm:$0xff] }
 0x5ce   : > { %v1752_v1 = vadd.f32 %v1750_v42, %v1722_v39  ;;  %v2002_v42 = vld [vmem:[#allocation5 + $0x55] ss:$8 sm:$0x3] }
 0x5cf   : > { %v1787_v32 = vpop.permute.xlu1 %1786  ;;  %v2007_v39 = vrot.slane %v2002_v42, %v3043_v18 }
 0x5d0   : > { %v1789_v16 = vsel %vm1788_vm13, %v4390_v26, %v1787_v32  ;;  %v1790_v0 = vsel %vm1788_vm13, %v1787_v32, %v4390_v26  ;;  %v1751_v32 = vmul.f32 %v4391_v46, %v1745_v24  ;;  %v1947_v24 = vrot.slane %v1942_v17, %v3043_v18 }
 0x5d1   : > { %v1804_v21 = vmul.f32 %v1797_v63, %v1789_v16  ;;  %v1805_v2 = vmul.f32 %v1801_v20, %v1790_v0  ;;  %v1780_v63 = vmul.f32 %v4393_v13, %v1774_v19  ;;  %v1781_v20 = vmul.f32 %v4393_v13, %v1775_v4 }
 0x5d2   : > { %v1753_v54 = vadd.f32 %v1751_v32, %v1723_v33  ;;  %v1951_v16 = vrot.slane %v1942_v17, %v3422_v57 }
 0x5d3   : > { %v1817_v45 = vpop.permute.xlu1 %1816  ;;  %v1810_v53 = vmul.f32 %v4395_v6, %v1804_v21  ;;  %v1811_v38 = vmul.f32 %v4395_v6, %v1805_v2 }
 0x5d4   : > { %v1819_v43 = vsel %vm1818_vm14, %v4392_v5, %v1817_v45  ;;  %v1820_v51 = vsel %vm1818_vm14, %v1817_v45, %v4392_v5  ;;  %v1783_v26 = vadd.f32 %v1781_v20, %v1753_v54  ;;  %v2032_v20 = vld [vmem:[#allocation5 + $0x56] ss:$8 sm:$0x3] }
 0x5d5   : > { %v1834_v56 = vmul.f32 %v1827_v3, %v1819_v43  ;;  %v1835_v37 = vmul.f32 %v1831_v40, %v1820_v51  ;;  %v1972_v3 = vld [vmem:[#allocation5 + $0x54] ss:$8 sm:$0x3]  ;;  %v1782_v40 = vadd.f32 %v1780_v63, %v1752_v1  ;;  %v2011_v63 = vrot.slane %v2002_v42, %v3422_v57 }
 0x5d6   : > { %v1977_v14 = vrot.slane %v1972_v3, %v3043_v18  ;;  %v1981_v46 = vrot.slane %v1972_v3, %v3422_v57  ;;  %v1813_v21 = vadd.f32 %v1811_v38, %v1783_v26  ;;  %v2041_v38 = vrot.slane %v2032_v20, %v3422_v57 }
 0x5d7   : > { %v1847_v58 = vpop.permute.xlu1 %1846  ;;  %v1840_v19 = vmul.f32 %v3720_v59, %v1834_v56  ;;  %v1812_v32 = vadd.f32 %v1810_v53, %v1782_v40  ;;  %v2037_v53 = vrot.slane %v2032_v20, %v3043_v18 }
 0x5d8   : > { %v1849_v49 = vsel %vm1848_vm15, %v4394_v31, %v1847_v58  ;;  %v1850_v45 = vsel %vm1848_vm15, %v1847_v58, %v4394_v31 }
 0x5d9   : > { %v1864_v9 = vmul.f32 %v1857_v61, %v1849_v49  ;;  %v1865_v35 = vmul.f32 %v1861_v27, %v1850_v45  ;;  %v1841_v61 = vmul.f32 %v3720_v59, %v1835_v37  ;;  %v1842_v51 = vadd.f32 %v1840_v19, %v1812_v32 }
 0x5db   : > { %v1877_v50 = vpop.permute.xlu1 %1876  ;;  %v1870_v59 = vmul.f32 %v3726_v10, %v1864_v9  ;;  %v1871_v2 = vmul.f32 %v3726_v10, %v1865_v35  ;;  %v1843_v17 = vadd.f32 %v1841_v61, %v1813_v21  ;;  %v2062_v35 = vld [vmem:[#allocation5 + $0x57] ss:$8 sm:$0x3] }
 0x5dc   : > { %v1879_v58 = vsel %vm1878_vm0, %v4396_v41, %v1877_v50  ;;  %v1880_v28 = vsel %vm1878_vm0, %v1877_v50, %v4396_v41  ;;  %v4062_v50 = vpop.permute.xlu0 %2047 }
 0x5dd   : > { %v1894_v30 = vmul.f32 %v1887_v12, %v1879_v58  ;;  %v1895_v36 = vmul.f32 %v1891_v22, %v1880_v28  ;;  %v1872_v49 = vadd.f32 %v1870_v59, %v1842_v51  ;;  %v1873_v45 = vadd.f32 %v1871_v2, %v1843_v17 }
 0x5df   : > { %v1907_v8 = vpop.permute.xlu1 %1906  ;;  %v1900_v33 = vmul.f32 %v3730_v44, %v1894_v30  ;;  %v1901_v10 = vmul.f32 %v3730_v44, %v1895_v36  ;;  %v2071_v30 = vrot.slane %v2062_v35, %v3422_v57 }
 0x5e0   : > { %v1909_v27 = vsel %vm1908_vm1, %v3712_v52, %v1907_v8  ;;  %v1910_v4 = vsel %vm1908_vm1, %v1907_v8, %v3712_v52  ;;  %v2078_v31 = vpop.permute.xlu0 %2077 }
 0x5e1   : > { %v1924_v5 = vmul.f32 %v1917_v47, %v1909_v27  ;;  %v1925_v43 = vmul.f32 %v1921_v48, %v1910_v4  ;;  %v1902_v54 = vadd.f32 %v1900_v33, %v1872_v49  ;;  %v1903_v6 = vadd.f32 %v1901_v10, %v1873_v45 }
 0x5e2   : > { %v2067_v4 = vrot.slane %v2062_v35, %v3043_v18 }
 0x5e3   : > { %v1937_v0 = vpop.permute.xlu1 %1936  ;;  %v1930_v44 = vmul.f32 %v3734_v55, %v1924_v5  ;;  %v1931_v8 = vmul.f32 %v3734_v55, %v1925_v43 }
 0x5e4   : > { %v1939_v52 = vsel %vm1938_vm2, %v3718_v7, %v1937_v0  ;;  %v1940_v12 = vsel %vm1938_vm2, %v1937_v0, %v3718_v7  ;;  %v2092_v0 = vld [vmem:[#allocation5 + $0x60] ss:$8 sm:$0x3]  ;;  %v2108_v19 = vpop.permute.xlu0 %2107 }
 0x5e5   : > { %v1954_v7 = vmul.f32 %v1947_v24, %v1939_v52  ;;  %v1955_v13 = vmul.f32 %v1951_v16, %v1940_v12  ;;  %v1932_v41 = vadd.f32 %v1930_v44, %v1902_v54  ;;  %v1933_v58 = vadd.f32 %v1931_v8, %v1903_v6 }
 0x5e6   : > { %v2097_v32 = vrot.slane %v2092_v0, %v3043_v18 }
 0x5e7   : > { %v1967_v22 = vpop.permute.xlu1 %1966  ;;  %v1960_v9 = vmul.f32 %v3935_v11, %v1954_v7  ;;  %v1961_v55 = vmul.f32 %v3935_v11, %v1955_v13 }
 0x5e8   : > { %v1969_v47 = vsel %vm1968_vm3, %v3722_v60, %v1967_v22  ;;  %v1970_v48 = vsel %vm1968_vm3, %v1967_v22, %v3722_v60  ;;  %v2085_v22 = vpop.permute.xlu0 %2084 }
 0x5e9   : > { %v1984_v37 = vmul.f32 %v1977_v14, %v1969_v47  ;;  %v1985_v1 = vmul.f32 %v1981_v46, %v1970_v48  ;;  %v1962_v36 = vadd.f32 %v1960_v9, %v1932_v41  ;;  %v1963_v14 = vadd.f32 %v1961_v55, %v1933_v58  ;;  %v2134_v9 = vld [vmem:[%s3078_s12] sm:$0xff]  ;;  %v2135_v55 = vld [vmem:[%s3078_s12 + $0x8] sm:$0xff]  ;;  %v2136_v41 = vld [vmem:[%s3078_s12 + $0x10] sm:$0xff] }
 0x5ea   : > { %v2138_v58 = vld [vmem:[%s3078_s12 + $0x20] sm:$0xff] }
 0x5eb   : > { %v1997_v56 = vpop.permute.xlu1 %1996  ;;  %v1991_v26 = vmul.f32 %v3994_v34, %v1985_v1 }
 0x5ec   : > { %v1999_v60 = vsel %vm1998_vm4, %v3724_v23, %v1997_v56  ;;  %v2000_v24 = vsel %vm1998_vm4, %v1997_v56, %v3724_v23  ;;  %v1990_v23 = vmul.f32 %v3994_v34, %v1984_v37 }
 0x5ed   : > { %v2014_v28 = vmul.f32 %v2007_v39, %v1999_v60  ;;  %v2015_v3 = vmul.f32 %v2011_v63, %v2000_v24  ;;  %v1993_v59 = vadd.f32 %v1991_v26, %v1963_v14  ;;  %v2141_v26 = vld [vmem:[%s3078_s12 + $0x38] sm:$0xff] }
 0x5ee   : > { %v1992_v21 = vadd.f32 %v1990_v23, %v1962_v36  ;;  %v2139_v23 = vld [vmem:[%s3078_s12 + $0x28] sm:$0xff] }
 0x5ef   : > { %v2027_v40 = vpop.permute.xlu1 %2026  ;;  %v2020_v34 = vmul.f32 %v4029_v62, %v2014_v28  ;;  %v2021_v46 = vmul.f32 %v4029_v62, %v2015_v3  ;;  %v2140_v28 = vld [vmem:[%s3078_s12 + $0x30] sm:$0xff] }
 0x5f0   : > { %v2029_v16 = vsel %vm2028_vm5, %v3728_v29, %v2027_v40  ;;  %v2030_v11 = vsel %vm2028_vm5, %v2027_v40, %v3728_v29  ;;  %v2101_v29 = vrot.slane %v2092_v0, %v3422_v57  ;;  %v2137_v40 = vld [vmem:[%s3078_s12 + $0x18] sm:$0xff] }
 0x5f1   : > { %v2044_v61 = vmul.f32 %v2037_v53, %v2029_v16  ;;  %v2045_v27 = vmul.f32 %v2041_v38, %v2030_v11  ;;  %v2022_v51 = vadd.f32 %v2020_v34, %v1992_v21  ;;  %v2023_v17 = vadd.f32 %v2021_v46, %v1993_v59 }
 0x5f3   : > { %v2057_v42 = vpop.permute.xlu1 %2056  ;;  %v2050_v43 = vmul.f32 %v4062_v50, %v2044_v61  ;;  %v2051_v52 = vmul.f32 %v4062_v50, %v2045_v27 }
 0x5f4   : > { %v2059_v2 = vsel %vm2058_vm6, %v3732_v15, %v2057_v42  ;;  %v2060_v5 = vsel %vm2058_vm6, %v2057_v42, %v3732_v15 }
 0x5f5   : > { %v2074_v62 = vmul.f32 %v2067_v4, %v2059_v2  ;;  %v2075_v12 = vmul.f32 %v2071_v30, %v2060_v5  ;;  %v2052_v48 = vadd.f32 %v2050_v43, %v2022_v51  ;;  %v2053_v15 = vadd.f32 %v2051_v52, %v2023_v17 }
 0x5f7   : > { %v2080_v57 = vmul.f32 %v2078_v31, %v2074_v62  ;;  %v2081_v39 = vmul.f32 %v2078_v31, %v2075_v12  ;;  %v2087_v33 = vpop.permute.xlu1 %2086 }
 0x5f8   : > { %v2089_v10 = vsel %vm2088_vm7, %v2085_v22, %v2087_v33  ;;  %v2090_v47 = vsel %vm2088_vm7, %v2087_v33, %v2085_v22 }
 0x5f9   : > { %v2104_v7 = vmul.f32 %v2097_v32, %v2089_v10  ;;  %v2105_v13 = vmul.f32 %v2101_v29, %v2090_v47  ;;  %v2082_v63 = vadd.f32 %v2080_v57, %v2052_v48  ;;  %v2083_v50 = vadd.f32 %v2081_v39, %v2053_v15 }
 0x5fb   : > { %v2110_v20 = vmul.f32 %v2108_v19, %v2104_v7  ;;  %v2111_v49 = vmul.f32 %v2108_v19, %v2105_v13 }
 0x5fd   : > { %v2112_v45 = vadd.f32 %v2110_v20, %v2082_v63  ;;  %v2113_v44 = vadd.f32 %v2111_v49, %v2083_v50 }
 0x5ff   : > { %v2116_v8 = vrot.slane %v2112_v45, 1  ;;  %v2117_v31 = vrot.slane %v2113_v44, 1 }
 0x601   : > { %v2120_v56 = vadd.f32 %v2116_v8, %v2112_v45  ;;  %v2121_v37 = vadd.f32 %v2117_v31, %v2113_v44 }
 0x603   : > { %v2279_v1 = vmul.f32 -1.442695, %v2120_v56  ;;  %v2280_v25 = vmul.f32 -1.442695, %v2121_v37 }
 0x605   : > { %2539 = vpow2.f32 %v2279_v1 }
 0x606   : > { %2541 = vpow2.f32 %v2280_v25 }
 0x60f   : > { %v2540_v60 = vpop.eup %2539 }
 0x610   : > { %v2542_v24 = vpop.eup %2541  ;;  %v2128_v54 = vadd.f32 1.0, %v2540_v60 }
 0x611   : > { %v2129_v6 = vadd.f32 1.0, %v2542_v24 }
 0x612   : > { %2543 = vrcp.f32 %v2128_v54 }
 0x613   : > { %2545 = vrcp.f32 %v2129_v6 }
 0x61c   : > { %v2544_v53 = vpop.eup %2543 }
 0x61d   : > { %v2546_v38 = vpop.eup %2545  ;;  %v2145_v35 = vrot.slane %v2544_v53, %v3043_v18 }
 0x61e   : > { %v2149_v3 = vrot.slane %v2546_v38, %v3043_v18 }
 0x61f   : > { %v2150_v16 = vmul.f32 %v2145_v35, %v2134_v9  ;;  %v2152_v11 = vmul.f32 %v2145_v35, %v2136_v41  ;;  %v2154_v0 = vmul.f32 %v2145_v35, %v2138_v58  ;;  %v2156_v19 = vmul.f32 %v2145_v35, %v2140_v28 }
 0x620   : > { %v2151_v18 = vmul.f32 %v2149_v3, %v2135_v55  ;;  %v2153_v61 = vmul.f32 %v2149_v3, %v2137_v40  ;;  %v2155_v27 = vmul.f32 %v2149_v3, %v2139_v23  ;;  %v2157_v4 = vmul.f32 %v2149_v3, %v2141_v26 }
 0x621   : > { %2158 = vst [vmem:[%s3078_s12] sm:$0xff] %v2150_v16  ;;  %2160 = vst [vmem:[%s3078_s12 + $0x10] sm:$0xff] %v2152_v11 }
 0x622   : > { %2162 = vst [vmem:[%s3078_s12 + $0x20] sm:$0xff] %v2154_v0  ;;  %2164 = vst [vmem:[%s3078_s12 + $0x30] sm:$0xff] %v2156_v19 }
 0x623   : > { %2159 = vst [vmem:[%s3078_s12 + $0x8] sm:$0xff] %v2151_v18  ;;  %2161 = vst [vmem:[%s3078_s12 + $0x18] sm:$0xff] %v2153_v61 }
 0x624   : > { %2163 = vst [vmem:[%s3078_s12 + $0x28] sm:$0xff] %v2155_v27  ;;  %2165 = vst [vmem:[%s3078_s12 + $0x38] sm:$0xff] %v2157_v4 }
 0x625   : > { %2618 = shalt.err (!%p2615_p7)
}
 0x626   : > { %s2619_s12 = scalar_lea.hbm %s4141_s17, 1024  ;;  %s2623_s6 = scalar_lea.hbm %s4201_s5, 2048 }
 0x627   : > { %p2620_p9 = scmp.ne.s32.totalorder %s4141_s17, %s2619_s12  ;;  %p2624_p5 = scmp.lt.u32.totalorder %s4141_s17, %s4201_s5 }
 0x628   : > { %p2625_p11 = scmp.lt.u32.totalorder %s2623_s6, %s2619_s12  ;;  %p2627_p4 = scmp.lt.u32.totalorder %s2619_s12, %s4141_s17 }
 0x629   : > { %p2621_p1 = pnand %p2620_p9, %p2908_p12 }
 0x62a   : > { %p2626_p2 = por %p2625_p11, %p2624_p5 }
 0x62b   : > { %p2622_p0 = pneg %p2621_p1 }
 0x62c   : > { %p2628_p6 = por %p2627_p4, %p2626_p2 }
 0x62e   : > { %p2629_p8 = pnand %p2628_p6, %p2622_p0 }
 0x630   : > { %2632 = shalt.err (!%p2629_p8)
}
 0x631   : > { %s2783_s22 = smov 256  }
 0x632   : > { %2331 = dma.vmem_to_hbm [thread:$0]  (%p2908_p12), %s4143_s10, 1024, %s4141_s17, %s2167_s27, %s2783_s22, %s2783_s22, %s4318_s7  }
 0x633 PF: > { %s2195_s28 = sand.u32 1, %s2663_s18   ;;  %p4397_p10 = scmp.ne.s32.totalorder %s4276_s25, 0 }
 0x634   : > { %p4398_p13 = scmp.ge.s32.totalorder %s2675_s21, 2  ;;  %s2196_s14 = scalar_lea.sflag [#allocation4], %s2195_s28 }
 0x636   : > { %p2342_p3 = pnand %p4398_p13, %p4397_p10 }
 0x638   : > { %2658 = dma.done.wait (!%p2342_p3), %s2196_s14, 1024  }
 0x639   : > { %2660 = vsyncadd (!%p2342_p3), %s2196_s14, 4294966272  ;;  %p19_p7 = scmp.ge.s32.totalorder %s2870_s30, 4   ;;  %s4399_s18 = smov %s2667_s19 }
 0x63a   : > { %s4400_s19 = smov %s2671_s20  ;;  %s4401_s20 = smov %s2904_s8 }
 0x63b   : > { %s4402_s21 = smov %s2870_s30  ;;  %21 = sbr.rel (!%p19_p7) target bundleno = 6 (0x6), region = 137 }
 0x642   :  { %2201 = vsyncpa [#allocation3], 1 }
 0x643   :  { %2203 = vsyncpa [#allocation3 + $0x1], 1 }
 0x644   :  { %2204 = vsyncpa [#allocation6], 1 }
 0x645   :  { %2205 = vsyncpa [#allocation4], 1 }
 0x646   :  { %2207 = vsyncpa [#allocation4 + $0x1], 1 }

</bundles_post_ra>
